<compile_context>
chip_gen: v7x
topology: tpu7x:2x2x1
jax: 0.10.0
libtpu: 0.0.40
codegen_flags: <defaults>
</compile_context>

<pallas_src>
import numpy as np

import jax
import jax.numpy as jnp
from jax.experimental import pallas as pl
from jax.experimental.pallas import tpu as pltpu

NEG_SLOPE = 0.01                 # nn.LeakyReLU default
W_DTYPE = jnp.bfloat16           # MXU operand dtype (f32 accumulate everywhere)


# ------------------------- synthetic model_cfg ------------------------------
class model_cfg:
    self_info_len = 4
    self_info_dim = 32
    num_heads = 4
    rr_qkv_in_dim = 32
    rr_att_dim = 32
    ri_qkv_in_dim = 32
    ri_att_dim = 32


# --------------------------- in-kernel helpers -------------------------------
def _leaky(x):
    return jnp.where(x > 0, x, NEG_SLOPE * x)


def _mm(x, w_ref, b_ref):
    """x @ W + b with bf16 MXU operands and f32 accumulation."""
    w = w_ref[...]
    y = jnp.dot(x.astype(w.dtype), w, preferred_element_type=jnp.float32)
    return y + b_ref[...]


def _mmw(x, w_ref):
    """x @ W (no bias) with bf16 MXU operands and f32 accumulation."""
    w = w_ref[...]
    return jnp.dot(x.astype(w.dtype), w, preferred_element_type=jnp.float32)


def _mh_attention(qf, kf_flat, vf_flat, mask3, head_map, head_map_t, n, scale):
    """Masked multi-head attention with a single query token per batch row.

    qf:        (B, D)    f32  queries (already projected by the folded Wq)
    kf_flat:   (B*n, D)  f32  projected keys
    vf_flat:   (B*n, D)  f32  projected values
    mask3:     (B, n, 1) f32  >0 = valid
    head_map:  (D, H)    bf16 0/1 column h selects the lanes of head h
    head_map_t:(H, D)    bf16 transpose of head_map
    """
    b, d = qf.shape
    kf = kf_flat.reshape(b, n, d)          # lane dim unchanged; sublane-aligned (n==8)
    vf = vf_flat.reshape(b, n, d)
    prod = qf[:, None, :] * kf                                        # (B,n,D) VPU
    s = jnp.dot(prod.reshape(b * n, d).astype(head_map.dtype), head_map,
                preferred_element_type=jnp.float32)                   # (B*n,H)
    s = s.reshape(b, n, -1) * scale
    s = jnp.where(mask3 > 0, s, jnp.float32(-1e9))
    # NOTE: a fully-masked row degenerates to a uniform distribution (same as
    # the reference masked-softmax behaviour), never NaN.
    s = s - jnp.max(s, axis=1, keepdims=True)                         # softmax over n
    p = jnp.exp(s)
    p = p * pl.reciprocal(jnp.sum(p, axis=1, keepdims=True), approx=True)
    p_full = jnp.dot(p.reshape(b * n, -1).astype(head_map_t.dtype), head_map_t,
                     preferred_element_type=jnp.float32).reshape(b, n, d)
    return jnp.sum(p_full * vf, axis=1)                               # (B, D)


# ------------------------------ fused kernel ---------------------------------
def _robot_critic_kernel(*refs):
    (si_ref, fov1_ref, nb_ref, nbm_ref, it_ref, itm_ref, keyv_ref,
     hm_ref, hmt_ref,
     c2w, c2b, ffw, ffb,
     se1w, se1b, se2w, se2b,
     rrqw, rrqb, rrkw, rrkb, rrvw, rrvb,
     riqw, riqb, rikw, rikb, rivw, rivb,
     m1fovw, m1selfw, m1allyw, m1qrrw, m1enemyw, m1qriw, m1b,
     m2w, m2b,
     gqw, gqb, gkw, gkb, gvw, gvb, gow, gob,
     cr1locw, cr1glbw, cr1b, cr2w, cr2b,
     out_ref) = refs

    n_nb = nbm_ref.shape[1]
    n_it = itm_ref.shape[1]
    d_att = model_cfg.rr_att_dim
    d_head = d_att // model_cfg.num_heads
    att_scale = 1.0 / float(d_head) ** 0.5

    head_map = hm_ref[...]          # (32, 4) bf16 0/1
    head_map_t = hmt_ref[...]       # (4, 32) bf16 0/1
    si = si_ref[...]                # (B, 6)

    # ---- FOV encoder: conv2 (dense matmul) -> fc (conv1 ran in the wrapper)
    h = _leaky(_mm(fov1_ref[...], c2w, c2b))                  # (B, 256)
    fov = _leaky(_mm(h, ffw, ffb))                            # (B, 192)

    # ---- self encoder
    h = _leaky(_mm(si, se1w, se1b))                           # (B, 16)
    self_v = _leaky(_mm(h, se2w, se2b))                       # (B, 32)

    # ---- robot-robot (neighbor) attention; query weight is project_rr_q∘Wq
    qf_rr = _mm(si, rrqw, rrqb)                               # (B, 32)
    k_rr = _mm(nb_ref[...], rrkw, rrkb)                       # (B*Nn, 32)
    v_rr = _mm(nb_ref[...], rrvw, rrvb)                       # (B*Nn, 32)
    ally = _mh_attention(qf_rr, k_rr, v_rr, nbm_ref[...],
                         head_map, head_map_t, n_nb, att_scale)       # (B, 32)

    # ---- robot-interferer attention
    qf_ri = _mm(si, riqw, riqb)
    k_ri = _mm(it_ref[...], rikw, rikb)
    v_ri = _mm(it_ref[...], rivw, rivb)
    enemy = _mh_attention(qf_ri, k_ri, v_ri, itm_ref[...],
                          head_map, head_map_t, n_it, att_scale)      # (B, 32)

    # ---- core MLP layer 1: per-segment row blocks of mlp1_w, accumulated
    #      partial matmuls instead of a lane-misaligned 352-wide concat
    acc = _mmw(fov, m1fovw)
    acc += _mmw(self_v, m1selfw)
    acc += _mmw(ally, m1allyw)
    acc += _mmw(qf_rr, m1qrrw)
    acc += _mmw(enemy, m1enemyw)
    acc += _mmw(qf_ri, m1qriw)
    h = _leaky(acc + m1b[...])                                # (B, 64)
    loc = _leaky(_mm(h, m2w, m2b))                            # (B, 192)

    # ---- MHA_CommBlock: single-head self-attention across robots.
    #      Three separate 192->192 matmuls (no fused-QKV lane slicing).
    #      Padded batch rows are masked out as keys so valid rows are exact.
    q_g = _mm(loc, gqw, gqb)                                  # (B, 192)
    k_g = _mm(loc, gkw, gkb)
    v_g = _mm(loc, gvw, gvb)
    s_g = jax.lax.dot_general(q_g.astype(W_DTYPE), k_g.astype(W_DTYPE),
                              (((1,), (1,)), ((), ())),
                              preferred_element_type=jnp.float32)      # (B, B)
    s_g = s_g * (1.0 / float(192) ** 0.5)
    s_g = jnp.where(keyv_ref[...] > 0, s_g, jnp.float32(-1e9))
    s_g = s_g - jnp.max(s_g, axis=-1, keepdims=True)
    p_g = jnp.exp(s_g)
    p_g = p_g * pl.reciprocal(jnp.sum(p_g, axis=-1, keepdims=True), approx=True)
    att = jnp.dot(p_g.astype(W_DTYPE), v_g.astype(W_DTYPE),
                  preferred_element_type=jnp.float32)                  # (B, 192)
    glb = _mm(att, gow, gob)                                  # (B, 192)

    # ---- critic head: cr1 weight split (loc rows | glb rows), no concat
    h = _leaky(_mmw(loc, cr1locw) + _mmw(glb, cr1glbw) + cr1b[...])    # (B, 32)
    out_ref[...] = _mm(h, cr2w, cr2b).astype(out_ref.dtype)            # (B, 1)


# --------------------------- parameter helpers -------------------------------
def _init_linear(key, fan_in, fan_out):
    kw_, kb_ = jax.random.split(key)
    lim = 1.0 / float(fan_in) ** 0.5
    w = jax.random.uniform(kw_, (fan_in, fan_out), jnp.float32, -lim, lim)
    b = jax.random.uniform(kb_, (fan_out,), jnp.float32, -lim, lim)
    return w, b


def _init_conv(key, cin, cout, k):
    kw_, kb_ = jax.random.split(key)
    fan_in = cin * k * k
    lim = 1.0 / float(fan_in) ** 0.5
    w = jax.random.uniform(kw_, (cout, cin, k, k), jnp.float32, -lim, lim)
    b = jax.random.uniform(kb_, (cout,), jnp.float32, -lim, lim)
    return w, b


def _conv_to_dense(w, b, h_in, w_in, stride, pad):
    """Lower a conv2d (NCHW in/out) to a dense matmul on the flat feature map."""
    w = np.asarray(w, np.float32)
    b = np.asarray(b, np.float32)
    cout, cin, kh, kw = w.shape
    ho = (h_in + 2 * pad - kh) // stride + 1
    wo = (w_in + 2 * pad - kw) // stride + 1
    dense = np.zeros((cin * h_in * w_in, cout * ho * wo), np.float32)
    for co in range(cout):
        for oy in range(ho):
            for ox in range(wo):
                out_idx = (co * ho + oy) * wo + ox
                for ci in range(cin):
                    for ky in range(kh):
                        iy = oy * stride - pad + ky
                        if iy < 0 or iy >= h_in:
                            continue
                        for kx in range(kw):
                            ix = ox * stride - pad + kx
                            if ix < 0 or ix >= w_in:
                                continue
                            dense[(ci * h_in + iy) * w_in + ix, out_idx] = \
                                w[co, ci, ky, kx]
    bias = np.repeat(b, ho * wo)
    return dense, bias


def init_params(key):
    self_total = model_cfg.self_info_len + 2      # 6
    cnn_out = 192
    ks = jax.random.split(key, 24)

    c1w, c1b = _init_conv(ks[0], 4, 8, 3)
    c2w, c2b = _init_conv(ks[1], 8, 16, 3)
    fovfc_w, fovfc_b = _init_linear(ks[2], 16 * 4 * 4, cnn_out)
    se1_w, se1_b = _init_linear(ks[3], self_total, 16)
    se2_w, se2_b = _init_linear(ks[4], 16, model_cfg.self_info_dim)
    prr_w, prr_b = _init_linear(ks[5], self_total, model_cfg.rr_qkv_in_dim)
    pri_w, pri_b = _init_linear(ks[6], self_total, model_cfg.ri_qkv_in_dim)
    rr_wq, rr_bq = _init_linear(ks[7], model_cfg.rr_qkv_in_dim, model_cfg.rr_att_dim)
    rr_wk, rr_bk = _init_linear(ks[8], model_cfg.rr_qkv_in_dim, model_cfg.rr_att_dim)
    rr_wv, rr_bv = _init_linear(ks[9], model_cfg.rr_qkv_in_dim, model_cfg.rr_att_dim)
    ri_wq, ri_bq = _init_linear(ks[10], model_cfg.ri_qkv_in_dim, model_cfg.ri_att_dim)
    ri_wk, ri_bk = _init_linear(ks[11], model_cfg.ri_qkv_in_dim, model_cfg.ri_att_dim)
    ri_wv, ri_bv = _init_linear(ks[12], model_cfg.ri_qkv_in_dim, model_cfg.ri_att_dim)
    core_in = (cnn_out + model_cfg.self_info_dim
               + 2 * model_cfg.rr_att_dim + 2 * model_cfg.ri_att_dim)     # 352
    mlp1_w, mlp1_b = _init_linear(ks[13], core_in, 64)
    mlp2_w, mlp2_b = _init_linear(ks[14], 64, 192)
    g_wq, g_bq = _init_linear(ks[15], 192, 192)
    g_wk, g_bk = _init_linear(ks[16], 192, 192)
    g_wv, g_bv = _init_linear(ks[17], 192, 192)
    g_wo, g_bo = _init_linear(ks[18], 192, 192)
    cr1_w, cr1_b = _init_linear(ks[19], 384, 32)
    cr2_w, cr2_b = _init_linear(ks[20], 32, 1)

    # conv2 -> dense matmul (rows = NCHW flatten of conv1's activation).
    c2d_w, c2d_b = _conv_to_dense(c2w, c2b, 8, 8, stride=2, pad=1)    # (512, 256)

    # Fold project_rr_q ∘ Wq and project_ri_q ∘ Wq (no nonlinearity between
    # them) into single (6, 32) matrices; fold in f32, cast once to bf16.
    rrq_w_f = np.asarray(prr_w @ rr_wq, np.float32)
    rrq_b_f = np.asarray(prr_b @ rr_wq + rr_bq, np.float32)
    riq_w_f = np.asarray(pri_w @ ri_wq, np.float32)
    riq_b_f = np.asarray(pri_b @ ri_wq + ri_bq, np.float32)

    # Split mlp1 / critic-fc1 weights into per-segment row blocks so the
    # kernel never concatenates at non-128-aligned lane offsets.
    m1 = np.asarray(mlp1_w, np.float32)
    seg = np.cumsum([0, cnn_out, 32, 32, 32, 32, 32])
    m1_blocks = [m1[seg[i]:seg[i + 1]] for i in range(6)]
    cr1 = np.asarray(cr1_w, np.float32)
    cr1_loc, cr1_glb = cr1[:192], cr1[192:]

    # 0/1 head-reduction map (heads folded into lanes); exact in bf16.
    d_att, n_heads = model_cfg.rr_att_dim, model_cfg.num_heads
    assert d_att % n_heads == 0
    d_head = d_att // n_heads
    hm = np.zeros((d_att, n_heads), np.float32)
    for d in range(d_att):
        hm[d, d // d_head] = 1.0

    def W(x):
        return jnp.asarray(x, W_DTYPE)

    def Bv(x):
        return jnp.asarray(x, jnp.float32).reshape(1, -1)

    return {
        # conv1 stays f32 and runs in the wrapper (XLA).
        "c1_w": jnp.asarray(c1w, jnp.float32), "c1_b": jnp.asarray(c1b, jnp.float32),
        "c2d_w": W(c2d_w), "c2d_b": Bv(c2d_b),
        "fovfc_w": W(fovfc_w), "fovfc_b": Bv(fovfc_b),
        "se1_w": W(se1_w), "se1_b": Bv(se1_b),
        "se2_w": W(se2_w), "se2_b": Bv(se2_b),
        "rrq_w": W(rrq_w_f), "rrq_b": Bv(rrq_b_f),
        "rrk_w": W(rr_wk), "rrk_b": Bv(rr_bk),
        "rrv_w": W(rr_wv), "rrv_b": Bv(rr_bv),
        "riq_w": W(riq_w_f), "riq_b": Bv(riq_b_f),
        "rik_w": W(ri_wk), "rik_b": Bv(ri_bk),
        "riv_w": W(ri_wv), "riv_b": Bv(ri_bv),
        "m1_fov_w": W(m1_blocks[0]), "m1_self_w": W(m1_blocks[1]),
        "m1_ally_w": W(m1_blocks[2]), "m1_qrr_w": W(m1_blocks[3]),
        "m1_enemy_w": W(m1_blocks[4]), "m1_qri_w": W(m1_blocks[5]),
        "m1_b": Bv(mlp1_b),
        "mlp2_w": W(mlp2_w), "mlp2_b": Bv(mlp2_b),
        "gq_w": W(g_wq), "gq_b": Bv(g_bq),
        "gk_w": W(g_wk), "gk_b": Bv(g_bk),
        "gv_w": W(g_wv), "gv_b": Bv(g_bv),
        "go_w": W(g_wo), "go_b": Bv(g_bo),
        "cr1_loc_w": W(cr1_loc), "cr1_glb_w": W(cr1_glb), "cr1_b": Bv(cr1_b),
        "cr2_w": W(cr2_w), "cr2_b": Bv(cr2_b),
        "head_map": W(hm), "head_map_T": W(hm.T),
    }


_PARAM_ORDER = (
    "c2d_w", "c2d_b", "fovfc_w", "fovfc_b",
    "se1_w", "se1_b", "se2_w", "se2_b",
    "rrq_w", "rrq_b", "rrk_w", "rrk_b", "rrv_w", "rrv_b",
    "riq_w", "riq_b", "rik_w", "rik_b", "riv_w", "riv_b",
    "m1_fov_w", "m1_self_w", "m1_ally_w", "m1_qrr_w", "m1_enemy_w", "m1_qri_w",
    "m1_b",
    "mlp2_w", "mlp2_b",
    "gq_w", "gq_b", "gk_w", "gk_b", "gv_w", "gv_b", "go_w", "go_b",
    "cr1_loc_w", "cr1_glb_w", "cr1_b", "cr2_w", "cr2_b",
)


# ------------------------------ full forward ---------------------------------
def robot_critic_forward(params, self_info, grid_map, neighbor_info, neighbor_mask,
                         inter_info, inter_mask, robot_critic_hidden,
                         absolute_coordinate):
    b = self_info.shape[0]
    n_nb = neighbor_info.shape[1]
    n_it = inter_info.shape[1]
    b_pad = ((b + 7) // 8) * 8            # pad batch to the f32 sublane tile
    pad = b_pad - b

    si = jnp.concatenate([self_info, absolute_coordinate], axis=-1).astype(jnp.float32)

    # conv1 (4->8, 3x3, stride 2, pad 1) + LeakyReLU in the wrapper: removes
    # the 96%-zero 1 MiB dense conv1 weight from every kernel call.
    x = grid_map.astype(jnp.float32)
    h1 = jax.lax.conv_general_dilated(
        x, params["c1_w"], window_strides=(2, 2), padding=((1, 1), (1, 1)),
        dimension_numbers=("NCHW", "OIHW", "NCHW"))
    h1 = h1 + params["c1_b"][None, :, None, None]
    h1 = jnp.where(h1 > 0, h1, NEG_SLOPE * h1)
    fov1 = h1.reshape(b, -1)              # NCHW flatten == conv2-dense row order

    # flatten K/V inputs once here so the kernel's projections take (B*N, 32)
    nb_flat = neighbor_info.astype(jnp.float32).reshape(b * n_nb, -1)
    it_flat = inter_info.astype(jnp.float32).reshape(b * n_it, -1)
    nbm = neighbor_mask.astype(jnp.float32)[:, :, None]             # (B, Nn, 1)
    itm = inter_mask.astype(jnp.float32)[:, :, None]                # (B, Ni, 1)

    if pad:
        si = jnp.pad(si, ((0, pad), (0, 0)))
        fov1 = jnp.pad(fov1, ((0, pad), (0, 0)))
        nb_flat = jnp.pad(nb_flat, ((0, pad * n_nb), (0, 0)))
        it_flat = jnp.pad(it_flat, ((0, pad * n_it), (0, 0)))
        nbm = jnp.pad(nbm, ((0, pad), (0, 0), (0, 0)))
        itm = jnp.pad(itm, ((0, pad), (0, 0), (0, 0)))
    # padded rows are excluded as keys in the comm-block softmax
    key_valid = (jnp.arange(b_pad) < b).astype(jnp.float32).reshape(1, b_pad)

    inputs = [si, fov1, nb_flat, nbm, it_flat, itm, key_valid,
              params["head_map"], params["head_map_T"]]
    inputs += [params[k] for k in _PARAM_ORDER]

    values = pl.pallas_call(
        _robot_critic_kernel,
        out_shape=jax.ShapeDtypeStruct((b_pad, 1), jnp.float32),
        in_specs=[pl.BlockSpec(memory_space=pltpu.MemorySpace.VMEM)] * len(inputs),
        out_specs=pl.BlockSpec(memory_space=pltpu.MemorySpace.VMEM),
        compiler_params=pltpu.CompilerParams(vmem_limit_bytes=32 * 1024 * 1024),
    )(*inputs)
    # .detach() is a no-op here (pure inference, no autograd graph).
    return values[:b], robot_critic_hidden


# ----------------------------------- main ------------------------------------
if __name__ == "__main__":
    key = jax.random.PRNGKey(0)
    ks = jax.random.split(key, 8)

    B, N_NB, N_IN = 2, 8, 8
    self_info = jax.random.normal(ks[0], (B, model_cfg.self_info_len), jnp.float32)
    absolute_coordinate = jax.random.normal(ks[1], (B, 2), jnp.float32)
    grid_map = jax.random.normal(ks[2], (B, 4, 16, 16), jnp.float32)        # NCHW
    neighbor_info = jax.random.normal(ks[3], (B, N_NB, model_cfg.rr_qkv_in_dim),
                                      jnp.float32)
    inter_info = jax.random.normal(ks[4], (B, N_IN, model_cfg.ri_qkv_in_dim),
                                   jnp.float32)
    neighbor_mask = jnp.concatenate(
        [jnp.ones((B, N_NB - 2), jnp.float32), jnp.zeros((B, 2), jnp.float32)], axis=-1)
    inter_mask = jnp.concatenate(
        [jnp.ones((B, N_IN - 3), jnp.float32), jnp.zeros((B, 3), jnp.float32)], axis=-1)
    robot_critic_hidden = jax.random.normal(ks[5], (B, 64), jnp.float32)

    params = init_params(jax.random.PRNGKey(42))

    fwd = jax.jit(robot_critic_forward)
    values, hidden = fwd(params, self_info, grid_map, neighbor_info, neighbor_mask,
                         inter_info, inter_mask, robot_critic_hidden,
                         absolute_coordinate)
    values = jax.block_until_ready(values)
    hidden = jax.block_until_ready(hidden)

    assert values.shape == (B, 1), values.shape
    assert hidden.shape == robot_critic_hidden.shape
    assert bool(jnp.all(jnp.isfinite(values)))
    print("KERNEL_OK")
</pallas_src>

<mosaic_0001>
module attributes {stable_mosaic.version = 11 : i64} {
  func.func @_robot_critic_kernel(%arg0: memref<8x6xf32, #tpu.memory_space<vmem>>, %arg1: memref<8x512xf32, #tpu.memory_space<vmem>>, %arg2: memref<64x32xf32, #tpu.memory_space<vmem>>, %arg3: memref<8x8x1xf32, #tpu.memory_space<vmem>>, %arg4: memref<64x32xf32, #tpu.memory_space<vmem>>, %arg5: memref<8x8x1xf32, #tpu.memory_space<vmem>>, %arg6: memref<1x8xf32, #tpu.memory_space<vmem>>, %arg7: memref<32x4xbf16, #tpu.memory_space<vmem>>, %arg8: memref<4x32xbf16, #tpu.memory_space<vmem>>, %arg9: memref<512x256xbf16, #tpu.memory_space<vmem>>, %arg10: memref<1x256xf32, #tpu.memory_space<vmem>>, %arg11: memref<256x192xbf16, #tpu.memory_space<vmem>>, %arg12: memref<1x192xf32, #tpu.memory_space<vmem>>, %arg13: memref<6x16xbf16, #tpu.memory_space<vmem>>, %arg14: memref<1x16xf32, #tpu.memory_space<vmem>>, %arg15: memref<16x32xbf16, #tpu.memory_space<vmem>>, %arg16: memref<1x32xf32, #tpu.memory_space<vmem>>, %arg17: memref<6x32xbf16, #tpu.memory_space<vmem>>, %arg18: memref<1x32xf32, #tpu.memory_space<vmem>>, %arg19: memref<32x32xbf16, #tpu.memory_space<vmem>>, %arg20: memref<1x32xf32, #tpu.memory_space<vmem>>, %arg21: memref<32x32xbf16, #tpu.memory_space<vmem>>, %arg22: memref<1x32xf32, #tpu.memory_space<vmem>>, %arg23: memref<6x32xbf16, #tpu.memory_space<vmem>>, %arg24: memref<1x32xf32, #tpu.memory_space<vmem>>, %arg25: memref<32x32xbf16, #tpu.memory_space<vmem>>, %arg26: memref<1x32xf32, #tpu.memory_space<vmem>>, %arg27: memref<32x32xbf16, #tpu.memory_space<vmem>>, %arg28: memref<1x32xf32, #tpu.memory_space<vmem>>, %arg29: memref<192x64xbf16, #tpu.memory_space<vmem>>, %arg30: memref<32x64xbf16, #tpu.memory_space<vmem>>, %arg31: memref<32x64xbf16, #tpu.memory_space<vmem>>, %arg32: memref<32x64xbf16, #tpu.memory_space<vmem>>, %arg33: memref<32x64xbf16, #tpu.memory_space<vmem>>, %arg34: memref<32x64xbf16, #tpu.memory_space<vmem>>, %arg35: memref<1x64xf32, #tpu.memory_space<vmem>>, %arg36: memref<64x192xbf16, #tpu.memory_space<vmem>>, %arg37: memref<1x192xf32, #tpu.memory_space<vmem>>, %arg38: memref<192x192xbf16, #tpu.memory_space<vmem>>, %arg39: memref<1x192xf32, #tpu.memory_space<vmem>>, %arg40: memref<192x192xbf16, #tpu.memory_space<vmem>>, %arg41: memref<1x192xf32, #tpu.memory_space<vmem>>, %arg42: memref<192x192xbf16, #tpu.memory_space<vmem>>, %arg43: memref<1x192xf32, #tpu.memory_space<vmem>>, %arg44: memref<192x192xbf16, #tpu.memory_space<vmem>>, %arg45: memref<1x192xf32, #tpu.memory_space<vmem>>, %arg46: memref<192x32xbf16, #tpu.memory_space<vmem>>, %arg47: memref<192x32xbf16, #tpu.memory_space<vmem>>, %arg48: memref<1x32xf32, #tpu.memory_space<vmem>>, %arg49: memref<32x1xbf16, #tpu.memory_space<vmem>>, %arg50: memref<1x1xf32, #tpu.memory_space<vmem>>, %arg51: memref<8x1xf32, #tpu.memory_space<vmem>>) attributes {dimension_semantics = [], scalar_prefetch = 0 : i64, scratch_operands = 0 : i64, tpu.core_type = #tpu.core_type<tc>} {
    %c0 = arith.constant 0 : index
    %c0_0 = arith.constant 0 : index
    %0 = vector.load %arg7[%c0, %c0_0] : memref<32x4xbf16, #tpu.memory_space<vmem>>, vector<32x4xbf16>
    %c0_1 = arith.constant 0 : index
    %c0_2 = arith.constant 0 : index
    %1 = vector.load %arg8[%c0_1, %c0_2] : memref<4x32xbf16, #tpu.memory_space<vmem>>, vector<4x32xbf16>
    %c0_3 = arith.constant 0 : index
    %c0_4 = arith.constant 0 : index
    %2 = vector.load %arg0[%c0_3, %c0_4] : memref<8x6xf32, #tpu.memory_space<vmem>>, vector<8x6xf32>
    %c0_5 = arith.constant 0 : index
    %c0_6 = arith.constant 0 : index
    %3 = vector.load %arg1[%c0_5, %c0_6] : memref<8x512xf32, #tpu.memory_space<vmem>>, vector<8x512xf32>
    %c0_7 = arith.constant 0 : index
    %c0_8 = arith.constant 0 : index
    %4 = vector.load %arg9[%c0_7, %c0_8] : memref<512x256xbf16, #tpu.memory_space<vmem>>, vector<512x256xbf16>
    %5 = arith.truncf %3 : vector<8x512xf32> to vector<8x512xbf16>
    %cst = arith.constant dense<0.000000e+00> : vector<8x256xf32>
    %6 = tpu.matmul %5, %4, %cst {dimension_numbers = #tpu.dot_dimension_numbers<[1], [0], [0], [1], [0, 0, 1, 1], [], []>} : vector<8x512xbf16>, vector<512x256xbf16>, vector<8x256xf32> -> vector<8x256xf32>
    %c0_9 = arith.constant 0 : index
    %c0_10 = arith.constant 0 : index
    %7 = vector.load %arg10[%c0_9, %c0_10] : memref<1x256xf32, #tpu.memory_space<vmem>>, vector<1x256xf32>
    %8 = vector.broadcast %7 : vector<1x256xf32> to vector<8x256xf32>
    %9 = arith.addf %6, %8 : vector<8x256xf32>
    %cst_11 = arith.constant 0.000000e+00 : f32
    %10 = vector.broadcast %cst_11 : f32 to vector<8x256xf32>
    %11 = arith.cmpf ogt, %9, %10 : vector<8x256xf32>
    %cst_12 = arith.constant 0.00999999977 : f32
    %12 = vector.broadcast %cst_12 : f32 to vector<8x256xf32>
    %13 = arith.mulf %12, %9 : vector<8x256xf32>
    %14 = arith.select %11, %9, %13 : vector<8x256xi1>, vector<8x256xf32>
    %c0_13 = arith.constant 0 : index
    %c0_14 = arith.constant 0 : index
    %15 = vector.load %arg11[%c0_13, %c0_14] : memref<256x192xbf16, #tpu.memory_space<vmem>>, vector<256x192xbf16>
    %16 = arith.truncf %14 : vector<8x256xf32> to vector<8x256xbf16>
    %cst_15 = arith.constant dense<0.000000e+00> : vector<8x192xf32>
    %17 = tpu.matmul %16, %15, %cst_15 {dimension_numbers = #tpu.dot_dimension_numbers<[1], [0], [0], [1], [0, 0, 1, 1], [], []>} : vector<8x256xbf16>, vector<256x192xbf16>, vector<8x192xf32> -> vector<8x192xf32>
    %c0_16 = arith.constant 0 : index
    %c0_17 = arith.constant 0 : index
    %18 = vector.load %arg12[%c0_16, %c0_17] : memref<1x192xf32, #tpu.memory_space<vmem>>, vector<1x192xf32>
    %19 = vector.broadcast %18 : vector<1x192xf32> to vector<8x192xf32>
    %20 = arith.addf %17, %19 : vector<8x192xf32>
    %cst_18 = arith.constant 0.000000e+00 : f32
    %21 = vector.broadcast %cst_18 : f32 to vector<8x192xf32>
    %22 = arith.cmpf ogt, %20, %21 : vector<8x192xf32>
    %cst_19 = arith.constant 0.00999999977 : f32
    %23 = vector.broadcast %cst_19 : f32 to vector<8x192xf32>
    %24 = arith.mulf %23, %20 : vector<8x192xf32>
    %25 = arith.select %22, %20, %24 : vector<8x192xi1>, vector<8x192xf32>
    %c0_20 = arith.constant 0 : index
    %c0_21 = arith.constant 0 : index
    %26 = vector.load %arg13[%c0_20, %c0_21] : memref<6x16xbf16, #tpu.memory_space<vmem>>, vector<6x16xbf16>
    %27 = arith.truncf %2 : vector<8x6xf32> to vector<8x6xbf16>
    %cst_22 = arith.constant dense<0.000000e+00> : vector<8x16xf32>
    %28 = tpu.matmul %27, %26, %cst_22 {dimension_numbers = #tpu.dot_dimension_numbers<[1], [0], [0], [1], [0, 0, 1, 1], [], []>} : vector<8x6xbf16>, vector<6x16xbf16>, vector<8x16xf32> -> vector<8x16xf32>
    %c0_23 = arith.constant 0 : index
    %c0_24 = arith.constant 0 : index
    %29 = vector.load %arg14[%c0_23, %c0_24] : memref<1x16xf32, #tpu.memory_space<vmem>>, vector<1x16xf32>
    %30 = vector.broadcast %29 : vector<1x16xf32> to vector<8x16xf32>
    %31 = arith.addf %28, %30 : vector<8x16xf32>
    %cst_25 = arith.constant 0.000000e+00 : f32
    %32 = vector.broadcast %cst_25 : f32 to vector<8x16xf32>
    %33 = arith.cmpf ogt, %31, %32 : vector<8x16xf32>
    %cst_26 = arith.constant 0.00999999977 : f32
    %34 = vector.broadcast %cst_26 : f32 to vector<8x16xf32>
    %35 = arith.mulf %34, %31 : vector<8x16xf32>
    %36 = arith.select %33, %31, %35 : vector<8x16xi1>, vector<8x16xf32>
    %c0_27 = arith.constant 0 : index
    %c0_28 = arith.constant 0 : index
    %37 = vector.load %arg15[%c0_27, %c0_28] : memref<16x32xbf16, #tpu.memory_space<vmem>>, vector<16x32xbf16>
    %38 = arith.truncf %36 : vector<8x16xf32> to vector<8x16xbf16>
    %cst_29 = arith.constant dense<0.000000e+00> : vector<8x32xf32>
    %39 = tpu.matmul %38, %37, %cst_29 {dimension_numbers = #tpu.dot_dimension_numbers<[1], [0], [0], [1], [0, 0, 1, 1], [], []>} : vector<8x16xbf16>, vector<16x32xbf16>, vector<8x32xf32> -> vector<8x32xf32>
    %c0_30 = arith.constant 0 : index
    %c0_31 = arith.constant 0 : index
    %40 = vector.load %arg16[%c0_30, %c0_31] : memref<1x32xf32, #tpu.memory_space<vmem>>, vector<1x32xf32>
    %41 = vector.broadcast %40 : vector<1x32xf32> to vector<8x32xf32>
    %42 = arith.addf %39, %41 : vector<8x32xf32>
    %cst_32 = arith.constant 0.000000e+00 : f32
    %43 = vector.broadcast %cst_32 : f32 to vector<8x32xf32>
    %44 = arith.cmpf ogt, %42, %43 : vector<8x32xf32>
    %cst_33 = arith.constant 0.00999999977 : f32
    %45 = vector.broadcast %cst_33 : f32 to vector<8x32xf32>
    %46 = arith.mulf %45, %42 : vector<8x32xf32>
    %47 = arith.select %44, %42, %46 : vector<8x32xi1>, vector<8x32xf32>
    %c0_34 = arith.constant 0 : index
    %c0_35 = arith.constant 0 : index
    %48 = vector.load %arg17[%c0_34, %c0_35] : memref<6x32xbf16, #tpu.memory_space<vmem>>, vector<6x32xbf16>
    %49 = arith.truncf %2 : vector<8x6xf32> to vector<8x6xbf16>
    %cst_36 = arith.constant dense<0.000000e+00> : vector<8x32xf32>
    %50 = tpu.matmul %49, %48, %cst_36 {dimension_numbers = #tpu.dot_dimension_numbers<[1], [0], [0], [1], [0, 0, 1, 1], [], []>} : vector<8x6xbf16>, vector<6x32xbf16>, vector<8x32xf32> -> vector<8x32xf32>
    %c0_37 = arith.constant 0 : index
    %c0_38 = arith.constant 0 : index
    %51 = vector.load %arg18[%c0_37, %c0_38] : memref<1x32xf32, #tpu.memory_space<vmem>>, vector<1x32xf32>
    %52 = vector.broadcast %51 : vector<1x32xf32> to vector<8x32xf32>
    %53 = arith.addf %50, %52 : vector<8x32xf32>
    %c0_39 = arith.constant 0 : index
    %c0_40 = arith.constant 0 : index
    %54 = vector.load %arg2[%c0_39, %c0_40] : memref<64x32xf32, #tpu.memory_space<vmem>>, vector<64x32xf32>
    %c0_41 = arith.constant 0 : index
    %c0_42 = arith.constant 0 : index
    %55 = vector.load %arg19[%c0_41, %c0_42] : memref<32x32xbf16, #tpu.memory_space<vmem>>, vector<32x32xbf16>
    %56 = arith.truncf %54 : vector<64x32xf32> to vector<64x32xbf16>
    %cst_43 = arith.constant dense<0.000000e+00> : vector<64x32xf32>
    %57 = tpu.matmul %56, %55, %cst_43 {dimension_numbers = #tpu.dot_dimension_numbers<[1], [0], [0], [1], [0, 0, 1, 1], [], []>} : vector<64x32xbf16>, vector<32x32xbf16>, vector<64x32xf32> -> vector<64x32xf32>
    %c0_44 = arith.constant 0 : index
    %c0_45 = arith.constant 0 : index
    %58 = vector.load %arg20[%c0_44, %c0_45] : memref<1x32xf32, #tpu.memory_space<vmem>>, vector<1x32xf32>
    %59 = vector.broadcast %58 : vector<1x32xf32> to vector<64x32xf32>
    %60 = arith.addf %57, %59 : vector<64x32xf32>
    %c0_46 = arith.constant 0 : index
    %c0_47 = arith.constant 0 : index
    %61 = vector.load %arg2[%c0_46, %c0_47] : memref<64x32xf32, #tpu.memory_space<vmem>>, vector<64x32xf32>
    %c0_48 = arith.constant 0 : index
    %c0_49 = arith.constant 0 : index
    %62 = vector.load %arg21[%c0_48, %c0_49] : memref<32x32xbf16, #tpu.memory_space<vmem>>, vector<32x32xbf16>
    %63 = arith.truncf %61 : vector<64x32xf32> to vector<64x32xbf16>
    %cst_50 = arith.constant dense<0.000000e+00> : vector<64x32xf32>
    %64 = tpu.matmul %63, %62, %cst_50 {dimension_numbers = #tpu.dot_dimension_numbers<[1], [0], [0], [1], [0, 0, 1, 1], [], []>} : vector<64x32xbf16>, vector<32x32xbf16>, vector<64x32xf32> -> vector<64x32xf32>
    %c0_51 = arith.constant 0 : index
    %c0_52 = arith.constant 0 : index
    %65 = vector.load %arg22[%c0_51, %c0_52] : memref<1x32xf32, #tpu.memory_space<vmem>>, vector<1x32xf32>
    %66 = vector.broadcast %65 : vector<1x32xf32> to vector<64x32xf32>
    %67 = arith.addf %64, %66 : vector<64x32xf32>
    %c0_53 = arith.constant 0 : index
    %c0_54 = arith.constant 0 : index
    %c0_55 = arith.constant 0 : index
    %68 = vector.load %arg3[%c0_53, %c0_54, %c0_55] : memref<8x8x1xf32, #tpu.memory_space<vmem>>, vector<8x8x1xf32>
    %69 = vector.shape_cast %60 : vector<64x32xf32> to vector<8x8x32xf32>
    %70 = vector.shape_cast %67 : vector<64x32xf32> to vector<8x8x32xf32>
    %71 = vector.shape_cast %53 : vector<8x32xf32> to vector<8x1x32xf32>
    %72 = vector.broadcast %71 : vector<8x1x32xf32> to vector<8x8x32xf32>
    %73 = arith.mulf %72, %69 : vector<8x8x32xf32>
    %74 = vector.shape_cast %73 : vector<8x8x32xf32> to vector<64x32xf32>
    %75 = arith.truncf %74 : vector<64x32xf32> to vector<64x32xbf16>
    %cst_56 = arith.constant dense<0.000000e+00> : vector<64x4xf32>
    %76 = tpu.matmul %75, %0, %cst_56 {dimension_numbers = #tpu.dot_dimension_numbers<[1], [0], [0], [1], [0, 0, 1, 1], [], []>} : vector<64x32xbf16>, vector<32x4xbf16>, vector<64x4xf32> -> vector<64x4xf32>
    %77 = vector.shape_cast %76 : vector<64x4xf32> to vector<8x8x4xf32>
    %cst_57 = arith.constant 0.353553385 : f32
    %78 = vector.broadcast %cst_57 : f32 to vector<8x8x4xf32>
    %79 = arith.mulf %77, %78 : vector<8x8x4xf32>
    %cst_58 = arith.constant 0.000000e+00 : f32
    %80 = vector.broadcast %cst_58 : f32 to vector<8x8x1xf32>
    %81 = arith.cmpf ogt, %68, %80 : vector<8x8x1xf32>
    %cst_59 = arith.constant -1.000000e+09 : f32
    %82 = vector.shape_cast %81 : vector<8x8x1xi1> to vector<8x8x1xi1>
    %83 = vector.broadcast %82 : vector<8x8x1xi1> to vector<8x8x4xi1>
    %84 = vector.broadcast %cst_59 : f32 to vector<8x8x4xf32>
    %85 = arith.select %83, %79, %84 : vector<8x8x4xi1>, vector<8x8x4xf32>
    %cst_60 = arith.constant dense<0xFF800000> : vector<8x4xf32>
    %86 = vector.multi_reduction <maximumf>, %85, %cst_60 [1] : vector<8x8x4xf32> to vector<8x4xf32>
    %87 = vector.shape_cast %86 : vector<8x4xf32> to vector<8x1x4xf32>
    %88 = vector.broadcast %87 : vector<8x1x4xf32> to vector<8x8x4xf32>
    %89 = arith.subf %85, %88 : vector<8x8x4xf32>
    %90 = math.exp %89 : vector<8x8x4xf32>
    %cst_61 = arith.constant dense<0.000000e+00> : vector<8x4xf32>
    %91 = vector.multi_reduction <add>, %90, %cst_61 [1] : vector<8x8x4xf32> to vector<8x4xf32>
    %92 = vector.shape_cast %91 : vector<8x4xf32> to vector<8x1x4xf32>
    %93 = tpu.reciprocal %92 {approx = true} : vector<8x1x4xf32> -> vector<8x1x4xf32>
    %94 = vector.broadcast %93 : vector<8x1x4xf32> to vector<8x8x4xf32>
    %95 = arith.mulf %90, %94 : vector<8x8x4xf32>
    %96 = vector.shape_cast %95 : vector<8x8x4xf32> to vector<64x4xf32>
    %97 = arith.truncf %96 : vector<64x4xf32> to vector<64x4xbf16>
    %cst_62 = arith.constant dense<0.000000e+00> : vector<64x32xf32>
    %98 = tpu.matmul %97, %1, %cst_62 {dimension_numbers = #tpu.dot_dimension_numbers<[1], [0], [0], [1], [0, 0, 1, 1], [], []>} : vector<64x4xbf16>, vector<4x32xbf16>, vector<64x32xf32> -> vector<64x32xf32>
    %99 = vector.shape_cast %98 : vector<64x32xf32> to vector<8x8x32xf32>
    %100 = arith.mulf %99, %70 : vector<8x8x32xf32>
    %cst_63 = arith.constant dense<0.000000e+00> : vector<8x32xf32>
    %101 = vector.multi_reduction <add>, %100, %cst_63 [1] : vector<8x8x32xf32> to vector<8x32xf32>
    %c0_64 = arith.constant 0 : index
    %c0_65 = arith.constant 0 : index
    %102 = vector.load %arg23[%c0_64, %c0_65] : memref<6x32xbf16, #tpu.memory_space<vmem>>, vector<6x32xbf16>
    %103 = arith.truncf %2 : vector<8x6xf32> to vector<8x6xbf16>
    %cst_66 = arith.constant dense<0.000000e+00> : vector<8x32xf32>
    %104 = tpu.matmul %103, %102, %cst_66 {dimension_numbers = #tpu.dot_dimension_numbers<[1], [0], [0], [1], [0, 0, 1, 1], [], []>} : vector<8x6xbf16>, vector<6x32xbf16>, vector<8x32xf32> -> vector<8x32xf32>
    %c0_67 = arith.constant 0 : index
    %c0_68 = arith.constant 0 : index
    %105 = vector.load %arg24[%c0_67, %c0_68] : memref<1x32xf32, #tpu.memory_space<vmem>>, vector<1x32xf32>
    %106 = vector.broadcast %105 : vector<1x32xf32> to vector<8x32xf32>
    %107 = arith.addf %104, %106 : vector<8x32xf32>
    %c0_69 = arith.constant 0 : index
    %c0_70 = arith.constant 0 : index
    %108 = vector.load %arg4[%c0_69, %c0_70] : memref<64x32xf32, #tpu.memory_space<vmem>>, vector<64x32xf32>
    %c0_71 = arith.constant 0 : index
    %c0_72 = arith.constant 0 : index
    %109 = vector.load %arg25[%c0_71, %c0_72] : memref<32x32xbf16, #tpu.memory_space<vmem>>, vector<32x32xbf16>
    %110 = arith.truncf %108 : vector<64x32xf32> to vector<64x32xbf16>
    %cst_73 = arith.constant dense<0.000000e+00> : vector<64x32xf32>
    %111 = tpu.matmul %110, %109, %cst_73 {dimension_numbers = #tpu.dot_dimension_numbers<[1], [0], [0], [1], [0, 0, 1, 1], [], []>} : vector<64x32xbf16>, vector<32x32xbf16>, vector<64x32xf32> -> vector<64x32xf32>
    %c0_74 = arith.constant 0 : index
    %c0_75 = arith.constant 0 : index
    %112 = vector.load %arg26[%c0_74, %c0_75] : memref<1x32xf32, #tpu.memory_space<vmem>>, vector<1x32xf32>
    %113 = vector.broadcast %112 : vector<1x32xf32> to vector<64x32xf32>
    %114 = arith.addf %111, %113 : vector<64x32xf32>
    %c0_76 = arith.constant 0 : index
    %c0_77 = arith.constant 0 : index
    %115 = vector.load %arg4[%c0_76, %c0_77] : memref<64x32xf32, #tpu.memory_space<vmem>>, vector<64x32xf32>
    %c0_78 = arith.constant 0 : index
    %c0_79 = arith.constant 0 : index
    %116 = vector.load %arg27[%c0_78, %c0_79] : memref<32x32xbf16, #tpu.memory_space<vmem>>, vector<32x32xbf16>
    %117 = arith.truncf %115 : vector<64x32xf32> to vector<64x32xbf16>
    %cst_80 = arith.constant dense<0.000000e+00> : vector<64x32xf32>
    %118 = tpu.matmul %117, %116, %cst_80 {dimension_numbers = #tpu.dot_dimension_numbers<[1], [0], [0], [1], [0, 0, 1, 1], [], []>} : vector<64x32xbf16>, vector<32x32xbf16>, vector<64x32xf32> -> vector<64x32xf32>
    %c0_81 = arith.constant 0 : index
    %c0_82 = arith.constant 0 : index
    %119 = vector.load %arg28[%c0_81, %c0_82] : memref<1x32xf32, #tpu.memory_space<vmem>>, vector<1x32xf32>
    %120 = vector.broadcast %119 : vector<1x32xf32> to vector<64x32xf32>
    %121 = arith.addf %118, %120 : vector<64x32xf32>
    %c0_83 = arith.constant 0 : index
    %c0_84 = arith.constant 0 : index
    %c0_85 = arith.constant 0 : index
    %122 = vector.load %arg5[%c0_83, %c0_84, %c0_85] : memref<8x8x1xf32, #tpu.memory_space<vmem>>, vector<8x8x1xf32>
    %123 = vector.shape_cast %114 : vector<64x32xf32> to vector<8x8x32xf32>
    %124 = vector.shape_cast %121 : vector<64x32xf32> to vector<8x8x32xf32>
    %125 = vector.shape_cast %107 : vector<8x32xf32> to vector<8x1x32xf32>
    %126 = vector.broadcast %125 : vector<8x1x32xf32> to vector<8x8x32xf32>
    %127 = arith.mulf %126, %123 : vector<8x8x32xf32>
    %128 = vector.shape_cast %127 : vector<8x8x32xf32> to vector<64x32xf32>
    %129 = arith.truncf %128 : vector<64x32xf32> to vector<64x32xbf16>
    %cst_86 = arith.constant dense<0.000000e+00> : vector<64x4xf32>
    %130 = tpu.matmul %129, %0, %cst_86 {dimension_numbers = #tpu.dot_dimension_numbers<[1], [0], [0], [1], [0, 0, 1, 1], [], []>} : vector<64x32xbf16>, vector<32x4xbf16>, vector<64x4xf32> -> vector<64x4xf32>
    %131 = vector.shape_cast %130 : vector<64x4xf32> to vector<8x8x4xf32>
    %cst_87 = arith.constant 0.353553385 : f32
    %132 = vector.broadcast %cst_87 : f32 to vector<8x8x4xf32>
    %133 = arith.mulf %131, %132 : vector<8x8x4xf32>
    %cst_88 = arith.constant 0.000000e+00 : f32
    %134 = vector.broadcast %cst_88 : f32 to vector<8x8x1xf32>
    %135 = arith.cmpf ogt, %122, %134 : vector<8x8x1xf32>
    %cst_89 = arith.constant -1.000000e+09 : f32
    %136 = vector.shape_cast %135 : vector<8x8x1xi1> to vector<8x8x1xi1>
    %137 = vector.broadcast %136 : vector<8x8x1xi1> to vector<8x8x4xi1>
    %138 = vector.broadcast %cst_89 : f32 to vector<8x8x4xf32>
    %139 = arith.select %137, %133, %138 : vector<8x8x4xi1>, vector<8x8x4xf32>
    %cst_90 = arith.constant dense<0xFF800000> : vector<8x4xf32>
    %140 = vector.multi_reduction <maximumf>, %139, %cst_90 [1] : vector<8x8x4xf32> to vector<8x4xf32>
    %141 = vector.shape_cast %140 : vector<8x4xf32> to vector<8x1x4xf32>
    %142 = vector.broadcast %141 : vector<8x1x4xf32> to vector<8x8x4xf32>
    %143 = arith.subf %139, %142 : vector<8x8x4xf32>
    %144 = math.exp %143 : vector<8x8x4xf32>
    %cst_91 = arith.constant dense<0.000000e+00> : vector<8x4xf32>
    %145 = vector.multi_reduction <add>, %144, %cst_91 [1] : vector<8x8x4xf32> to vector<8x4xf32>
    %146 = vector.shape_cast %145 : vector<8x4xf32> to vector<8x1x4xf32>
    %147 = tpu.reciprocal %146 {approx = true} : vector<8x1x4xf32> -> vector<8x1x4xf32>
    %148 = vector.broadcast %147 : vector<8x1x4xf32> to vector<8x8x4xf32>
    %149 = arith.mulf %144, %148 : vector<8x8x4xf32>
    %150 = vector.shape_cast %149 : vector<8x8x4xf32> to vector<64x4xf32>
    %151 = arith.truncf %150 : vector<64x4xf32> to vector<64x4xbf16>
    %cst_92 = arith.constant dense<0.000000e+00> : vector<64x32xf32>
    %152 = tpu.matmul %151, %1, %cst_92 {dimension_numbers = #tpu.dot_dimension_numbers<[1], [0], [0], [1], [0, 0, 1, 1], [], []>} : vector<64x4xbf16>, vector<4x32xbf16>, vector<64x32xf32> -> vector<64x32xf32>
    %153 = vector.shape_cast %152 : vector<64x32xf32> to vector<8x8x32xf32>
    %154 = arith.mulf %153, %124 : vector<8x8x32xf32>
    %cst_93 = arith.constant dense<0.000000e+00> : vector<8x32xf32>
    %155 = vector.multi_reduction <add>, %154, %cst_93 [1] : vector<8x8x32xf32> to vector<8x32xf32>
    %c0_94 = arith.constant 0 : index
    %c0_95 = arith.constant 0 : index
    %156 = vector.load %arg29[%c0_94, %c0_95] : memref<192x64xbf16, #tpu.memory_space<vmem>>, vector<192x64xbf16>
    %157 = arith.truncf %25 : vector<8x192xf32> to vector<8x192xbf16>
    %cst_96 = arith.constant dense<0.000000e+00> : vector<8x64xf32>
    %158 = tpu.matmul %157, %156, %cst_96 {dimension_numbers = #tpu.dot_dimension_numbers<[1], [0], [0], [1], [0, 0, 1, 1], [], []>} : vector<8x192xbf16>, vector<192x64xbf16>, vector<8x64xf32> -> vector<8x64xf32>
    %c0_97 = arith.constant 0 : index
    %c0_98 = arith.constant 0 : index
    %159 = vector.load %arg30[%c0_97, %c0_98] : memref<32x64xbf16, #tpu.memory_space<vmem>>, vector<32x64xbf16>
    %160 = arith.truncf %47 : vector<8x32xf32> to vector<8x32xbf16>
    %cst_99 = arith.constant dense<0.000000e+00> : vector<8x64xf32>
    %161 = tpu.matmul %160, %159, %cst_99 {dimension_numbers = #tpu.dot_dimension_numbers<[1], [0], [0], [1], [0, 0, 1, 1], [], []>} : vector<8x32xbf16>, vector<32x64xbf16>, vector<8x64xf32> -> vector<8x64xf32>
    %162 = arith.addf %158, %161 : vector<8x64xf32>
    %c0_100 = arith.constant 0 : index
    %c0_101 = arith.constant 0 : index
    %163 = vector.load %arg31[%c0_100, %c0_101] : memref<32x64xbf16, #tpu.memory_space<vmem>>, vector<32x64xbf16>
    %164 = arith.truncf %101 : vector<8x32xf32> to vector<8x32xbf16>
    %cst_102 = arith.constant dense<0.000000e+00> : vector<8x64xf32>
    %165 = tpu.matmul %164, %163, %cst_102 {dimension_numbers = #tpu.dot_dimension_numbers<[1], [0], [0], [1], [0, 0, 1, 1], [], []>} : vector<8x32xbf16>, vector<32x64xbf16>, vector<8x64xf32> -> vector<8x64xf32>
    %166 = arith.addf %162, %165 : vector<8x64xf32>
    %c0_103 = arith.constant 0 : index
    %c0_104 = arith.constant 0 : index
    %167 = vector.load %arg32[%c0_103, %c0_104] : memref<32x64xbf16, #tpu.memory_space<vmem>>, vector<32x64xbf16>
    %168 = arith.truncf %53 : vector<8x32xf32> to vector<8x32xbf16>
    %cst_105 = arith.constant dense<0.000000e+00> : vector<8x64xf32>
    %169 = tpu.matmul %168, %167, %cst_105 {dimension_numbers = #tpu.dot_dimension_numbers<[1], [0], [0], [1], [0, 0, 1, 1], [], []>} : vector<8x32xbf16>, vector<32x64xbf16>, vector<8x64xf32> -> vector<8x64xf32>
    %170 = arith.addf %166, %169 : vector<8x64xf32>
    %c0_106 = arith.constant 0 : index
    %c0_107 = arith.constant 0 : index
    %171 = vector.load %arg33[%c0_106, %c0_107] : memref<32x64xbf16, #tpu.memory_space<vmem>>, vector<32x64xbf16>
    %172 = arith.truncf %155 : vector<8x32xf32> to vector<8x32xbf16>
    %cst_108 = arith.constant dense<0.000000e+00> : vector<8x64xf32>
    %173 = tpu.matmul %172, %171, %cst_108 {dimension_numbers = #tpu.dot_dimension_numbers<[1], [0], [0], [1], [0, 0, 1, 1], [], []>} : vector<8x32xbf16>, vector<32x64xbf16>, vector<8x64xf32> -> vector<8x64xf32>
    %174 = arith.addf %170, %173 : vector<8x64xf32>
    %c0_109 = arith.constant 0 : index
    %c0_110 = arith.constant 0 : index
    %175 = vector.load %arg34[%c0_109, %c0_110] : memref<32x64xbf16, #tpu.memory_space<vmem>>, vector<32x64xbf16>
    %176 = arith.truncf %107 : vector<8x32xf32> to vector<8x32xbf16>
    %cst_111 = arith.constant dense<0.000000e+00> : vector<8x64xf32>
    %177 = tpu.matmul %176, %175, %cst_111 {dimension_numbers = #tpu.dot_dimension_numbers<[1], [0], [0], [1], [0, 0, 1, 1], [], []>} : vector<8x32xbf16>, vector<32x64xbf16>, vector<8x64xf32> -> vector<8x64xf32>
    %178 = arith.addf %174, %177 : vector<8x64xf32>
    %c0_112 = arith.constant 0 : index
    %c0_113 = arith.constant 0 : index
    %179 = vector.load %arg35[%c0_112, %c0_113] : memref<1x64xf32, #tpu.memory_space<vmem>>, vector<1x64xf32>
    %180 = vector.broadcast %179 : vector<1x64xf32> to vector<8x64xf32>
    %181 = arith.addf %178, %180 : vector<8x64xf32>
    %cst_114 = arith.constant 0.000000e+00 : f32
    %182 = vector.broadcast %cst_114 : f32 to vector<8x64xf32>
    %183 = arith.cmpf ogt, %181, %182 : vector<8x64xf32>
    %cst_115 = arith.constant 0.00999999977 : f32
    %184 = vector.broadcast %cst_115 : f32 to vector<8x64xf32>
    %185 = arith.mulf %184, %181 : vector<8x64xf32>
    %186 = arith.select %183, %181, %185 : vector<8x64xi1>, vector<8x64xf32>
    %c0_116 = arith.constant 0 : index
    %c0_117 = arith.constant 0 : index
    %187 = vector.load %arg36[%c0_116, %c0_117] : memref<64x192xbf16, #tpu.memory_space<vmem>>, vector<64x192xbf16>
    %188 = arith.truncf %186 : vector<8x64xf32> to vector<8x64xbf16>
    %cst_118 = arith.constant dense<0.000000e+00> : vector<8x192xf32>
    %189 = tpu.matmul %188, %187, %cst_118 {dimension_numbers = #tpu.dot_dimension_numbers<[1], [0], [0], [1], [0, 0, 1, 1], [], []>} : vector<8x64xbf16>, vector<64x192xbf16>, vector<8x192xf32> -> vector<8x192xf32>
    %c0_119 = arith.constant 0 : index
    %c0_120 = arith.constant 0 : index
    %190 = vector.load %arg37[%c0_119, %c0_120] : memref<1x192xf32, #tpu.memory_space<vmem>>, vector<1x192xf32>
    %191 = vector.broadcast %190 : vector<1x192xf32> to vector<8x192xf32>
    %192 = arith.addf %189, %191 : vector<8x192xf32>
    %cst_121 = arith.constant 0.000000e+00 : f32
    %193 = vector.broadcast %cst_121 : f32 to vector<8x192xf32>
    %194 = arith.cmpf ogt, %192, %193 : vector<8x192xf32>
    %cst_122 = arith.constant 0.00999999977 : f32
    %195 = vector.broadcast %cst_122 : f32 to vector<8x192xf32>
    %196 = arith.mulf %195, %192 : vector<8x192xf32>
    %197 = arith.select %194, %192, %196 : vector<8x192xi1>, vector<8x192xf32>
    %c0_123 = arith.constant 0 : index
    %c0_124 = arith.constant 0 : index
    %198 = vector.load %arg38[%c0_123, %c0_124] : memref<192x192xbf16, #tpu.memory_space<vmem>>, vector<192x192xbf16>
    %199 = arith.truncf %197 : vector<8x192xf32> to vector<8x192xbf16>
    %cst_125 = arith.constant dense<0.000000e+00> : vector<8x192xf32>
    %200 = tpu.matmul %199, %198, %cst_125 {dimension_numbers = #tpu.dot_dimension_numbers<[1], [0], [0], [1], [0, 0, 1, 1], [], []>} : vector<8x192xbf16>, vector<192x192xbf16>, vector<8x192xf32> -> vector<8x192xf32>
    %c0_126 = arith.constant 0 : index
    %c0_127 = arith.constant 0 : index
    %201 = vector.load %arg39[%c0_126, %c0_127] : memref<1x192xf32, #tpu.memory_space<vmem>>, vector<1x192xf32>
    %202 = vector.broadcast %201 : vector<1x192xf32> to vector<8x192xf32>
    %203 = arith.addf %200, %202 : vector<8x192xf32>
    %c0_128 = arith.constant 0 : index
    %c0_129 = arith.constant 0 : index
    %204 = vector.load %arg40[%c0_128, %c0_129] : memref<192x192xbf16, #tpu.memory_space<vmem>>, vector<192x192xbf16>
    %205 = arith.truncf %197 : vector<8x192xf32> to vector<8x192xbf16>
    %cst_130 = arith.constant dense<0.000000e+00> : vector<8x192xf32>
    %206 = tpu.matmul %205, %204, %cst_130 {dimension_numbers = #tpu.dot_dimension_numbers<[1], [0], [0], [1], [0, 0, 1, 1], [], []>} : vector<8x192xbf16>, vector<192x192xbf16>, vector<8x192xf32> -> vector<8x192xf32>
    %c0_131 = arith.constant 0 : index
    %c0_132 = arith.constant 0 : index
    %207 = vector.load %arg41[%c0_131, %c0_132] : memref<1x192xf32, #tpu.memory_space<vmem>>, vector<1x192xf32>
    %208 = vector.broadcast %207 : vector<1x192xf32> to vector<8x192xf32>
    %209 = arith.addf %206, %208 : vector<8x192xf32>
    %c0_133 = arith.constant 0 : index
    %c0_134 = arith.constant 0 : index
    %210 = vector.load %arg42[%c0_133, %c0_134] : memref<192x192xbf16, #tpu.memory_space<vmem>>, vector<192x192xbf16>
    %211 = arith.truncf %197 : vector<8x192xf32> to vector<8x192xbf16>
    %cst_135 = arith.constant dense<0.000000e+00> : vector<8x192xf32>
    %212 = tpu.matmul %211, %210, %cst_135 {dimension_numbers = #tpu.dot_dimension_numbers<[1], [0], [0], [1], [0, 0, 1, 1], [], []>} : vector<8x192xbf16>, vector<192x192xbf16>, vector<8x192xf32> -> vector<8x192xf32>
    %c0_136 = arith.constant 0 : index
    %c0_137 = arith.constant 0 : index
    %213 = vector.load %arg43[%c0_136, %c0_137] : memref<1x192xf32, #tpu.memory_space<vmem>>, vector<1x192xf32>
    %214 = vector.broadcast %213 : vector<1x192xf32> to vector<8x192xf32>
    %215 = arith.addf %212, %214 : vector<8x192xf32>
    %216 = arith.truncf %203 : vector<8x192xf32> to vector<8x192xbf16>
    %217 = arith.truncf %209 : vector<8x192xf32> to vector<8x192xbf16>
    %cst_138 = arith.constant dense<0.000000e+00> : vector<8x8xf32>
    %218 = tpu.matmul %216, %217, %cst_138 {dimension_numbers = #tpu.dot_dimension_numbers<[1], [1], [0], [0], [0, 0, 1, 0], [], []>} : vector<8x192xbf16>, vector<8x192xbf16>, vector<8x8xf32> -> vector<8x8xf32>
    %cst_139 = arith.constant 0.0721687824 : f32
    %219 = vector.broadcast %cst_139 : f32 to vector<8x8xf32>
    %220 = arith.mulf %218, %219 : vector<8x8xf32>
    %c0_140 = arith.constant 0 : index
    %c0_141 = arith.constant 0 : index
    %221 = vector.load %arg6[%c0_140, %c0_141] : memref<1x8xf32, #tpu.memory_space<vmem>>, vector<1x8xf32>
    %cst_142 = arith.constant 0.000000e+00 : f32
    %222 = vector.broadcast %cst_142 : f32 to vector<1x8xf32>
    %223 = arith.cmpf ogt, %221, %222 : vector<1x8xf32>
    %cst_143 = arith.constant -1.000000e+09 : f32
    %224 = vector.shape_cast %223 : vector<1x8xi1> to vector<1x8xi1>
    %225 = vector.broadcast %224 : vector<1x8xi1> to vector<8x8xi1>
    %226 = vector.broadcast %cst_143 : f32 to vector<8x8xf32>
    %227 = arith.select %225, %220, %226 : vector<8x8xi1>, vector<8x8xf32>
    %cst_144 = arith.constant dense<0xFF800000> : vector<8xf32>
    %228 = vector.multi_reduction <maximumf>, %227, %cst_144 [1] : vector<8x8xf32> to vector<8xf32>
    %229 = vector.shape_cast %228 : vector<8xf32> to vector<8x1xf32>
    %230 = vector.broadcast %229 : vector<8x1xf32> to vector<8x8xf32>
    %231 = arith.subf %227, %230 : vector<8x8xf32>
    %232 = math.exp %231 : vector<8x8xf32>
    %cst_145 = arith.constant dense<0.000000e+00> : vector<8xf32>
    %233 = vector.multi_reduction <add>, %232, %cst_145 [1] : vector<8x8xf32> to vector<8xf32>
    %234 = vector.shape_cast %233 : vector<8xf32> to vector<8x1xf32>
    %235 = tpu.reciprocal %234 {approx = true} : vector<8x1xf32> -> vector<8x1xf32>
    %236 = vector.broadcast %235 : vector<8x1xf32> to vector<8x8xf32>
    %237 = arith.mulf %232, %236 : vector<8x8xf32>
    %238 = arith.truncf %237 : vector<8x8xf32> to vector<8x8xbf16>
    %239 = arith.truncf %215 : vector<8x192xf32> to vector<8x192xbf16>
    %cst_146 = arith.constant dense<0.000000e+00> : vector<8x192xf32>
    %240 = tpu.matmul %238, %239, %cst_146 {dimension_numbers = #tpu.dot_dimension_numbers<[1], [0], [0], [1], [0, 0, 1, 1], [], []>} : vector<8x8xbf16>, vector<8x192xbf16>, vector<8x192xf32> -> vector<8x192xf32>
    %c0_147 = arith.constant 0 : index
    %c0_148 = arith.constant 0 : index
    %241 = vector.load %arg44[%c0_147, %c0_148] : memref<192x192xbf16, #tpu.memory_space<vmem>>, vector<192x192xbf16>
    %242 = arith.truncf %240 : vector<8x192xf32> to vector<8x192xbf16>
    %cst_149 = arith.constant dense<0.000000e+00> : vector<8x192xf32>
    %243 = tpu.matmul %242, %241, %cst_149 {dimension_numbers = #tpu.dot_dimension_numbers<[1], [0], [0], [1], [0, 0, 1, 1], [], []>} : vector<8x192xbf16>, vector<192x192xbf16>, vector<8x192xf32> -> vector<8x192xf32>
    %c0_150 = arith.constant 0 : index
    %c0_151 = arith.constant 0 : index
    %244 = vector.load %arg45[%c0_150, %c0_151] : memref<1x192xf32, #tpu.memory_space<vmem>>, vector<1x192xf32>
    %245 = vector.broadcast %244 : vector<1x192xf32> to vector<8x192xf32>
    %246 = arith.addf %243, %245 : vector<8x192xf32>
    %c0_152 = arith.constant 0 : index
    %c0_153 = arith.constant 0 : index
    %247 = vector.load %arg46[%c0_152, %c0_153] : memref<192x32xbf16, #tpu.memory_space<vmem>>, vector<192x32xbf16>
    %248 = arith.truncf %197 : vector<8x192xf32> to vector<8x192xbf16>
    %cst_154 = arith.constant dense<0.000000e+00> : vector<8x32xf32>
    %249 = tpu.matmul %248, %247, %cst_154 {dimension_numbers = #tpu.dot_dimension_numbers<[1], [0], [0], [1], [0, 0, 1, 1], [], []>} : vector<8x192xbf16>, vector<192x32xbf16>, vector<8x32xf32> -> vector<8x32xf32>
    %c0_155 = arith.constant 0 : index
    %c0_156 = arith.constant 0 : index
    %250 = vector.load %arg47[%c0_155, %c0_156] : memref<192x32xbf16, #tpu.memory_space<vmem>>, vector<192x32xbf16>
    %251 = arith.truncf %246 : vector<8x192xf32> to vector<8x192xbf16>
    %cst_157 = arith.constant dense<0.000000e+00> : vector<8x32xf32>
    %252 = tpu.matmul %251, %250, %cst_157 {dimension_numbers = #tpu.dot_dimension_numbers<[1], [0], [0], [1], [0, 0, 1, 1], [], []>} : vector<8x192xbf16>, vector<192x32xbf16>, vector<8x32xf32> -> vector<8x32xf32>
    %253 = arith.addf %249, %252 : vector<8x32xf32>
    %c0_158 = arith.constant 0 : index
    %c0_159 = arith.constant 0 : index
    %254 = vector.load %arg48[%c0_158, %c0_159] : memref<1x32xf32, #tpu.memory_space<vmem>>, vector<1x32xf32>
    %255 = vector.broadcast %254 : vector<1x32xf32> to vector<8x32xf32>
    %256 = arith.addf %253, %255 : vector<8x32xf32>
    %cst_160 = arith.constant 0.000000e+00 : f32
    %257 = vector.broadcast %cst_160 : f32 to vector<8x32xf32>
    %258 = arith.cmpf ogt, %256, %257 : vector<8x32xf32>
    %cst_161 = arith.constant 0.00999999977 : f32
    %259 = vector.broadcast %cst_161 : f32 to vector<8x32xf32>
    %260 = arith.mulf %259, %256 : vector<8x32xf32>
    %261 = arith.select %258, %256, %260 : vector<8x32xi1>, vector<8x32xf32>
    %c0_162 = arith.constant 0 : index
    %c0_163 = arith.constant 0 : index
    %262 = vector.load %arg49[%c0_162, %c0_163] : memref<32x1xbf16, #tpu.memory_space<vmem>>, vector<32x1xbf16>
    %263 = arith.truncf %261 : vector<8x32xf32> to vector<8x32xbf16>
    %cst_164 = arith.constant dense<0.000000e+00> : vector<8x1xf32>
    %264 = tpu.matmul %263, %262, %cst_164 {dimension_numbers = #tpu.dot_dimension_numbers<[1], [0], [0], [1], [0, 0, 1, 1], [], []>} : vector<8x32xbf16>, vector<32x1xbf16>, vector<8x1xf32> -> vector<8x1xf32>
    %c0_165 = arith.constant 0 : index
    %c0_166 = arith.constant 0 : index
    %265 = vector.load %arg50[%c0_165, %c0_166] : memref<1x1xf32, #tpu.memory_space<vmem>>, vector<1x1xf32>
    %266 = vector.broadcast %265 : vector<1x1xf32> to vector<8x1xf32>
    %267 = arith.addf %264, %266 : vector<8x1xf32>
    %c0_167 = arith.constant 0 : index
    %c0_168 = arith.constant 0 : index
    %268 = vector.load %arg51[%c0_167, %c0_168] : memref<8x1xf32, #tpu.memory_space<vmem>>, vector<8x1xf32>
    tpu.vector_store %arg51[%c0_167, %c0_168], %267 {strides = array<i32>} : memref<8x1xf32, #tpu.memory_space<vmem>>, vector<8x1xf32>,
    return
  }
}

</mosaic_0001>

<bundles_post_ra>
// kernel: robot_critic_forward.1
= control target key start
LH: loop header
LB: loop body
LE: loop exit
PB: predicated region body
PF: predicated region fallthrough
CT: control target
= control target key end

     0   :  { %s6092_s6 = smov 1   ;;  %s6093_s10 = smov 2   ;;  %s7293_s0 = inlined_call_operand.smem [shape: u32[52], index: -1, kind: input, shape index: {}] }
   0x1   :  { %s6165_s5 = sld [smem:[%s7293_s0]]   ;;  %s6094_s14 = smov 3  }
   0x2   :  { %s6170_s9 = sld [smem:[%s7293_s0 + %s6092_s6]]   ;;  %s6095_s18 = smov 4  }
   0x3   :  { %s6175_s13 = sld [smem:[%s7293_s0 + %s6093_s10]]   ;;  %s6096_s22 = smov 5  }
   0x4   :  { %s6180_s17 = sld [smem:[%s7293_s0 + %s6094_s14]]   ;;  %s6097_s26 = smov 6  }
   0x5   :  { %s6185_s21 = sld [smem:[%s7293_s0 + %s6095_s18]]   ;;  %s6098_s30 = smov 7  }
   0x6   :  { %s6190_s25 = sld [smem:[%s7293_s0 + %s6096_s22]]   ;;  %s6099_s4 = smov 8  }
   0x7   :  { %7316 = sst [smem:[#allocation25_spill]] %s6165_s5  ;;  %s6100_s10 = smov 9  }
   0x8   :  { %s6195_s29 = sld [smem:[%s7293_s0 + %s6097_s26]]   ;;  %s6101_s15 = smov 10  }
   0x9   :  { %7317 = sst [smem:[#allocation26_spill]] %s6175_s13  ;;  %s6102_s20 = smov 11  }
   0xa   :  { %7318 = sst [smem:[#allocation27_spill]] %s6180_s17  ;;  %s6103_s26 = smov 12  }
   0xb   :  { %7319 = sst [smem:[#allocation28_spill]] %s6185_s21  ;;  %s6104_s1 = smov 13  }
   0xc   :  { %7320 = sst [smem:[#allocation29_spill]] %s6190_s25  ;;  %s6105_s7 = smov 14  }
   0xd   :  { %s6200_s3 = sld [smem:[%s7293_s0 + %s6098_s30]]   ;;  %s6107_s22 = smov 16  }
   0xe   :  { %7321 = sst [smem:[#allocation30_spill]] %s6195_s29  ;;  %s6108_s28 = smov 17  }
   0xf   :  { %s6205_s8 = sld [smem:[%s7293_s0 + %s6099_s4]]   ;;  %s6142_s16 = smov 51  }
  0x10   :  { %s6210_s14 = sld [smem:[%s7293_s0 + %s6100_s10]]  }
  0x11   :  { %s6215_s19 = sld [smem:[%s7293_s0 + %s6101_s15]]   ;;  %s6106_s15 = smov 15  }
  0x12   :  { %s6220_s24 = sld [smem:[%s7293_s0 + %s6102_s20]]  }
  0x13   :  { %7322 = sst [smem:[#allocation31_spill]] %s6200_s3 }
  0x14   :  { %s6225_s30 = sld [smem:[%s7293_s0 + %s6103_s26]]  }
  0x15   :  { %7323 = sst [smem:[#allocation32_spill]] %s6205_s8 }
  0x16   :  { %s6230_s6 = sld [smem:[%s7293_s0 + %s6104_s1]]  }
  0x17   :  { %s6235_s12 = sld [smem:[%s7293_s0 + %s6105_s7]]   ;;  %s6109_s7 = smov 18  }
  0x18   :  { %s6240_s20 = sld [smem:[%s7293_s0 + %s6106_s15]]   ;;  %s6110_s15 = smov 19  }
  0x19   :  { %s6245_s27 = sld [smem:[%s7293_s0 + %s6107_s22]]   ;;  %s6111_s22 = smov 20  }
  0x1a   :  { %7324 = sst [smem:[#allocation33_spill]] %s6225_s30 }
  0x1b   :  { %s6250_s4 = sld [smem:[%s7293_s0 + %s6108_s28]]   ;;  %s6112_s28 = smov 21  }
  0x1c   :  { %s6255_s29 = sld [smem:[%s7293_s0 + %s6109_s7]]   ;;  %s6113_s7 = smov 22  }
  0x1d   :  { %s6260_s30 = sld [smem:[%s7293_s0 + %s6110_s15]]   ;;  %s6114_s15 = smov 23  }
  0x1e   :  { %7325 = sst [smem:[#allocation34_spill]] %s6240_s20 }
  0x1f   :  { %s6265_s21 = sld [smem:[%s7293_s0 + %s6111_s22]]   ;;  %s6115_s22 = smov 24  }
  0x20   :  { %s6270_s8 = sld [smem:[%s7293_s0 + %s6112_s28]]   ;;  %s6116_s28 = smov 25  }
  0x21   :  { %7326 = sst [smem:[#allocation35_spill]] %s6250_s4 }
  0x22   :  { %s6275_s25 = sld [smem:[%s7293_s0 + %s6113_s7]]   ;;  %s6117_s7 = smov 26  }
  0x23   :  { %7327 = sst [smem:[#allocation36_spill]] %s6260_s30 }
  0x24   :  { %s6280_s17 = sld [smem:[%s7293_s0 + %s6114_s15]]   ;;  %s6118_s15 = smov 27  }
  0x25   :  { %s6285_s3 = sld [smem:[%s7293_s0 + %s6115_s22]]   ;;  %s6119_s22 = smov 28  }
  0x26   :  { %7328 = sst [smem:[#allocation37_spill]] %s6270_s8 }
  0x27   :  { %s6290_s8 = sld [smem:[%s7293_s0 + %s6116_s28]]   ;;  %s6120_s28 = smov 29  }
  0x28   :  { %s6295_s13 = sld [smem:[%s7293_s0 + %s6117_s7]]   ;;  %s6121_s7 = smov 30  }
  0x29   :  { %s6305_s30 = sld [smem:[%s7293_s0 + %s6119_s22]]   ;;  %s6123_s22 = smov 32  }
  0x2a   :  { %7329 = sst [smem:[#allocation38_spill]] %s6280_s17 }
  0x2b   :  { %s6300_s17 = sld [smem:[%s7293_s0 + %s6118_s15]]   ;;  %s6122_s15 = smov 31  }
  0x2c   :  { %s6315_s4 = sld [smem:[%s7293_s0 + %s6121_s7]]   ;;  %s6125_s7 = smov 34  }
  0x2d   :  { %7330 = sst [smem:[#allocation39_spill]] %s6290_s8 }
  0x2e   :  { %s6310_s8 = sld [smem:[%s7293_s0 + %s6120_s28]]   ;;  %s6124_s28 = smov 33  }
  0x2f   :  { %s6325_s20 = sld [smem:[%s7293_s0 + %s6123_s22]]   ;;  %s6127_s22 = smov 36  }
  0x31   :  { %7331 = sst [smem:[#allocation40_spill]] %s6300_s17 }
  0x32   :  { %7333 = sst [smem:[#allocation42_spill]] %s6315_s4 }
  0x33   :  { %s6320_s17 = sld [smem:[%s7293_s0 + %s6122_s15]]   ;;  %s6126_s15 = smov 35  }
  0x34   :  { %7332 = sst [smem:[#allocation41_spill]] %s6310_s8 }
  0x35   :  { %7335 = sst [smem:[#allocation44_spill]] %s6325_s20 }
  0x36   :  { %s6330_s8 = sld [smem:[%s7293_s0 + %s6124_s28]]   ;;  %s6128_s28 = smov 37  }
  0x37   :  { %s6335_s4 = sld [smem:[%s7293_s0 + %s6125_s7]]   ;;  %s6129_s7 = smov 38  }
  0x38   :  { %s6345_s20 = sld [smem:[%s7293_s0 + %s6127_s22]]   ;;  %s6131_s22 = smov 40  }
  0x39   :  { %7334 = sst [smem:[#allocation43_spill]] %s6320_s17 }
  0x3a   :  { %s6340_s17 = sld [smem:[%s7293_s0 + %s6126_s15]]   ;;  %s6130_s15 = smov 39  }
  0x3b   :  { %s6360_s5 = sld [smem:[%s7293_s0 + %s6130_s15]]   ;;  %s6134_s15 = smov 43  }
  0x3c   :  { %7336 = sst [smem:[#allocation45_spill]] %s6330_s8 }
  0x3d   :  { %7337 = sst [smem:[#allocation46_spill]] %s6335_s4 }
  0x3e   :  { %7338 = sst [smem:[#allocation47_spill]] %s6345_s20 }
  0x3f   :  { %s6350_s8 = sld [smem:[%s7293_s0 + %s6128_s28]]   ;;  %s6132_s28 = smov 41  }
  0x40   :  { %s6355_s4 = sld [smem:[%s7293_s0 + %s6129_s7]]   ;;  %s6133_s7 = smov 42  }
  0x41   :  { %7341 = sst [smem:[#allocation50_spill]] %s6360_s5 }
  0x42   :  { %s6365_s20 = sld [smem:[%s7293_s0 + %s6131_s22]]   ;;  %s6135_s22 = smov 44  }
  0x43   :  { %s6380_s5 = sld [smem:[%s7293_s0 + %s6134_s15]]   ;;  %s6138_s15 = smov 47  }
  0x45   :  { %7339 = sst [smem:[#allocation48_spill]] %s6350_s8 }
  0x46   :  { %7340 = sst [smem:[#allocation49_spill]] %s6355_s4 }
  0x47   :  { %s6370_s8 = sld [smem:[%s7293_s0 + %s6132_s28]]   ;;  %s6136_s28 = smov 45  }
  0x48   :  { %7342 = sst [smem:[#allocation51_spill]] %s6365_s20 }
  0x49   :  { %s6375_s4 = sld [smem:[%s7293_s0 + %s6133_s7]]   ;;  %s6137_s7 = smov 46  }
  0x4a   :  { %7345 = sst [smem:[#allocation54_spill]] %s6380_s5 }
  0x4b   :  { %s6385_s20 = sld [smem:[%s7293_s0 + %s6135_s22]]   ;;  %s6139_s22 = smov 48  }
  0x4c   :  { %s6400_s5 = sld [smem:[%s7293_s0 + %s6138_s15]]  }
  0x4d   :  { %7343 = sst [smem:[#allocation52_spill]] %s6370_s8 }
  0x4e   :  { %s6390_s8 = sld [smem:[%s7293_s0 + %s6136_s28]]   ;;  %s6140_s28 = smov 49  }
  0x4f   :  { %7344 = sst [smem:[#allocation53_spill]] %s6375_s4 }
  0x50   :  { %s6395_s4 = sld [smem:[%s7293_s0 + %s6137_s7]]   ;;  %s6141_s7 = smov 50  }
  0x51   :  { %7346 = sst [smem:[#allocation55_spill]] %s6385_s20 }
  0x52   :  { %7349 = sst [smem:[#allocation58_spill]] %s6400_s5 }
  0x53   :  { %s6405_s20 = sld [smem:[%s7293_s0 + %s6139_s22]]  }
  0x54   :  { %7347 = sst [smem:[#allocation56_spill]] %s6390_s8 }
  0x55   :  { %s6410_s8 = sld [smem:[%s7293_s0 + %s6140_s28]]  }
  0x56   :  { %7348 = sst [smem:[#allocation57_spill]] %s6395_s4 }
  0x57   :  { %s4796_s4 = sld [smem:[%s7293_s0 + %s6141_s7]]  }
  0x58   :  { %s6418_s5 = sld [smem:[%s7293_s0 + %s6142_s16]]  }
  0x5d   :  { %v108_v0 = vstv %s4796_s4 }
  0x5e   :  { %109 = vst [vmem:[#allocation2] sm:$0x1] %v108_v0 }
  0x5f   :  { %110 = vsyncpa [#allocation4], 0 }
  0x60   :  { %111 = vsyncpa [#allocation6], 0 }
  0x61   :  { %112 = vsyncpa [#allocation9], 0 }
  0x62   :  { %113 = vsyncpa [#allocation12], 0 }
  0x63   :  { %114 = vsyncpa [#allocation15], 0 }
  0x64   :  { %115 = vsyncpa [#allocation18], 0  ;;  %s6143_s22 = smov [#allocation5]   ;;  %s6144_s26 = smov [#allocation8]  }
  0x65   :  { %s162_s23 = sshll.u32 %s6143_s22, 4  ;;  %s186_s28 = sshll.u32 %s6144_s26, 4  ;;  %s163_s23 = int_to_ptr.vmem [resolvable:$true] %s162_s23  ;;  %s187_s28 = int_to_ptr.vmem [resolvable:$true] %s186_s28 }
  0x66   :  { %s5860_s1 = scalar_lea.hbm %s6245_s27, 16 }
  0x67   :  { %p5861_p0 = scmp.ne.s32.totalorder %s6245_s27, %s5860_s1  ;;  %p5864_p1 = scmp.lt.u32.totalorder %s5860_s1, %s6245_s27 }
  0x69   :  { %p5866_p2 = pnand %p5864_p1, %p5861_p0 }
  0x6b   :  { %5869 = shalt.err (!%p5866_p2)
}
  0x6c   :  { %s5870_s0 = scalar_lea.vmem %s163_s23, 16  ;;  %s5874_s4 = scalar_lea.vmem %s163_s23, 32 }
  0x6d   :  { %p5871_p3 = scmp.ne.s32.totalorder %s163_s23, %s5870_s0  ;;  %p5875_p4 = scmp.lt.s32.totalorder %s163_s23, %s163_s23 }
  0x6e   :  { %p5876_p5 = scmp.lt.s32.totalorder %s5874_s4, %s5870_s0 }
  0x70   :  { %p5877_p6 = por %p5876_p5, %p5875_p4 }
  0x72   :  { %p5878_p7 = pnand %p5877_p6, %p5871_p3 }
  0x74   :  { %5881 = shalt.err (!%p5878_p7)
}
  0x75   :  { %165 = dma.hbm_to_vmem [thread:$0]  %s6245_s27, 16, %s163_s23, [#allocation6]  }
  0x76   :  { %s5882_s2 = scalar_lea.hbm %s6265_s21, 16 }
  0x77   :  { %p5883_p8 = scmp.ne.s32.totalorder %s6265_s21, %s5882_s2  ;;  %p5886_p9 = scmp.lt.u32.totalorder %s5882_s2, %s6265_s21 }
  0x79   :  { %p5888_p10 = pnand %p5886_p9, %p5883_p8 }
  0x7b   :  { %5891 = shalt.err (!%p5888_p10)
}
  0x7c   :  { %s5892_s7 = scalar_lea.vmem %s187_s28, 16  ;;  %s5896_s10 = scalar_lea.vmem %s187_s28, 32 }
  0x7d   :  { %p5893_p11 = scmp.ne.s32.totalorder %s187_s28, %s5892_s7  ;;  %p5897_p12 = scmp.lt.s32.totalorder %s187_s28, %s187_s28 }
  0x7e   :  { %p5898_p13 = scmp.lt.s32.totalorder %s5896_s10, %s5892_s7 }
  0x80   :  { %p5899_p0 = por %p5898_p13, %p5897_p12 }
  0x82   :  { %p5900_p1 = pnand %p5899_p0, %p5893_p11 }
  0x84   :  { %5903 = shalt.err (!%p5900_p1)
}
  0x85   :  { %189 = dma.hbm_to_vmem [thread:$0]  %s6265_s21, 16, %s187_s28, [#allocation9]  }
  0x86   :  { %s6145_s11 = smov [#allocation11]   ;;  %s6146_s16 = smov [#allocation14]  }
  0x87   :  { %s210_s27 = sshll.u32 %s6145_s11, 4  ;;  %s234_s15 = sshll.u32 %s6146_s16, 4  ;;  %s211_s27 = int_to_ptr.vmem [resolvable:$true] %s210_s27  ;;  %s235_s15 = int_to_ptr.vmem [resolvable:$true] %s234_s15 }
  0x88   :  { %s5904_s18 = scalar_lea.hbm %s6285_s3, 16 }
  0x89   :  { %p5905_p2 = scmp.ne.s32.totalorder %s6285_s3, %s5904_s18  ;;  %p5908_p3 = scmp.lt.u32.totalorder %s5904_s18, %s6285_s3 }
  0x8b   :  { %p5910_p4 = pnand %p5908_p3, %p5905_p2 }
  0x8d   :  { %5913 = shalt.err (!%p5910_p4)
}
  0x8e   :  { %s5914_s22 = scalar_lea.vmem %s211_s27, 16  ;;  %s5918_s23 = scalar_lea.vmem %s211_s27, 32 }
  0x8f   :  { %p5915_p5 = scmp.ne.s32.totalorder %s211_s27, %s5914_s22  ;;  %p5919_p6 = scmp.lt.s32.totalorder %s211_s27, %s211_s27 }
  0x90   :  { %p5920_p7 = scmp.lt.s32.totalorder %s5918_s23, %s5914_s22 }
  0x92   :  { %p5921_p8 = por %p5920_p7, %p5919_p6 }
  0x94   :  { %p5922_p9 = pnand %p5921_p8, %p5915_p5 }
  0x96   :  { %5925 = shalt.err (!%p5922_p9)
}
  0x97   :  { %213 = dma.hbm_to_vmem [thread:$0]  %s6285_s3, 16, %s211_s27, [#allocation12]  }
  0x98   :  { %s5926_s21 = scalar_lea.hbm %s6305_s30, 16 }
  0x99   :  { %p5927_p10 = scmp.ne.s32.totalorder %s6305_s30, %s5926_s21  ;;  %p5930_p11 = scmp.lt.u32.totalorder %s5926_s21, %s6305_s30 }
  0x9b   :  { %p5932_p12 = pnand %p5930_p11, %p5927_p10 }
  0x9d   :  { %5935 = shalt.err (!%p5932_p12)
}
  0x9e   :  { %s5936_s26 = scalar_lea.vmem %s235_s15, 16  ;;  %s5940_s28 = scalar_lea.vmem %s235_s15, 32 }
  0x9f   :  { %p5937_p13 = scmp.ne.s32.totalorder %s235_s15, %s5936_s26  ;;  %p5941_p0 = scmp.lt.s32.totalorder %s235_s15, %s235_s15 }
  0xa0   :  { %p5942_p1 = scmp.lt.s32.totalorder %s5940_s28, %s5936_s26 }
  0xa2   :  { %p5943_p2 = por %p5942_p1, %p5941_p0 }
  0xa4   :  { %p5944_p3 = pnand %p5943_p2, %p5937_p13 }
  0xa6   :  { %5947 = shalt.err (!%p5944_p3)
}
  0xa7   :  { %237 = dma.hbm_to_vmem [thread:$0]  %s6305_s30, 16, %s235_s15, [#allocation15]  }
  0xa8   :  { %s6147_s1 = smov [#allocation3]   ;;  %s6148_s0 = smov [#allocation7]  }
  0xa9   :  { %s150_s3 = sshll.u32 %s6147_s1, 4  ;;  %s174_s4 = sshll.u32 %s6148_s0, 4  ;;  %s151_s3 = int_to_ptr.vmem [resolvable:$true] %s150_s3  ;;  %s175_s4 = int_to_ptr.vmem [resolvable:$true] %s174_s4 }
  0xaa   :  { %s5948_s2 = scalar_lea.hbm %s6235_s12, 16 }
  0xab   :  { %p5949_p4 = scmp.ne.s32.totalorder %s6235_s12, %s5948_s2  ;;  %p5952_p5 = scmp.lt.u32.totalorder %s5948_s2, %s6235_s12 }
  0xad   :  { %p5954_p6 = pnand %p5952_p5, %p5949_p4 }
  0xaf   :  { %5957 = shalt.err (!%p5954_p6)
}
  0xb0   :  { %s5958_s7 = scalar_lea.vmem %s151_s3, 16  ;;  %s5962_s10 = scalar_lea.vmem %s151_s3, 32 }
  0xb1   :  { %p5959_p7 = scmp.ne.s32.totalorder %s151_s3, %s5958_s7  ;;  %p5963_p8 = scmp.lt.s32.totalorder %s151_s3, %s151_s3 }
  0xb2   :  { %p5964_p9 = scmp.lt.s32.totalorder %s5962_s10, %s5958_s7 }
  0xb4   :  { %p5965_p10 = por %p5964_p9, %p5963_p8 }
  0xb6   :  { %p5966_p11 = pnand %p5965_p10, %p5959_p7 }
  0xb8   :  { %5969 = shalt.err (!%p5966_p11)
}
  0xb9   :  { %153 = dma.hbm_to_vmem [thread:$0]  %s6235_s12, 16, %s151_s3, [#allocation4]  }
  0xba   :  { %s5970_s30 = scalar_lea.hbm %s6255_s29, 16 }
  0xbb   :  { %p5971_p12 = scmp.ne.s32.totalorder %s6255_s29, %s5970_s30  ;;  %p5974_p13 = scmp.lt.u32.totalorder %s5970_s30, %s6255_s29 }
  0xbd   :  { %p5976_p0 = pnand %p5974_p13, %p5971_p12 }
  0xbf   :  { %5979 = shalt.err (!%p5976_p0)
}
  0xc0   :  { %s5980_s11 = scalar_lea.vmem %s175_s4, 16  ;;  %s5984_s27 = scalar_lea.vmem %s175_s4, 32 }
  0xc1   :  { %p5981_p1 = scmp.ne.s32.totalorder %s175_s4, %s5980_s11  ;;  %p5985_p2 = scmp.lt.s32.totalorder %s175_s4, %s175_s4 }
  0xc2   :  { %p5986_p3 = scmp.lt.s32.totalorder %s5984_s27, %s5980_s11 }
  0xc4   :  { %p5987_p4 = por %p5986_p3, %p5985_p2 }
  0xc6   :  { %p5988_p5 = pnand %p5987_p4, %p5981_p1 }
  0xc8   :  { %5991 = shalt.err (!%p5988_p5)
}
  0xc9   :  { %177 = dma.hbm_to_vmem [thread:$0]  %s6255_s29, 16, %s175_s4, [#allocation6]  }
  0xca   :  { %s6149_s16 = smov [#allocation10]   ;;  %s6150_s15 = smov [#allocation13]  }
  0xcb   :  { %s198_s12 = sshll.u32 %s6149_s16, 4  ;;  %s222_s18 = sshll.u32 %s6150_s15, 4  ;;  %s199_s12 = int_to_ptr.vmem [resolvable:$true] %s198_s12  ;;  %s223_s18 = int_to_ptr.vmem [resolvable:$true] %s222_s18 }
  0xcc   :  { %s5992_s22 = scalar_lea.hbm %s6275_s25, 16 }
  0xcd   :  { %p5993_p6 = scmp.ne.s32.totalorder %s6275_s25, %s5992_s22  ;;  %p5996_p7 = scmp.lt.u32.totalorder %s5992_s22, %s6275_s25 }
  0xcf   :  { %p5998_p8 = pnand %p5996_p7, %p5993_p6 }
  0xd1   :  { %6001 = shalt.err (!%p5998_p8)
}
  0xd2   :  { %s6002_s23 = scalar_lea.vmem %s199_s12, 16  ;;  %s6006_s21 = scalar_lea.vmem %s199_s12, 32 }
  0xd3   :  { %p6003_p9 = scmp.ne.s32.totalorder %s199_s12, %s6002_s23  ;;  %p6007_p10 = scmp.lt.s32.totalorder %s199_s12, %s199_s12 }
  0xd4   :  { %p6008_p11 = scmp.lt.s32.totalorder %s6006_s21, %s6002_s23 }
  0xd6   :  { %p6009_p12 = por %p6008_p11, %p6007_p10 }
  0xd8   :  { %p6010_p13 = pnand %p6009_p12, %p6003_p9 }
  0xda   :  { %6013 = shalt.err (!%p6010_p13)
}
  0xdb   :  { %201 = dma.hbm_to_vmem [thread:$0]  %s6275_s25, 16, %s199_s12, [#allocation9]  }
  0xdc   :  { %s6014_s29 = scalar_lea.hbm %s6295_s13, 16 }
  0xdd   :  { %p6015_p0 = scmp.ne.s32.totalorder %s6295_s13, %s6014_s29  ;;  %p6018_p1 = scmp.lt.u32.totalorder %s6014_s29, %s6295_s13 }
  0xdf   :  { %p6020_p2 = pnand %p6018_p1, %p6015_p0 }
  0xe1   :  { %6023 = shalt.err (!%p6020_p2)
}
  0xe2   :  { %s6024_s26 = scalar_lea.vmem %s223_s18, 16  ;;  %s6028_s28 = scalar_lea.vmem %s223_s18, 32 }
  0xe3   :  { %p6025_p3 = scmp.ne.s32.totalorder %s223_s18, %s6024_s26  ;;  %p6029_p4 = scmp.lt.s32.totalorder %s223_s18, %s223_s18 }
  0xe4   :  { %p6030_p5 = scmp.lt.s32.totalorder %s6028_s28, %s6024_s26 }
  0xe6   :  { %p6031_p6 = por %p6030_p5, %p6029_p4 }
  0xe8   :  { %p6032_p7 = pnand %p6031_p6, %p6025_p3 }
  0xea   :  { %6035 = shalt.err (!%p6032_p7)
}
  0xeb   :  { %225 = dma.hbm_to_vmem [thread:$0]  %s6295_s13, 16, %s223_s18, [#allocation12]  }
  0xec   :  { %s6151_s1 = smov [#allocation16]   ;;  %s6152_s3 = smov [#allocation17]  }
  0xed   :  { %s256_s25 = sshll.u32 %s6151_s1, 4  ;;  %s290_s0 = sshll.u32 %s6152_s3, 4  ;;  %s257_s25 = int_to_ptr.vmem [resolvable:$true] %s256_s25  ;;  %s291_s0 = int_to_ptr.vmem [resolvable:$true] %s290_s0 }
  0xee   :  { %s6036_s4 = scalar_lea.hbm %s6340_s17, 16 }
  0xef   :  { %p6037_p8 = scmp.ne.s32.totalorder %s6340_s17, %s6036_s4  ;;  %p6040_p9 = scmp.lt.u32.totalorder %s6036_s4, %s6340_s17 }
  0xf1   :  { %p6042_p10 = pnand %p6040_p9, %p6037_p8 }
  0xf3   :  { %6045 = shalt.err (!%p6042_p10)
}
  0xf4   :  { %s6046_s2 = scalar_lea.vmem %s257_s25, 16  ;;  %s6050_s7 = scalar_lea.vmem %s257_s25, 32 }
  0xf5   :  { %p6047_p11 = scmp.ne.s32.totalorder %s257_s25, %s6046_s2  ;;  %p6051_p12 = scmp.lt.s32.totalorder %s257_s25, %s257_s25 }
  0xf6   :  { %p6052_p13 = scmp.lt.s32.totalorder %s6050_s7, %s6046_s2 }
  0xf8   :  { %p6053_p0 = por %p6052_p13, %p6051_p12 }
  0xfa   :  { %p6054_p1 = pnand %p6053_p0, %p6047_p11 }
  0xfc   :  { %6057 = shalt.err (!%p6054_p1)
}
  0xfd   :  { %259 = dma.hbm_to_vmem [thread:$0]  %s6340_s17, 16, %s257_s25, [#allocation15]  }
  0xfe   :  { %s6058_s13 = scalar_lea.hbm %s6405_s20, 16 }
  0xff   :  { %p6059_p2 = scmp.ne.s32.totalorder %s6405_s20, %s6058_s13  ;;  %p6062_p3 = scmp.lt.u32.totalorder %s6058_s13, %s6405_s20 }
 0x101   :  { %p6064_p4 = pnand %p6062_p3, %p6059_p2 }
 0x103   :  { %6067 = shalt.err (!%p6064_p4)
}
 0x104   :  { %s6068_s10 = scalar_lea.vmem %s291_s0, 16  ;;  %s6072_s30 = scalar_lea.vmem %s291_s0, 32 }
 0x105   :  { %p6069_p5 = scmp.ne.s32.totalorder %s291_s0, %s6068_s10  ;;  %p6073_p6 = scmp.lt.s32.totalorder %s291_s0, %s291_s0 }
 0x106   :  { %p6074_p7 = scmp.lt.s32.totalorder %s6072_s30, %s6068_s10 }
 0x108   :  { %p6075_p8 = por %p6074_p7, %p6073_p6 }
 0x10a   :  { %p6076_p9 = pnand %p6075_p8, %p6069_p5 }
 0x10c   :  { %6079 = shalt.err (!%p6076_p9)
}
 0x10d   :  { %293 = dma.hbm_to_vmem [thread:$0]  %s6405_s20, 16, %s291_s0, [#allocation18]  }
 0x10e   :  { %6080 = dma.done.wait [#allocation4], 16  }
 0x10f   :  { %6081 = vsyncadd [#allocation4], 4294967280 }
 0x110   :  { %6082 = dma.done.wait [#allocation6], 32  }
 0x111   :  { %6083 = vsyncadd [#allocation6], 4294967264 }
 0x112   :  { %6084 = dma.done.wait [#allocation9], 32  }
 0x113   :  { %6085 = vsyncadd [#allocation9], 4294967264 }
 0x114   :  { %6086 = dma.done.wait [#allocation12], 32  }
 0x115   :  { %6087 = vsyncadd [#allocation12], 4294967264 }
 0x116   :  { %6088 = dma.done.wait [#allocation15], 32  }
 0x117   :  { %6089 = vsyncadd [#allocation15], 4294967264 }
 0x118   :  { %6090 = dma.done.wait [#allocation18], 16  }
 0x119   :  { %6091 = vsyncadd [#allocation18], 4294967280  ;;  %v5433_v1 = vld [vmem:[%s6210_s14 + $0x4] ss:$8 sps:$4 sm:$0xff]   ;;  %v5435_v2 = vld [vmem:[%s6210_s14] ss:$8 sps:$4 sm:$0xff]  }
 0x11a   :  { %739 = vmatprep.subr.bf16.mxu0 %v5433_v1  ;;  %v5436_v3 = vld [vmem:[%s6210_s14 + $0x14] ss:$8 sps:$4 sm:$0xff]   ;;  %v5438_v4 = vld [vmem:[%s6210_s14 + $0x10] ss:$8 sps:$4 sm:$0xff]   ;;  %v5439_v5 = vld [vmem:[%s6210_s14 + $0x24] ss:$8 sps:$4 sm:$0xff]  }
 0x11b   :  { %740 = vmatpush1.bf16.msra.mxu0 %v5435_v2  ;;  %v5441_v6 = vld [vmem:[%s6210_s14 + $0x20] ss:$8 sps:$4 sm:$0xff]   ;;  %v5442_v7 = vld [vmem:[%s6210_s14 + $0x34] ss:$8 sps:$4 sm:$0xff]   ;;  %v5444_v8 = vld [vmem:[%s6210_s14 + $0x30] ss:$8 sps:$4 sm:$0xff]  }
 0x11c   :  { %741 = vmatprep.subr.bf16.mxu0 %v5436_v3  ;;  %v5445_v9 = vld [vmem:[%s6210_s14 + $0x44] ss:$8 sps:$4 sm:$0xff]   ;;  %v5447_v10 = vld [vmem:[%s6210_s14 + $0x40] ss:$8 sps:$4 sm:$0xff]   ;;  %v5448_v11 = vld [vmem:[%s6210_s14 + $0x54] ss:$8 sps:$4 sm:$0xff]  }
 0x11d   :  { %v5450_v12 = vld [vmem:[%s6210_s14 + $0x50] ss:$8 sps:$4 sm:$0xff]   ;;  %v5451_v13 = vld [vmem:[%s6210_s14 + $0x64] ss:$8 sps:$4 sm:$0xff]   ;;  %v5453_v16 = vld [vmem:[%s6210_s14 + $0x60] ss:$8 sps:$4 sm:$0xff]  }
 0x11e   :  { %v336_v14 = vld [vmem:[%s6170_s9 + $0x8] sm:$0xff]  ;;  %v5454_v17 = vld [vmem:[%s6210_s14 + $0x74] ss:$8 sps:$4 sm:$0xff]   ;;  %v5456_v18 = vld [vmem:[%s6210_s14 + $0x70] ss:$8 sps:$4 sm:$0xff]   ;;  %vm1093_vm2 = vcmask 1042432  }
 0x11f   :  { %742 = vmatpush1.bf16.msra.mxu0 %v5438_v4  ;;  %v404_v15 = vpack.c.bf16 %v336_v14, %v336_v14  ;;  %v5457_v19 = vld [vmem:[%s6210_s14 + $0x84] ss:$8 sps:$4 sm:$0xff]   ;;  %v5459_v20 = vld [vmem:[%s6210_s14 + $0x80] ss:$8 sps:$4 sm:$0xff]   ;;  %v5460_v21 = vld [vmem:[%s6210_s14 + $0x94] ss:$8 sps:$4 sm:$0xff]  }
 0x120   :  { %743 = vmatprep.subr.bf16.mxu0 %v5439_v5  ;;  %v5462_v22 = vld [vmem:[%s6210_s14 + $0x90] ss:$8 sps:$4 sm:$0xff]   ;;  %v5463_v23 = vld [vmem:[%s6210_s14 + $0xa4] ss:$8 sps:$4 sm:$0xff]   ;;  %v5465_v24 = vld [vmem:[%s6210_s14 + $0xa0] ss:$8 sps:$4 sm:$0xff]  }
 0x121   :  { %771 = vmatprep.mubr.bf16.mxu0 %v404_v15  ;;  %v5466_v25 = vld [vmem:[%s6210_s14 + $0xb4] ss:$8 sps:$4 sm:$0xff]   ;;  %v5468_v26 = vld [vmem:[%s6210_s14 + $0xb0] ss:$8 sps:$4 sm:$0xff]   ;;  %v5469_v27 = vld [vmem:[%s6210_s14 + $0xc4] ss:$8 sps:$4 sm:$0xff]  }
 0x122   :  { %v5529_v28 = vld [vmem:[%s6220_s24 + $0x4] ss:$8 sps:$4 sm:$0xff]   ;;  %v5531_v29 = vld [vmem:[%s6220_s24] ss:$8 sps:$4 sm:$0xff]   ;;  %v5532_v31 = vld [vmem:[%s6220_s24 + $0x14] ss:$8 sps:$4 sm:$0xff]  }
 0x123   :  { %744 = vmatpush1.bf16.msra.mxu0 %v5441_v6  ;;  %v5471_v30 = vld [vmem:[%s6210_s14 + $0xc0] ss:$8 sps:$4 sm:$0xff]   ;;  %1033 = vmatprep.subr.bf16.mxu1 %v5529_v28  ;;  %v5472_v32 = vld [vmem:[%s6210_s14 + $0xd4] ss:$8 sps:$4 sm:$0xff]   ;;  %v5534_v33 = vld [vmem:[%s6220_s24 + $0x10] ss:$8 sps:$4 sm:$0xff]  }
 0x124   :  { %745 = vmatprep.subr.bf16.mxu0 %v5442_v7  ;;  %1034 = vmatpush1.bf16.msra.mxu1 %v5531_v29  ;;  %v5535_v34 = vld [vmem:[%s6220_s24 + $0x24] ss:$8 sps:$4 sm:$0xff]   ;;  %v5474_v35 = vld [vmem:[%s6210_s14 + $0xd0] ss:$8 sps:$4 sm:$0xff]   ;;  %v5537_v37 = vld [vmem:[%s6220_s24 + $0x20] ss:$8 sps:$4 sm:$0xff]  }
 0x125   :  { %1035 = vmatprep.subr.bf16.mxu1 %v5532_v31  ;;  %v5475_v36 = vld [vmem:[%s6210_s14 + $0xe4] ss:$8 sps:$4 sm:$0xff]   ;;  %v5538_v38 = vld [vmem:[%s6220_s24 + $0x34] ss:$8 sps:$4 sm:$0xff]   ;;  %v5477_v39 = vld [vmem:[%s6210_s14 + $0xe0] ss:$8 sps:$4 sm:$0xff]  }
 0x126   :  { %v5478_v40 = vld [vmem:[%s6210_s14 + $0xf4] ss:$8 sps:$4 sm:$0xff]   ;;  %v5540_v41 = vld [vmem:[%s6220_s24 + $0x30] ss:$8 sps:$4 sm:$0xff]   ;;  %v5541_v42 = vld [vmem:[%s6220_s24 + $0x44] ss:$8 sps:$4 sm:$0xff]  }
 0x127   :  { %746 = vmatpush1.bf16.msra.mxu0 %v5444_v8  ;;  %v5480_v43 = vld [vmem:[%s6210_s14 + $0xf0] ss:$8 sps:$4 sm:$0xff]   ;;  %v5483_v44 = vld [vmem:[%s6210_s14 + $0x104] ss:$8 sps:$4 sm:$0xff]   ;;  %v5543_v47 = vld [vmem:[%s6220_s24 + $0x40] ss:$8 sps:$4 sm:$0xff]  }
 0x128   :  { %747 = vmatprep.subr.bf16.mxu0 %v5445_v9  ;;  %1036 = vmatpush1.bf16.msra.mxu1 %v5534_v33  ;;  %v335_v45 = vld [vmem:[%s6170_s9] sm:$0xff]  ;;  %v338_v46 = vld [vmem:[%s6170_s9 + $0x18] sm:$0xff]  ;;  %s7351_s17 = sld [smem:[#allocation34_spill]]  ;;  %vm6154_vm3 = vmmov 0   ;;  %vm1089_vm4 = vcmask 48128   ;;  %vm1156_vm6 = vcmask 130048  }
 0x129   :  { %1037 = vmatprep.subr.bf16.mxu1 %v5535_v34  ;;  %v5544_v48 = vld [vmem:[%s6220_s24 + $0x54] ss:$8 sps:$4 sm:$0xff]   ;;  %v5481_v49 = vld [vmem:[%s6210_s14 + $0x100] ss:$8 sps:$4 sm:$0xff]   ;;  %v403_v50 = vpack.c.bf16 %v335_v45, %v335_v45  ;;  %v5546_v52 = vld [vmem:[%s6220_s24 + $0x50] ss:$8 sps:$4 sm:$0xff]   ;;  %v406_v53 = vpack.c.bf16 %v338_v46, %v338_v46 }
 0x12a   :  { %v5486_v51 = vld [vmem:[%s6210_s14 + $0x114] ss:$8 sps:$4 sm:$0xff]   ;;  %v5547_v54 = vld [vmem:[%s6220_s24 + $0x64] ss:$8 sps:$4 sm:$0xff]   ;;  %v5484_v55 = vld [vmem:[%s6210_s14 + $0x110] ss:$8 sps:$4 sm:$0xff]  }
 0x12b   :  { %748 = vmatpush1.bf16.msra.mxu0 %v5447_v10  ;;  %v5489_v56 = vld [vmem:[%s6210_s14 + $0x124] ss:$8 sps:$4 sm:$0xff]   ;;  %v5549_v57 = vld [vmem:[%s6220_s24 + $0x60] ss:$8 sps:$4 sm:$0xff]   ;;  %v5550_v58 = vld [vmem:[%s6220_s24 + $0x74] ss:$8 sps:$4 sm:$0xff]  }
 0x12c   :  { %749 = vmatprep.subr.bf16.mxu0 %v5448_v11  ;;  %1038 = vmatpush1.bf16.msra.mxu1 %v5537_v37  ;;  %v5487_v59 = vld [vmem:[%s6210_s14 + $0x120] ss:$8 sps:$4 sm:$0xff]   ;;  %v5492_v60 = vld [vmem:[%s6210_s14 + $0x134] ss:$8 sps:$4 sm:$0xff]   ;;  %v5552_v61 = vld [vmem:[%s6220_s24 + $0x70] ss:$8 sps:$4 sm:$0xff]  }
 0x12d   :  { %1039 = vmatprep.subr.bf16.mxu1 %v5538_v38  ;;  %v5553_v62 = vld [vmem:[%s6220_s24 + $0x84] ss:$8 sps:$4 sm:$0xff]   ;;  %v5490_v63 = vld [vmem:[%s6210_s14 + $0x130] ss:$8 sps:$4 sm:$0xff]   ;;  %v5555_v1 = vld [vmem:[%s6220_s24 + $0x80] ss:$8 sps:$4 sm:$0xff]  }
 0x12e   :  { %v5495_v0 = vld [vmem:[%s6210_s14 + $0x144] ss:$8 sps:$4 sm:$0xff]   ;;  %v5556_v2 = vld [vmem:[%s6220_s24 + $0x94] ss:$8 sps:$4 sm:$0xff]   ;;  %v5493_v3 = vld [vmem:[%s6210_s14 + $0x140] ss:$8 sps:$4 sm:$0xff]  }
 0x12f   :  { %750 = vmatpush1.bf16.msra.mxu0 %v5450_v12  ;;  %v5498_v4 = vld [vmem:[%s6210_s14 + $0x154] ss:$8 sps:$4 sm:$0xff]   ;;  %v5558_v5 = vld [vmem:[%s6220_s24 + $0x90] ss:$8 sps:$4 sm:$0xff]   ;;  %v5559_v6 = vld [vmem:[%s6220_s24 + $0xa4] ss:$8 sps:$4 sm:$0xff]  }
 0x130   :  { %751 = vmatprep.subr.bf16.mxu0 %v5451_v13  ;;  %1040 = vmatpush1.bf16.msra.mxu1 %v5540_v41  ;;  %v5496_v7 = vld [vmem:[%s6210_s14 + $0x150] ss:$8 sps:$4 sm:$0xff]   ;;  %v5501_v8 = vld [vmem:[%s6210_s14 + $0x164] ss:$8 sps:$4 sm:$0xff]   ;;  %v5561_v9 = vld [vmem:[%s6220_s24 + $0xa0] ss:$8 sps:$4 sm:$0xff]  }
 0x131   :  { %1041 = vmatprep.subr.bf16.mxu1 %v5541_v42  ;;  %v5562_v10 = vld [vmem:[%s6220_s24 + $0xb4] ss:$8 sps:$4 sm:$0xff]   ;;  %v5499_v11 = vld [vmem:[%s6210_s14 + $0x160] ss:$8 sps:$4 sm:$0xff]   ;;  %v5564_v13 = vld [vmem:[%s6220_s24 + $0xb0] ss:$8 sps:$4 sm:$0xff]   ;;  %v409_v42 = vlaneseq }
 0x132   :  { %v5504_v12 = vld [vmem:[%s6210_s14 + $0x174] ss:$8 sps:$4 sm:$0xff]   ;;  %v5565_v14 = vld [vmem:[%s6220_s24 + $0xc4] ss:$8 sps:$4 sm:$0xff]   ;;  %v5502_v15 = vld [vmem:[%s6210_s14 + $0x170] ss:$8 sps:$4 sm:$0xff]  }
 0x133   :  { %752 = vmatpush1.bf16.msra.mxu0 %v5453_v16  ;;  %v5507_v16 = vld [vmem:[%s6210_s14 + $0x184] ss:$8 sps:$4 sm:$0xff]   ;;  %v5517_v28 = vld [vmem:[%s6210_s14 + $0x1c0] ss:$8 sps:$4 sm:$0xff]   ;;  %v5522_v29 = vld [vmem:[%s6210_s14 + $0x1d4] ss:$8 sps:$4 sm:$0xff]  }
 0x134   :  { %753 = vmatprep.subr.bf16.mxu0 %v5454_v17  ;;  %1042 = vmatpush1.bf16.msra.mxu1 %v5543_v47  ;;  %v5567_v17 = vld [vmem:[%s6220_s24 + $0xc0] ss:$8 sps:$4 sm:$0xff]   ;;  %v5525_v31 = vld [vmem:[%s6210_s14 + $0x1e4] ss:$8 sps:$4 sm:$0xff]   ;;  %v5528_v33 = vld [vmem:[%s6210_s14 + $0x1f4] ss:$8 sps:$4 sm:$0xff]  }
 0x135   :  { %1043 = vmatprep.subr.bf16.mxu1 %v5544_v48  ;;  %v5526_v34 = vld [vmem:[%s6210_s14 + $0x1f0] ss:$8 sps:$4 sm:$0xff]   ;;  %v5571_v37 = vld [vmem:[%s6220_s24 + $0xe4] ss:$8 sps:$4 sm:$0xff]   ;;  %v5573_v38 = vld [vmem:[%s6220_s24 + $0xe0] ss:$8 sps:$4 sm:$0xff]  }
 0x136   :  { %v6153_v41 = vmov 0.0   ;;  %v407_v45 = vld [vmem:[%s6215_s19] sm:$0x3]  ;;  %s7353_s19 = sld [smem:[#allocation36_spill]]  ;;  %vm1289_vm7 = vcmask 261120   ;;  %s7356_s20 = sld [smem:[#allocation31_spill]] }
 0x137   :  { %754 = vmatpush1.bf16.msra.mxu0 %v5456_v18  ;;  %v5568_v18 = vld [vmem:[%s6220_s24 + $0xd4] ss:$8 sps:$4 sm:$0xff]   ;;  %s7357_s11 = sld [smem:[#allocation27_spill]]  ;;  %s7358_s27 = sld [smem:[#allocation29_spill]] }
 0x138   :  { %755 = vmatprep.subr.bf16.mxu0 %v5457_v19  ;;  %1044 = vmatpush1.bf16.msra.mxu1 %v5546_v52  ;;  %v5505_v19 = vld [vmem:[%s6210_s14 + $0x180] ss:$8 sps:$4 sm:$0xff]   ;;  %s7359_s16 = sld [smem:[#allocation32_spill]]  ;;  %s7360_s12 = sld [smem:[#allocation39_spill]] }
 0x139   :  { %1045 = vmatprep.subr.bf16.mxu1 %v5547_v54  ;;  %s7361_s15 = sld [smem:[#allocation28_spill]]  ;;  %s7362_s18 = sld [smem:[#allocation38_spill]] }
 0x13a   :  { %s7363_s22 = sld [smem:[#allocation42_spill]]  ;;  %s7364_s23 = sld [smem:[#allocation43_spill]] }
 0x13b   :  { %756 = vmatpush1.bf16.msra.mxu0 %v5459_v20  ;;  %v5510_v20 = vld [vmem:[%s6210_s14 + $0x194] ss:$8 sps:$4 sm:$0xff]   ;;  %s7365_s21 = sld [smem:[#allocation44_spill]]  ;;  %s7366_s29 = sld [smem:[#allocation40_spill]] }
 0x13c   :  { %757 = vmatprep.subr.bf16.mxu0 %v5460_v21  ;;  %1046 = vmatpush1.bf16.msra.mxu1 %v5549_v57  ;;  %v5570_v21 = vld [vmem:[%s6220_s24 + $0xd0] ss:$8 sps:$4 sm:$0xff]   ;;  %s7367_s26 = sld [smem:[#allocation33_spill]]  ;;  %s7369_s1 = sld [smem:[#allocation45_spill]] }
 0x13d   :  { %1047 = vmatprep.subr.bf16.mxu1 %v5550_v58  ;;  %v1080_v58 = vld [vmem:[%s6230_s6] sm:$0x7]  ;;  %s7355_s6 = sld [smem:[#allocation37_spill]]  ;;  %s7368_s28 = sld [smem:[#allocation41_spill]] }
 0x13e   :  { %s7370_s25 = sld [smem:[#allocation46_spill]]  ;;  %s7371_s3 = sld [smem:[#allocation47_spill]] }
 0x13f   :  { %758 = vmatpush1.bf16.msra.mxu0 %v5462_v22  ;;  %v5508_v22 = vld [vmem:[%s6210_s14 + $0x190] ss:$8 sps:$4 sm:$0xff]   ;;  %s7372_s0 = sld [smem:[#allocation49_spill]]  ;;  %s7373_s4 = sld [smem:[#allocation51_spill]] }
 0x140   :  { %759 = vmatprep.subr.bf16.mxu0 %v5463_v23  ;;  %1048 = vmatpush1.bf16.msra.mxu1 %v5552_v61  ;;  %v5513_v23 = vld [vmem:[%s6210_s14 + $0x1a4] ss:$8 sps:$4 sm:$0xff]   ;;  %s7374_s2 = sld [smem:[#allocation53_spill]]  ;;  %s7375_s7 = sld [smem:[#allocation48_spill]] }
 0x141   :  { %1049 = vmatprep.subr.bf16.mxu1 %v5553_v62  ;;  %v1095_v62 = vsel %vm1093_vm2, %v1080_v58, 0  ;;  %v2273_v58 = vld [vmem:[%s7358_s27 + $0x10] sm:$0xff]  ;;  %s7376_s13 = sld [smem:[#allocation52_spill]]  ;;  %s7377_s10 = sld [smem:[#allocation50_spill]] }
 0x142   :  { %s7378_s30 = sld [smem:[#allocation54_spill]] }
 0x143   :  { %760 = vmatpush1.bf16.msra.mxu0 %v5465_v24  ;;  %v5511_v24 = vld [vmem:[%s6210_s14 + $0x1a0] ss:$8 sps:$4 sm:$0xff]  }
 0x144   :  { %761 = vmatprep.subr.bf16.mxu0 %v5466_v25  ;;  %1050 = vmatpush1.bf16.msra.mxu1 %v5555_v1  ;;  %v5516_v25 = vld [vmem:[%s6210_s14 + $0x1b4] ss:$8 sps:$4 sm:$0xff]   ;;  %v5577_v1 = vld [vmem:[%s7351_s17] sm:$0xff]   ;;  %s7380_s17 = sld [smem:[#allocation55_spill]] }
 0x145   :  { %1051 = vmatprep.subr.bf16.mxu1 %v5556_v2 }
 0x147   :  { %762 = vmatpush1.bf16.msra.mxu0 %v5468_v26  ;;  %v5514_v26 = vld [vmem:[%s6210_s14 + $0x1b0] ss:$8 sps:$4 sm:$0xff]  }
 0x148   :  { %763 = vmatprep.subr.bf16.mxu0 %v5469_v27  ;;  %1052 = vmatpush1.bf16.msra.mxu1 %v5558_v5  ;;  %v5519_v27 = vld [vmem:[%s6210_s14 + $0x1c4] ss:$8 sps:$4 sm:$0xff]  }
 0x149   :  { %1053 = vmatprep.subr.bf16.mxu1 %v5559_v6  ;;  %v4894_v6 = vld [vmem:[#allocation3] ss:$0 sm:$0xff] }
 0x14b   :  { %764 = vmatpush1.bf16.msra.mxu0 %v5471_v30  ;;  %v5520_v30 = vld [vmem:[%s6210_s14 + $0x1d0] ss:$8 sps:$4 sm:$0xff]  }
 0x14c   :  { %765 = vmatprep.subr.bf16.mxu0 %v5472_v32  ;;  %1054 = vmatpush1.bf16.msra.mxu1 %v5561_v9  ;;  %v5523_v32 = vld [vmem:[%s6210_s14 + $0x1e0] ss:$8 sps:$4 sm:$0xff]   ;;  %s7352_s14 = sld [smem:[#allocation35_spill]] }
 0x14d   :  { %1055 = vmatprep.subr.bf16.mxu1 %v5562_v10 }
 0x14f   :  { %766 = vmatpush1.bf16.msra.mxu0 %v5474_v35  ;;  %v337_v35 = vld [vmem:[%s6170_s9 + $0x10] sm:$0xff]  ;;  %s7350_s9 = sld [smem:[#allocation25_spill]] }
 0x150   :  { %767 = vmatprep.subr.bf16.mxu0 %v5475_v36  ;;  %1056 = vmatpush1.bf16.msra.mxu1 %v5564_v13  ;;  %v405_v36 = vpack.c.bf16 %v337_v35, %v337_v35  ;;  %v1455_v35 = vld [vmem:[%s7357_s11] sm:$0xff] }
 0x151   :  { %1057 = vmatprep.subr.bf16.mxu1 %v5565_v14  ;;  %vm1662_vm8 = vcmp.gt.f32.partialorder %v1455_v35, 0.0 }
 0x152   :  { %v1203_v13 = vld [vmem:[%s7352_s14] sm:$0x7]  ;;  %s7381_s14 = sld [smem:[#allocation58_spill]] }
 0x153   :  { %768 = vmatpush1.bf16.msra.mxu0 %v5477_v39  ;;  %v5574_v39 = vld [vmem:[%s6220_s24 + $0xf4] ss:$8 sps:$4 sm:$0xff]  }
 0x154   :  { %769 = vmatprep.subr.bf16.mxu0 %v5478_v40  ;;  %1058 = vmatpush1.bf16.msra.mxu1 %v5567_v17  ;;  %v5576_v40 = vld [vmem:[%s6220_s24 + $0xf0] ss:$8 sps:$4 sm:$0xff]   ;;  %s7354_s24 = sld [smem:[#allocation26_spill]]  ;;  %v5578_v17 = vld [vmem:[%s7353_s19] sm:$0xff]  }
 0x155   :  { %1059 = vmatprep.subr.bf16.mxu1 %v5568_v18 }
 0x157   :  { %770 = vmatpush1.bf16.msra.mxu0 %v5480_v43  ;;  %v6561_v43 = vshrl.u32 %v409_v42, 7 }
 0x158   :  { %780 = vmatprep.subr.bf16.mxu0 %v5483_v44  ;;  %1060 = vmatpush1.bf16.msra.mxu1 %v5570_v21  ;;  %v5579_v21 = vld [vmem:[%s7353_s19 + $0x8] sm:$0xff]   ;;  %s7382_s19 = sld [smem:[#allocation57_spill]] }
 0x159   :  { %1061 = vmatprep.subr.bf16.mxu1 %v5571_v37  ;;  %v6564_v44 = vsub.s32 0, %v6561_v43  ;;  %v6568_v46 = vsub.s32 1, %v6561_v43  ;;  %v1456_v37 = vld [vmem:[%s7357_s11 + $0x8] sm:$0xff] }
 0x15a   :  { %772 = vmatmul.mubr.bf16.vlgmr.msra.gmra.mrb[0].mxu0 %v403_v50  ;;  %v1254_v18 = vld [vmem:[%s7354_s24] sm:$0xff]  ;;  %vm1663_vm10 = vcmp.gt.f32.partialorder %v1456_v37, 0.0 }
 0x15b   :  { %781 = vmatpush1.bf16.msra.mxu0 %v5481_v49  ;;  %812 = vmatprep.mubr.bf16.mxu0 %v406_v53  ;;  %v412_v47 = vrot.slane %v407_v45, %v6564_v44  ;;  %v416_v48 = vrot.slane %v407_v45, %v6568_v46  ;;  %v1459_v45 = vld [vmem:[%s7357_s11 + $0x20] sm:$0xff] }
 0x15c   :  { %782 = vmatprep.subr.bf16.mxu0 %v5486_v51  ;;  %1062 = vmatpush1.bf16.msra.mxu1 %v5573_v38  ;;  %v6155_v38 = vmov 0   ;;  %vm1666_vm12 = vcmp.gt.f32.partialorder %v1459_v45, 0.0 }
 0x15d   :  { %1063 = vmatprep.subr.bf16.mxu1 %v5574_v39  ;;  %5431 = vset.pattern.permute.xlu0 %v6155_v38  ;;  %v1458_v39 = vld [vmem:[%s7357_s11 + $0x18] sm:$0xff] }
 0x15e   :  { %5432 = vset.pattern.permute.xlu1 %v6155_v38  ;;  %vm1665_vm11 = vcmp.gt.f32.partialorder %v1458_v39, 0.0 }
 0x15f   :  { %783 = vmatpush1.bf16.msra.mxu0 %v5484_v55 }
 0x160   :  { %784 = vmatprep.subr.bf16.mxu0 %v5489_v56  ;;  %1064 = vmatpush1.bf16.msra.mxu1 %v5576_v40  ;;  %v1670_v40 = vsel %vm1662_vm8, 1, %v6155_v38 }
 0x161   :  { %5194 = vmatprep.subr.bf16.mxu1 %v6153_v41  ;;  %1679 = vperm.xlu0 %5431, %v1670_v40  }
 0x163   :  { %785 = vmatpush1.bf16.msra.mxu0 %v5487_v59 }
 0x164   :  { %786 = vmatprep.subr.bf16.mxu0 %v5492_v60 }
 0x167   :  { %787 = vmatpush1.bf16.msra.mxu0 %v5490_v63  ;;  %v334_v63 = vld [vmem:[%s7350_s9] sm:$0xff]  ;;  %s7379_s9 = sld [smem:[#allocation30_spill]] }
 0x168   :  { %788 = vmatprep.subr.bf16.mxu0 %v5495_v0  ;;  %v6578_v0 = vpack.c.bf16 %v334_v63, %v334_v63  ;;  %v2276_v63 = vld [vmem:[%s7358_s27 + $0x28] sm:$0xff] }
 0x16b   :  { %789 = vmatpush1.bf16.msra.mxu0 %v5493_v3 }
 0x16c   :  { %790 = vmatprep.subr.bf16.mxu0 %v5498_v4 }
 0x16f   :  { %791 = vmatpush1.bf16.msra.mxu0 %v5496_v7 }
 0x170   :  { %792 = vmatprep.subr.bf16.mxu0 %v5501_v8 }
 0x173   :  { %793 = vmatpush1.bf16.msra.mxu0 %v5499_v11 }
 0x174   :  { %794 = vmatprep.subr.bf16.mxu0 %v5504_v12 }
 0x177   :  { %795 = vmatpush1.bf16.msra.mxu0 %v5502_v15 }
 0x178   :  { %796 = vmatprep.subr.bf16.mxu0 %v5507_v16  ;;  %v1212_v16 = vsel %vm1093_vm2, %v1203_v13, 0 }
 0x17b   :  { %797 = vmatpush1.bf16.msra.mxu0 %v5505_v19  ;;  %v1255_v19 = vld [vmem:[%s7354_s24 + $0x8] sm:$0xff] }
 0x17c   :  { %798 = vmatprep.subr.bf16.mxu0 %v5510_v20  ;;  %v1266_v20 = vpack.c.bf16 %v1255_v19, %v1254_v18  ;;  %v4899_v18 = vld [vmem:[#allocation7] ss:$0 sm:$0xff] }
 0x17f   :  { %799 = vmatpush1.bf16.msra.mxu0 %v5508_v22  ;;  %v1256_v22 = vld [vmem:[%s7354_s24 + $0x10] sm:$0xff] }
 0x180   :  { %800 = vmatprep.subr.bf16.mxu0 %v5513_v23  ;;  %v1257_v23 = vld [vmem:[%s7354_s24 + $0x18] sm:$0xff] }
 0x183   :  { %801 = vmatpush1.bf16.msra.mxu0 %v5511_v24  ;;  %v1258_v24 = vld [vmem:[%s7354_s24 + $0x20] sm:$0xff] }
 0x184   :  { %802 = vmatprep.subr.bf16.mxu0 %v5516_v25  ;;  %v1259_v25 = vld [vmem:[%s7354_s24 + $0x28] sm:$0xff] }
 0x187   :  { %803 = vmatpush1.bf16.msra.mxu0 %v5514_v26  ;;  %v5580_v26 = vld [vmem:[%s7355_s6] sm:$0xff]  }
 0x188   :  { %804 = vmatprep.subr.bf16.mxu0 %v5519_v27  ;;  %v1267_v27 = vpack.c.bf16 %v1257_v23, %v1256_v22 }
 0x18b   :  { %805 = vmatpush1.bf16.msra.mxu0 %v5517_v28  ;;  %v1268_v28 = vpack.c.bf16 %v1259_v25, %v1258_v24 }
 0x18c   :  { %806 = vmatprep.subr.bf16.mxu0 %v5522_v29  ;;  %v1260_v29 = vld [vmem:[%s7354_s24 + $0x30] sm:$0xff] }
 0x18f   :  { %807 = vmatpush1.bf16.msra.mxu0 %v5520_v30  ;;  %v1261_v30 = vld [vmem:[%s7354_s24 + $0x38] sm:$0xff]  ;;  %s7383_s24 = sld [smem:[#allocation56_spill]] }
 0x190   :  { %808 = vmatprep.subr.bf16.mxu0 %v5525_v31  ;;  %v1269_v31 = vpack.c.bf16 %v1261_v30, %v1260_v29  ;;  %v4901_v30 = vld [vmem:[#allocation8] ss:$0 sm:$0xff] }
 0x193   :  { %809 = vmatpush1.bf16.msra.mxu0 %v5523_v32  ;;  %v5581_v32 = vld [vmem:[%s7355_s6 + $0x8] sm:$0xff]  }
 0x194   :  { %810 = vmatprep.subr.bf16.mxu0 %v5528_v33  ;;  %v6616_v33 = vld [vmem:[%s7356_s20] sm:$0xff]  }
 0x197   :  { %811 = vmatpush1.bf16.msra.mxu0 %v5526_v34  ;;  %v6622_v34 = vld [vmem:[%s7356_s20 + $0x8] sm:$0xff]  }
 0x19a   :  { %813 = vmatmul.mubr.bf16.vlgmr.msra.gmra.mrb[0].mxu0 %v405_v36  ;;  %v1457_v36 = vld [vmem:[%s7357_s11 + $0x10] sm:$0xff] }
 0x19b   :  { %vm1664_vm9 = vcmp.gt.f32.partialorder %v1457_v36, 0.0 }
 0x19c   :  { %v1672_v42 = vsel %vm1664_vm9, 1, %v6155_v38  ;;  %vm2471_vm9 = vcmp.gt.f32.partialorder %v2276_v63, 0.0 }
 0x19d   :  { %1685 = vperm.xlu1 %5432, %v1672_v42  }
 0x26d   :  { %v814_v49 = vpop.f32.mrb[0].mxu0 }
 0x26e   :  { %v5358_v50 = vadd.f32 %v814_v49, %v412_v47  ;;  %v816_v51 = vpop.f32.mrb[1].mxu0  ;;  %v1460_v47 = vld [vmem:[%s7357_s11 + $0x28] sm:$0xff]  ;;  %v1673_v49 = vsel %vm1665_vm11, 1, %v6155_v38 }
 0x26f   :  { %v5359_v52 = vadd.f32 %v816_v51, %v416_v48  ;;  %v818_v53 = vpop.f32.mrb[2].mxu0  ;;  %v1671_v48 = vsel %vm1663_vm10, 1, %v6155_v38  ;;  %vm1667_vm13 = vcmp.gt.f32.partialorder %v1460_v47, 0.0  ;;  %v1462_v51 = vld [vmem:[%s7357_s11 + $0x38] sm:$0xff]  ;;  %1688 = vperm.xlu1 %5432, %v1673_v49  }
 0x270   :  { %vm821_vm0 = vcmp.gt.f32.partialorder %v5358_v50, 0.0  ;;  %v823_v54 = vmul.f32 0.01, %v5358_v50  ;;  %v819_v55 = vpop.f32.mrb[3].mxu0  ;;  %1682 = vperm.xlu0 %5431, %v1671_v48   ;;  %v1675_v53 = vsel %vm1667_vm13, 1, %v6155_v38  ;;  %vm1669_vm15 = vcmp.gt.f32.partialorder %v1462_v51, 0.0 }
 0x271   :  { %vm822_vm1 = vcmp.gt.f32.partialorder %v5359_v52, 0.0  ;;  %v824_v56 = vmul.f32 0.01, %v5359_v52  ;;  %v2272_v55 = vld [vmem:[%s7358_s27 + $0x8] sm:$0xff] }
 0x272   :  { %v825_v57 = vsel %vm821_vm0, %v5358_v50, %v823_v54  ;;  %v1461_v50 = vld [vmem:[%s7357_s11 + $0x30] sm:$0xff]  ;;  %v2271_v54 = vld [vmem:[%s7358_s27] sm:$0xff] }
 0x273   :  { %v826_v59 = vsel %vm822_vm1, %v5359_v52, %v824_v56  ;;  %v859_v61 = vpack.c.bf16 %v825_v57, %v825_v57  ;;  %v1674_v52 = vsel %vm1666_vm12, 1, %v6155_v38  ;;  %vm1668_vm14 = vcmp.gt.f32.partialorder %v1461_v50, 0.0  ;;  %1694 = vperm.xlu1 %5432, %v1675_v53  }
 0x274   :  { %v860_v60 = vpack.c.bf16 %v826_v59, %v826_v59  ;;  %1691 = vperm.xlu0 %5431, %v1674_v52   ;;  %v1676_v56 = vsel %vm1668_vm14, 1, %v6155_v38  ;;  %v1677_v57 = vsel %vm1669_vm15, 1, %v6155_v38  ;;  %vm2466_vm0 = vcmp.gt.f32.partialorder %v2271_v54, 0.0  ;;  %v2274_v59 = vld [vmem:[%s7358_s27 + $0x18] sm:$0xff] }
 0x275   :  { %vm2467_vm1 = vcmp.gt.f32.partialorder %v2272_v55, 0.0  ;;  %vm1887_vm12 = vcmask 1041408   ;;  %vm1718_vm14 = vcmask 31744  }
 0x276   :  { %1065 = vmatprep.mubr.bf16.mxu1 %v860_v60  ;;  %v2474_v60 = vsel %vm2466_vm0, 1, %v6155_v38 }
 0x277   :  { %1066 = vmatmul.mubr.bf16.vlgmr.msra.gmra.mrb[0].mxu1 %v859_v61  ;;  %1700 = vperm.xlu1 %5432, %v1677_v57   ;;  %v2475_v61 = vsel %vm2467_vm1, 1, %v6155_v38 }
 0x278   :  { %5195 = vmatpush3.bf16.msra.mxu1 %v1095_v62  ;;  %5196 = vmatprep.mubr.msk.bf16.mxu1 %vm6154_vm3, %v6153_v41  ;;  %v2275_v62 = vld [vmem:[%s7358_s27 + $0x20] sm:$0xff] }
 0x279   :  { %5200 = vmatprep.subr.bf16.mxu1 %v6153_v41  ;;  %1697 = vperm.xlu0 %5431, %v1676_v56   ;;  %vm2470_vm8 = vcmp.gt.f32.partialorder %v2275_v62, 0.0 }
 0x27b   :  { %2486 = vperm.xlu1 %5432, %v2475_v61  }
 0x27d   :  { %2483 = vperm.xlu0 %5431, %v2474_v60  }
 0x27f   :  { %5197 = vmatmul.mubr.msk.bf16.vlgmr.msra.gmra.mrb[4].mxu1 %vm1089_vm4, %v6578_v0 }
 0x280   :  { %5202 = vmatprep.mubr.msk.bf16.mxu1 %vm6154_vm3, %v6153_v41  ;;  %5201 = vmatpush3.bf16.msra.mxu1 %v5577_v1 }
 0x281   :  { %5206 = vmatprep.subr.bf16.mxu1 %v6153_v41 }
 0x34a   :  { %v6586_v2 = vpop.f32.mrb[0].mxu1 }
 0x34b   :  { %v6588_v3 = vpop.f32.mrb[1].mxu1 }
 0x34c   :  { %v1071_v4 = vpop.f32.mrb[2].mxu1 }
 0x34d   :  { %v1072_v5 = vpop.f32.mrb[3].mxu1 }
 0x34e   :  { %v2277_v5 = vld [vmem:[%s7358_s27 + $0x30] sm:$0xff] }
 0x34f   :  { %vm2472_vm10 = vcmp.gt.f32.partialorder %v2277_v5, 0.0 }
 0x352   :  { %v1131_v7 = vpop.f32.mrb[4].mxu1 }
 0x353   :  { %v1132_v8 = vadd.f32 %v4894_v6, %v1131_v7  ;;  %v5198_v9 = vpop.f32.mrb[5].mxu1  ;;  %v2278_v6 = vld [vmem:[%s7358_s27 + $0x38] sm:$0xff]  ;;  %v2478_v7 = vsel %vm2470_vm8, 1, %v6155_v38 }
 0x354   :  { %v1134_v10 = vpop.f32.mrb[6].mxu1  ;;  %vm2473_vm11 = vcmp.gt.f32.partialorder %v2278_v6, 0.0  ;;  %v2480_v9 = vsel %vm2472_vm10, 1, %v6155_v38  ;;  %vm3053_vm10 = vcmask 1043459  }
 0x355   :  { %vm1137_vm5 = vcmp.gt.f32.partialorder %v1132_v8, 0.0  ;;  %v1138_v11 = vmul.f32 0.01, %v1132_v8  ;;  %v5199_v12 = vpop.f32.mrb[7].mxu1  ;;  %v2481_v10 = vsel %vm2473_vm11, 1, %v6155_v38  ;;  %vm3055_vm11 = vcmask 1044484  }
 0x357   :  { %v1139_v14 = vsel %vm1137_vm5, %v1132_v8, %v1138_v11  ;;  %vm2468_vm5 = vcmp.gt.f32.partialorder %v2273_v58, 0.0  ;;  %v2479_v8 = vsel %vm2471_vm9, 1, %v6155_v38  ;;  %v6156_v11 = vmov 1966171168  }
 0x358   :  { %v1142_v15 = vpack.c.bf16 %v1139_v14, %v1139_v14  ;;  %v2476_v1 = vsel %vm2468_vm5, 1, %v6155_v38  ;;  %v1466_v12 = vunpack.c.l.s4 %v6156_v11 }
 0x359   :  { %2489 = vperm.xlu0 %5431, %v2476_v1  }
 0x35a   :  { %5203 = vmatmul.mubr.msk.bf16.vlgmr.msra.gmra.mrb[8].mxu1 %vm1156_vm6, %v1142_v15  ;;  %vm2469_vm6 = vcmp.gt.f32.partialorder %v2274_v59, 0.0 }
 0x35b   :  { %5207 = vmatpush3.bf16.msra.mxu1 %v1212_v16  ;;  %5208 = vmatprep.mubr.msk.bf16.mxu1 %vm6154_vm3, %v6153_v41  ;;  %v2477_v4 = vsel %vm2469_vm6, 1, %v6155_v38 }
 0x35c   :  { %5212 = vmatprep.subr.bf16.mxu1 %v5578_v17  ;;  %2492 = vperm.xlu1 %5432, %v2477_v4  }
 0x35d   :  { %2495 = vperm.xlu0 %5431, %v2478_v7  }
 0x360   :  { %2498 = vperm.xlu1 %5432, %v2479_v8  }
 0x361   :  { %2501 = vperm.xlu0 %5431, %v2480_v9  }
 0x362   :  { %5209 = vmatmul.mubr.msk.bf16.vlgmr.msra.gmra.mrb[12].mxu1 %vm1089_vm4, %v6578_v0 }
 0x363   :  { %5213 = vmatpush3.bf16.msra.mxu1 %v5578_v17  ;;  %5216 = vmatprep.mubr.msk.bf16.mxu1 %vm1289_vm7, %v1266_v20  ;;  %v1467_v17 = vunpack.c.0.s8 %v1466_v12 }
 0x364   :  { %5214 = vmatprep.subr.bf16.mxu1 %v5579_v21  ;;  %2504 = vperm.xlu1 %5432, %v2481_v10  }
 0x365   :  { %v6663_v19 = vsub.s32 %v1467_v17, %v6561_v43 }
 0x367   :  { %5215 = vmatpush3.bf16.msra.mxu1 %v5579_v21 }
 0x368   :  { %5224 = vmatprep.subr.bf16.mxu1 %v5580_v26 }
 0x36a   :  { %5217 = vmatmul.mubr.msk.bf16.vlgmr.msra.gmra.mrb[16].mxu1 %vm1289_vm7, %v1267_v27 }
 0x36b   :  { %5220 = vmatprep.mubr.msk.bf16.mxu1 %vm1289_vm7, %v1268_v28  ;;  %5225 = vmatpush3.bf16.msra.mxu1 %v5580_v26 }
 0x36c   :  { %5226 = vmatprep.subr.bf16.mxu1 %v5581_v32 }
 0x36f   :  { %5227 = vmatpush3.bf16.msra.mxu1 %v5581_v32 }
 0x370   :  { %5236 = vmatprep.subr.bf16.mxu1 %v6616_v33 }
 0x372   :  { %5221 = vmatmul.mubr.msk.bf16.gmra.mrb[20].mxu1 %vm1289_vm7, %v1269_v31 }
 0x373   :  { %5228 = vmatprep.mubr.msk.bf16.mxu1 %vm1289_vm7, %v1266_v20 }
 0x37a   :  { %5229 = vmatmul.mubr.msk.bf16.vlgmr.msra.gmra.mrb[24].mxu1 %vm1289_vm7, %v1267_v27 }
 0x37b   :  { %5232 = vmatprep.mubr.msk.bf16.mxu1 %vm1289_vm7, %v1268_v28  ;;  %5237 = vmatpush3.bf16.msra.mxu1 %v6616_v33 }
 0x37c   :  { %5238 = vmatprep.subr.bf16.mxu1 %v6622_v34 }
 0x37f   :  { %5239 = vmatpush3.bf16.msra.mxu1 %v6622_v34 }
 0x382   :  { %5233 = vmatmul.mubr.msk.bf16.gmra.mrb[28].mxu1 %vm1289_vm7, %v1269_v31 }
 0x42d   :  { %v6660_v13 = vpop.f32.mrb[8].mxu1 }
 0x42e   :  { %v5204_v14 = vpop.f32.mrb[9].mxu1 }
 0x42f   :  { %v1197_v15 = vpop.f32.mrb[10].mxu1 }
 0x430   :  { %v5205_v16 = vpop.f32.mrb[11].mxu1 }
 0x435   :  { %v1248_v20 = vpop.f32.mrb[12].mxu1 }
 0x436   :  { %v6665_v21 = vadd.f32 %v4899_v18, %v1248_v20  ;;  %v5210_v22 = vpop.f32.mrb[13].mxu1 }
 0x437   :  { %v1251_v23 = vpop.f32.mrb[14].mxu1 }
 0x438   :  { %v1464_v24 = vcombine.high %v6665_v21, %v6665_v21  ;;  %v1471_v25 = vrot.slane %v6665_v21, %v6663_v19  ;;  %v5211_v26 = vpop.f32.mrb[15].mxu1 }
 0x43a   :  { %v1478_v27 = vrot.slane %v1464_v24, %v6663_v19  ;;  %v1479_v28 = vcombine.high %v1471_v25, %v1471_v25  ;;  %v1487_v29 = vrot.slane %v1471_v25, %v6663_v19 }
 0x43c   :  { %v1480_v43 = vcombine.high %v1478_v27, %v1478_v27  ;;  %v1509_v31 = vcombine.high %v1487_v29, %v1487_v29  ;;  %v1501_v32 = vrot.slane %v1479_v28, %v6663_v19  ;;  %v1494_v42 = vrot.slane %v1478_v27, %v6663_v19 }
 0x43d   :  { %v5218_v35 = vpop.f32.mrb[16].mxu1  ;;  %v1516_v47 = vrot.slane %v1487_v29, %v6564_v44 }
 0x43e   :  { %v1345_v36 = vadd.f32 %v5218_v35, %v4901_v30  ;;  %v1524_v37 = vrot.slane %v1509_v31, %v6564_v44  ;;  %v1336_v39 = vpop.f32.mrb[17].mxu1  ;;  %v1511_v40 = vcombine.high %v1501_v32, %v1501_v32  ;;  %v1508_v53 = vrot.slane %v1480_v43, %v6663_v19  ;;  %v6705_v43 = vld [vmem:[%s7359_s16] sm:$0x3]  ;;  %v5585_v35 = vld [vmem:[%s7360_s12 + $0x8] sm:$0xff]  }
 0x43f   :  { %v1337_v45 = vadd.f32 %v4901_v30, %v1336_v39  ;;  %v5219_v48 = vpop.f32.mrb[18].mxu1  ;;  %v1520_v56 = vrot.slane %v1501_v32, %v6564_v44  ;;  %v1510_v58 = vcombine.high %v1494_v42, %v1494_v42  ;;  %v1532_v7 = vrot.slane %v1494_v42, %v6564_v44  ;;  %5364 = vmatprep.subr.msk.bf16.mxu1 %vm1887_vm12, %v6705_v43  ;;  %v5584_v32 = vld [vmem:[%s7360_s12] sm:$0xff]   ;;  %v2074_v42 = vld [vmem:[%s7361_s15 + $0x18] sm:$0xff] }
 0x440   :  { %v1555_v49 = vmul.f32 %v1524_v37, %v1345_v36  ;;  %v1348_v50 = vadd.f32 %v5219_v48, %v4901_v30  ;;  %v1528_v51 = vrot.slane %v1511_v40, %v6564_v44  ;;  %v1339_v52 = vpop.f32.mrb[19].mxu1  ;;  %v1512_v61 = vcombine.high %v1508_v53, %v1508_v53  ;;  %5264 = vmatprep.subr.bf16.mxu0 %v5584_v32  ;;  %v2071_v36 = vld [vmem:[%s7361_s15] sm:$0xff]  ;;  %v2072_v37 = vld [vmem:[%s7361_s15 + $0x8] sm:$0xff]  ;;  %v2073_v40 = vld [vmem:[%s7361_s15 + $0x10] sm:$0xff] }
 0x441   :  { %v1553_v54 = vmul.f32 %v1516_v47, %v1337_v45  ;;  %v1340_v55 = vadd.f32 %v4901_v30, %v1339_v52  ;;  %v1540_v4 = vrot.slane %v1510_v58, %v6564_v44  ;;  %v1536_v16 = vrot.slane %v1508_v53, %v6564_v44  ;;  %5265 = vmatpush3.bf16.msra.mxu0 %v5584_v32  ;;  %v2075_v47 = vld [vmem:[%s7361_s15 + $0x20] sm:$0xff]  ;;  %v2076_v48 = vld [vmem:[%s7361_s15 + $0x28] sm:$0xff]  ;;  %v1680_v53 = vpop.permute.xlu0 %1679 }
 0x442   :  { %v1556_v57 = vmul.f32 %v1528_v51, %v1348_v50  ;;  %v1544_v11 = vrot.slane %v1512_v61, %v6564_v44  ;;  %v6711_v31 = vsel %vm1887_vm12, %v6705_v43, 0  ;;  %v6719_v39 = vpack.c.bf16 %v2072_v37, %v2071_v36  ;;  %5266 = vmatprep.subr.bf16.mxu0 %v5585_v35  ;;  %v2078_v51 = vld [vmem:[%s7361_s15 + $0x38] sm:$0xff] }
 0x443   :  { %v1554_v59 = vmul.f32 %v1520_v56, %v1340_v55  ;;  %v6725_v45 = vpack.c.bf16 %v2074_v42, %v2073_v40  ;;  %v6734_v50 = vpack.c.bf16 %v2076_v48, %v2075_v47  ;;  %vm1702_vm15 = vcmp.eq.s32.totalorder %v1680_v53, 1 }
 0x444   :  { %v1562_v60 = vpack.c.bf16 %v1556_v57, %v1555_v49  ;;  %5268 = vmatprep.mubr.msk.bf16.mxu0 %vm1289_vm7, %v6719_v39  ;;  %v2077_v49 = vld [vmem:[%s7361_s15 + $0x30] sm:$0xff] }
 0x445   :  { %v1561_v62 = vpack.c.bf16 %v1554_v59, %v1553_v54  ;;  %v5222_v63 = vpop.f32.mrb[20].mxu1  ;;  %5267 = vmatpush3.bf16.msra.mxu0 %v5585_v35  ;;  %v6740_v52 = vpack.c.bf16 %v2078_v51, %v2077_v49  ;;  %v1686_v54 = vpop.permute.xlu1 %1685 }
 0x446   :  { %v1361_v1 = vadd.f32 %v5222_v63, %v4901_v30  ;;  %v1352_v5 = vpop.f32.mrb[21].mxu1  ;;  %5288 = vmatprep.subr.bf16.mxu0 %v6616_v33  ;;  %vm1704_vm13 = vcmp.eq.s32.totalorder %v1686_v54, 1 }
 0x447   :  { %v1353_v6 = vadd.f32 %v4901_v30, %v1352_v5  ;;  %v5223_v8 = vpop.f32.mrb[22].mxu1  ;;  %5240 = vmatprep.mubr.msk.bf16.mxu1 %vm1289_vm7, %v1561_v62 }
 0x448   :  { %v1559_v9 = vmul.f32 %v1540_v4, %v1361_v1  ;;  %v1364_v10 = vadd.f32 %v5223_v8, %v4901_v30  ;;  %v1355_v12 = vpop.f32.mrb[23].mxu1  ;;  %5241 = vmatmul.mubr.msk.bf16.vlgmr.msra.gmra.mrb[32].mxu1 %vm1289_vm7, %v1562_v60  ;;  %5269 = vmatmul.mubr.msk.bf16.vlgmr.msra.gmra.mrb[4].mxu0 %vm1289_vm7, %v6725_v45 }
 0x449   :  { %v1557_v14 = vmul.f32 %v1532_v7, %v1353_v6  ;;  %v1356_v15 = vadd.f32 %v4901_v30, %v1355_v12  ;;  %5249 = vmatpush3.bf16.msra.mxu1 %v6711_v31  ;;  %5289 = vmatpush3.bf16.msra.mxu0 %v6616_v33  ;;  %v1683_v33 = vpop.permute.xlu0 %1682  ;;  %v1689_v55 = vpop.permute.xlu1 %1688 }
 0x44a   :  { %v1560_v17 = vmul.f32 %v1544_v11, %v1364_v10  ;;  %5258 = vmatprep.subr.bf16.mxu1 %v6153_v41  ;;  %5290 = vmatprep.subr.bf16.mxu0 %v6622_v34  ;;  %vm1705_vm0 = vcmp.eq.s32.totalorder %v1689_v55, 1  ;;  %vm1703_vm1 = vcmp.eq.s32.totalorder %v1683_v33, 1 }
 0x44b   :  { %v1558_v18 = vmul.f32 %v1536_v16, %v1356_v15  ;;  %5272 = vmatprep.mubr.msk.bf16.mxu0 %vm1289_vm7, %v6734_v50 }
 0x44c   :  { %v1564_v20 = vpack.c.bf16 %v1560_v17, %v1559_v9 }
 0x44d   :  { %v1563_v22 = vpack.c.bf16 %v1558_v18, %v1557_v14  ;;  %v6688_v23 = vpop.f32.mrb[24].mxu1  ;;  %5291 = vmatpush3.bf16.msra.mxu0 %v6622_v34  ;;  %v1692_v59 = vpop.permute.xlu0 %1691 }
 0x44e   :  { %v6690_v24 = vpop.f32.mrb[25].mxu1  ;;  %5310 = vmatprep.subr.bf16.mxu0 %v6153_v41  ;;  %v6746_v62 = vpop.permute.xlu1 %1694  ;;  %vm1706_vm5 = vcmp.eq.s32.totalorder %v1692_v59, 1 }
 0x44f   :  { %5244 = vmatprep.mubr.msk.bf16.mxu1 %vm1289_vm7, %v1563_v22  ;;  %v6692_v25 = vpop.f32.mrb[26].mxu1  ;;  %vm1707_vm8 = vcmp.eq.s32.totalorder %v6746_v62, 1 }
 0x450   :  { %5245 = vmatmul.mubr.msk.bf16.gmra.mrb[36].mxu1 %vm1289_vm7, %v1564_v20  ;;  %v6694_v26 = vpop.f32.mrb[27].mxu1  ;;  %5273 = vmatmul.mubr.msk.bf16.gmra.mrb[8].mxu0 %vm1289_vm7, %v6740_v52 }
 0x451   :  { %v1698_v17 = vpop.permute.xlu0 %1697 }
 0x452   :  { %vm1708_vm6 = vcmp.eq.s32.totalorder %v1698_v17, 1  ;;  %v1701_v32 = vpop.permute.xlu1 %1700 }
 0x453   :  { %vm1709_vm9 = vcmp.eq.s32.totalorder %v1701_v32, 1 }
 0x455   :  { %v6696_v27 = vpop.f32.mrb[28].mxu1 }
 0x456   :  { %v6698_v28 = vpop.f32.mrb[29].mxu1 }
 0x457   :  { %v6700_v29 = vpop.f32.mrb[30].mxu1 }
 0x458   :  { %v6702_v30 = vpop.f32.mrb[31].mxu1 }
 0x51b   :  { %v5242_v56 = vpop.f32.mrb[32].mxu1 }
 0x51c   :  { %v1656_v57 = vmul.f32 0.35355338, %v5242_v56  ;;  %v1623_v58 = vpop.f32.mrb[33].mxu1 }
 0x51d   :  { %v1654_v60 = vmul.f32 0.35355338, %v1623_v58  ;;  %v5243_v61 = vpop.f32.mrb[34].mxu1 }
 0x51e   :  { %v6748_v34 = vsel %vm1704_vm13, %v1656_v57, -1e+09  ;;  %v1657_v63 = vmul.f32 0.35355338, %v5243_v61  ;;  %v1626_v1 = vpop.f32.mrb[35].mxu1  ;;  %vm3057_vm13 = vcmask 1045509  }
 0x51f   :  { %v1733_v4 = vsel %vm1718_vm14, %v6748_v34, -inf  ;;  %v6752_v5 = vsel %vm1702_vm15, %v1654_v60, -1e+09  ;;  %v1655_v6 = vmul.f32 0.35355338, %v1626_v1  ;;  %vm3059_vm15 = vcmask 1046534  }
 0x520   :  { %v1734_v7 = vrot.slane %v1733_v4, 4  ;;  %v1719_v8 = vsel %vm1718_vm14, %v6752_v5, -inf  ;;  %v6756_v9 = vsel %vm1705_vm0, %v1657_v63, -1e+09  ;;  %vm3061_vm0 = vcmask 1047559  }
 0x521   :  { %v1720_v10 = vrot.slane %v1719_v8, 4  ;;  %v1740_v11 = vsel %vm1718_vm14, %v6756_v9, -inf  ;;  %v6760_v12 = vsel %vm1703_vm1, %v1655_v6, -1e+09 }
 0x522   :  { %v1735_v14 = vmax.f32 %v1733_v4, %v1734_v7  ;;  %v1741_v15 = vrot.slane %v1740_v11, 4  ;;  %v1726_v16 = vsel %vm1718_vm14, %v6760_v12, -inf }
 0x523   :  { %v1721_v18 = vmax.f32 %v1719_v8, %v1720_v10  ;;  %v1727_v20 = vrot.slane %v1726_v16, 4  ;;  %v5246_v22 = vpop.f32.mrb[36].mxu1 }
 0x524   :  { %v1736_v35 = vrot.slane %v1735_v14, 2  ;;  %v1742_v36 = vmax.f32 %v1740_v11, %v1741_v15  ;;  %v1660_v37 = vmul.f32 0.35355338, %v5246_v22  ;;  %v1639_v40 = vpop.f32.mrb[37].mxu1 }
 0x525   :  { %v1722_v42 = vrot.slane %v1721_v18, 2  ;;  %v1728_v47 = vmax.f32 %v1726_v16, %v1727_v20  ;;  %v1658_v48 = vmul.f32 0.35355338, %v1639_v40  ;;  %v5247_v49 = vpop.f32.mrb[38].mxu1 }
 0x526   :  { %v1737_v51 = vmax.f32 %v1735_v14, %v1736_v35  ;;  %v1743_v53 = vrot.slane %v1742_v36, 2  ;;  %v1716_v54 = vsel %vm1708_vm6, %v1660_v37, -1e+09  ;;  %v1661_v33 = vmul.f32 0.35355338, %v5247_v49  ;;  %v1642_v55 = vpop.f32.mrb[39].mxu1 }
 0x527   :  { %v1723_v56 = vmax.f32 %v1721_v18, %v1722_v42  ;;  %v1729_v57 = vrot.slane %v1728_v47, 2  ;;  %v1761_v58 = vsel %vm1718_vm14, %v1716_v54, -inf  ;;  %v1714_v60 = vsel %vm1706_vm5, %v1658_v48, -1e+09 }
 0x528   :  { %v1738_v61 = vrot.slane %v1737_v51, 1  ;;  %v1744_v63 = vmax.f32 %v1742_v36, %v1743_v53  ;;  %v1762_v1 = vrot.slane %v1761_v58, 4  ;;  %v1747_v4 = vsel %vm1718_vm14, %v1714_v60, -inf }
 0x529   :  { %v1724_v6 = vrot.slane %v1723_v56, 1  ;;  %v1730_v7 = vmax.f32 %v1728_v47, %v1729_v57  ;;  %v1748_v8 = vrot.slane %v1747_v4, 4  ;;  %v1717_v10 = vsel %vm1709_vm9, %v1661_v33, -1e+09 }
 0x52a   :  { %v1739_v11 = vmax.f32 %v1737_v51, %v1738_v61  ;;  %v1745_v14 = vrot.slane %v1744_v63, 1  ;;  %v1763_v15 = vmax.f32 %v1761_v58, %v1762_v1  ;;  %v1768_v16 = vsel %vm1718_vm14, %v1717_v10, -inf }
 0x52b   :  { %v1725_v17 = vmax.f32 %v1723_v56, %v1724_v6  ;;  %v1731_v18 = vrot.slane %v1730_v7, 1  ;;  %v1749_v20 = vmax.f32 %v1747_v4, %v1748_v8  ;;  %v1769_v59 = vrot.slane %v1768_v16, 4 }
 0x52c   :  { %v1777_v22 = vsub.f32 %v6748_v34, %v1739_v11  ;;  %v1746_v35 = vmax.f32 %v1744_v63, %v1745_v14  ;;  %v1764_v36 = vrot.slane %v1763_v15, 2  ;;  %v1659_v37 = vmul.f32 0.35355338, %v1642_v55 }
 0x52d   :  { %v1775_v40 = vsub.f32 %v6752_v5, %v1725_v17  ;;  %v1732_v42 = vmax.f32 %v1730_v7, %v1731_v18  ;;  %v1750_v47 = vrot.slane %v1749_v20, 2  ;;  %v1770_v32 = vmax.f32 %v1768_v16, %v1769_v59 }
 0x52e   :  { %v1787_v48 = vmul.f32 1.442695, %v1777_v22  ;;  %v1778_v49 = vsub.f32 %v6756_v9, %v1746_v35  ;;  %v1765_v51 = vmax.f32 %v1763_v15, %v1764_v36  ;;  %v1715_v53 = vsel %vm1707_vm8, %v1659_v37, -1e+09 }
 0x52f   :  { %v1783_v33 = vmul.f32 1.442695, %v1775_v40  ;;  %v1776_v56 = vsub.f32 %v6760_v12, %v1732_v42  ;;  %v1751_v57 = vmax.f32 %v1749_v20, %v1750_v47  ;;  %v1771_v34 = vrot.slane %v1770_v32, 2 }
 0x530   :  { %5792 = vpow2.f32 %v1787_v48  ;;  %v1789_v58 = vmul.f32 1.442695, %v1778_v49  ;;  %v1766_v55 = vrot.slane %v1765_v51, 1  ;;  %v1754_v5 = vsel %vm1718_vm14, %v1715_v53, -inf }
 0x531   :  { %5794 = vpow2.f32 %v1783_v33  ;;  %v1785_v61 = vmul.f32 1.442695, %v1776_v56  ;;  %v1752_v63 = vrot.slane %v1751_v57, 1  ;;  %v1772_v1 = vmax.f32 %v1770_v32, %v1771_v34 }
 0x532   :  { %5796 = vpow2.f32 %v1789_v58  ;;  %v1767_v9 = vmax.f32 %v1765_v51, %v1766_v55  ;;  %v1755_v4 = vrot.slane %v1754_v5, 4 }
 0x533   :  { %5798 = vpow2.f32 %v1785_v61  ;;  %v1753_v62 = vmax.f32 %v1751_v57, %v1752_v63  ;;  %v1773_v6 = vrot.slane %v1772_v1, 1 }
 0x534   :  { %v1781_v7 = vsub.f32 %v1716_v54, %v1767_v9  ;;  %v1756_v8 = vmax.f32 %v1754_v5, %v1755_v4 }
 0x535   :  { %v1779_v12 = vsub.f32 %v1714_v60, %v1753_v62  ;;  %v1774_v11 = vmax.f32 %v1772_v1, %v1773_v6 }
 0x536   :  { %v1795_v14 = vmul.f32 1.442695, %v1781_v7  ;;  %v1757_v15 = vrot.slane %v1756_v8, 2 }
 0x537   :  { %v1791_v16 = vmul.f32 1.442695, %v1779_v12  ;;  %v1782_v17 = vsub.f32 %v1717_v10, %v1774_v11 }
 0x538   :  { %5800 = vpow2.f32 %v1795_v14  ;;  %v1758_v18 = vmax.f32 %v1756_v8, %v1757_v15 }
 0x539   :  { %5802 = vpow2.f32 %v1791_v16  ;;  %v1797_v20 = vmul.f32 1.442695, %v1782_v17 }
 0x53a   :  { %v6777_v59 = vpop.eup %5792  ;;  %v1759_v22 = vrot.slane %v1758_v18, 1 }
 0x53b   :  { %v6779_v35 = vpop.eup %5794  ;;  %v1813_v36 = vsel %vm1718_vm14, %v6777_v59, 0.0  ;;  %5804 = vpow2.f32 %v1797_v20 }
 0x53c   :  { %v6783_v54 = vpop.eup %5796  ;;  %v1814_v60 = vrot.slane %v1813_v36, 4  ;;  %v1799_v37 = vsel %vm1718_vm14, %v6779_v35, 0.0  ;;  %v1760_v10 = vmax.f32 %v1758_v18, %v1759_v22 }
 0x53d   :  { %v6787_v40 = vpop.eup %5798  ;;  %v1800_v42 = vrot.slane %v1799_v37, 4  ;;  %v1820_v47 = vsel %vm1718_vm14, %v6783_v54, 0.0 }
 0x53e   :  { %v1815_v32 = vadd.f32 %v1814_v60, %v1813_v36  ;;  %v1821_v48 = vrot.slane %v1820_v47, 4  ;;  %v1806_v49 = vsel %vm1718_vm14, %v6787_v40, 0.0  ;;  %v1780_v51 = vsub.f32 %v1715_v53, %v1760_v10 }
 0x53f   :  { %v1801_v33 = vadd.f32 %v1800_v42, %v1799_v37  ;;  %v1807_v56 = vrot.slane %v1806_v49, 4 }
 0x540   :  { %v1816_v57 = vrot.slane %v1815_v32, 2  ;;  %v1822_v34 = vadd.f32 %v1821_v48, %v1820_v47  ;;  %v1793_v58 = vmul.f32 1.442695, %v1780_v51 }
 0x541   :  { %v1802_v55 = vrot.slane %v1801_v33, 2  ;;  %v1808_v5 = vadd.f32 %v1807_v56, %v1806_v49 }
 0x542   :  { %v6793_v61 = vpop.eup %5800  ;;  %v1817_v63 = vadd.f32 %v1816_v57, %v1815_v32  ;;  %v1823_v1 = vrot.slane %v1822_v34, 2  ;;  %5806 = vpow2.f32 %v1793_v58 }
 0x543   :  { %v6795_v9 = vpop.eup %5802  ;;  %v1803_v4 = vadd.f32 %v1802_v55, %v1801_v33  ;;  %v1809_v62 = vrot.slane %v1808_v5, 2  ;;  %v1841_v6 = vsel %vm1718_vm14, %v6793_v61, 0.0 }
 0x544   :  { %v1818_v53 = vrot.slane %v1817_v63, 1  ;;  %v1824_v7 = vadd.f32 %v1823_v1, %v1822_v34  ;;  %v1842_v8 = vrot.slane %v1841_v6, 4  ;;  %v1827_v12 = vsel %vm1718_vm14, %v6795_v9, 0.0 }
 0x545   :  { %v5805_v11 = vpop.eup %5804  ;;  %v1804_v14 = vrot.slane %v1803_v4, 1  ;;  %v1810_v15 = vadd.f32 %v1809_v62, %v1808_v5  ;;  %v1828_v16 = vrot.slane %v1827_v12, 4 }
 0x546   :  { %v1819_v17 = vadd.f32 %v1818_v53, %v1817_v63  ;;  %v1825_v18 = vrot.slane %v1824_v7, 1  ;;  %v1843_v20 = vadd.f32 %v1842_v8, %v1841_v6  ;;  %v1848_v22 = vsel %vm1718_vm14, %v5805_v11, 0.0 }
 0x547   :  { %v1805_v36 = vadd.f32 %v1804_v14, %v1803_v4  ;;  %v1811_v60 = vrot.slane %v1810_v15, 1  ;;  %v1829_v37 = vadd.f32 %v1828_v16, %v1827_v12  ;;  %v1849_v10 = vrot.slane %v1848_v22, 4 }
 0x548   :  { %5808 = vrcp.f32 %v1819_v17  ;;  %v1826_v42 = vadd.f32 %v1825_v18, %v1824_v7  ;;  %v1844_v47 = vrot.slane %v1843_v20, 2 }
 0x549   :  { %v1812_v32 = vadd.f32 %v1811_v60, %v1810_v15  ;;  %v1830_v48 = vrot.slane %v1829_v37, 2  ;;  %v1850_v49 = vadd.f32 %v1849_v10, %v1848_v22  ;;  %5810 = vrcp.f32 %v1805_v36  ;;  %v2020_v60 = vld [vmem:[%s7362_s18] sm:$0x7] }
 0x54a   :  { %5812 = vrcp.f32 %v1826_v42  ;;  %v1845_v51 = vadd.f32 %v1844_v47, %v1843_v20  ;;  %v2029_v47 = vsel %vm1093_vm2, %v2020_v60, 0  ;;  %vm3049_vm2 = vcmask 1041409  }
 0x54b   :  { %v1851_v33 = vrot.slane %v1850_v49, 2  ;;  %5814 = vrcp.f32 %v1812_v32  ;;  %v1831_v34 = vadd.f32 %v1830_v48, %v1829_v37 }
 0x54c   :  { %v5807_v56 = vpop.eup %5806  ;;  %v1846_v57 = vrot.slane %v1845_v51, 1 }
 0x54d   :  { %v1852_v58 = vadd.f32 %v1851_v33, %v1850_v49  ;;  %v1834_v55 = vsel %vm1718_vm14, %v5807_v56, 0.0  ;;  %v1832_v4 = vrot.slane %v1831_v34, 1 }
 0x54e   :  { %v1847_v5 = vadd.f32 %v1846_v57, %v1845_v51  ;;  %v1835_v63 = vrot.slane %v1834_v55, 4 }
 0x54f   :  { %v1853_v1 = vrot.slane %v1852_v58, 1  ;;  %v1833_v14 = vadd.f32 %v1832_v4, %v1831_v34 }
 0x550   :  { %v1836_v62 = vadd.f32 %v1835_v63, %v1834_v55  ;;  %5816 = vrcp.f32 %v1847_v5  ;;  %v4908_v63 = vld [vmem:[#allocation10] ss:$0 sm:$0xff] }
 0x551   :  { %v1854_v6 = vadd.f32 %v1853_v1, %v1852_v58  ;;  %v1436_v4 = vadd.f32 %v6692_v25, %v4908_v63 }
 0x552   :  { %v5809_v53 = vpop.eup %5808  ;;  %v1837_v7 = vrot.slane %v1836_v62, 2 }
 0x553   :  { %v5811_v8 = vpop.eup %5810  ;;  %5818 = vrcp.f32 %v1854_v6  ;;  %v1865_v17 = vmul.f32 %v5809_v53, %v6777_v59  ;;  %v1428_v53 = vadd.f32 %v4908_v63, %v6694_v26 }
 0x554   :  { %v5813_v12 = vpop.eup %5812  ;;  %v1838_v15 = vadd.f32 %v1837_v7, %v1836_v62  ;;  %v1863_v22 = vmul.f32 %v5811_v8, %v6779_v35  ;;  %5820 = vrcp.f32 %v1833_v14 }
 0x555   :  { %v5815_v16 = vpop.eup %5814  ;;  %v1866_v18 = vmul.f32 %v5813_v12, %v6783_v54 }
 0x556   :  { %v1839_v20 = vrot.slane %v1838_v15, 1  ;;  %v1864_v36 = vmul.f32 %v5815_v16, %v6787_v40 }
 0x557   :  { %v1872_v37 = vpack.c.bf16 %v1866_v18, %v1865_v17 }
 0x558   :  { %v1840_v10 = vadd.f32 %v1839_v20, %v1838_v15  ;;  %v1871_v42 = vpack.c.bf16 %v1864_v36, %v1863_v22 }
 0x55a   :  { %5250 = vmatprep.mubr.msk.bf16.mxu1 %vm1718_vm14, %v1871_v42  ;;  %5822 = vrcp.f32 %v1840_v10  ;;  %v5817_v32 = vpop.eup %5816 }
 0x55b   :  { %5251 = vmatmul.mubr.msk.bf16.vlgmr.msra.gmra.mrb[40].mxu1 %vm1718_vm14, %v1872_v37  ;;  %v1869_v54 = vmul.f32 %v5817_v32, %v6793_v61  ;;  %v5270_v61 = vpop.f32.mrb[4].mxu0 }
 0x55c   :  { %5259 = vmatpush3.bf16.msra.mxu1 %v2029_v47 }
 0x55d   :  { %v5819_v59 = vpop.eup %5818 }
 0x55e   :  { %v1870_v35 = vmul.f32 %v5819_v59, %v5805_v11  ;;  %v5821_v40 = vpop.eup %5820  ;;  %v6821_v11 = vpop.f32.mrb[5].mxu0 }
 0x55f   :  { %v1867_v51 = vmul.f32 %v5821_v40, %v6795_v9  ;;  %v6823_v34 = vpop.f32.mrb[6].mxu0  ;;  %v1449_v40 = vadd.f32 %v6696_v27, %v4908_v63 }
 0x560   :  { %v1874_v48 = vpack.c.bf16 %v1870_v35, %v1869_v54  ;;  %v6825_v9 = vpop.f32.mrb[7].mxu0 }
 0x564   :  { %v5823_v49 = vpop.eup %5822 }
 0x565   :  { %v1868_v33 = vmul.f32 %v5823_v49, %v5807_v56  ;;  %v6827_v56 = vpop.f32.mrb[8].mxu0  ;;  %v1441_v49 = vadd.f32 %v4908_v63, %v6698_v28 }
 0x566   :  { %v6829_v58 = vpop.f32.mrb[9].mxu0 }
 0x567   :  { %v1873_v57 = vpack.c.bf16 %v1868_v33, %v1867_v51  ;;  %v6831_v55 = vpop.f32.mrb[10].mxu0 }
 0x568   :  { %v6833_v5 = vpop.f32.mrb[11].mxu0 }
 0x569   :  { %5254 = vmatprep.mubr.msk.bf16.mxu1 %vm1718_vm14, %v1873_v57  ;;  %v6845_v57 = vld [vmem:[#allocation13] ss:$0 sm:$0xff] }
 0x56a   :  { %5255 = vmatmul.mubr.msk.bf16.gmra.mrb[44].mxu1 %vm1718_vm14, %v1874_v48  ;;  %v6850_v28 = vadd.f32 %v5270_v61, %v6845_v57  ;;  %v6860_v61 = vadd.f32 %v6823_v34, %v6845_v57 }
 0x56b   :  { %5260 = vmatprep.mubr.msk.bf16.mxu1 %vm6154_vm3, %v6153_v41 }
 0x572   :  { %5261 = vmatmul.mubr.msk.bf16.vlgmr.msra.gmra.mrb[48].mxu1 %vm1089_vm4, %v6578_v0  ;;  %v1433_v0 = vadd.f32 %v6688_v23, %v4908_v63  ;;  %vm3051_vm4 = vcmask 1042434  }
 0x573   :  { %5280 = vmatprep.mubr.msk.bf16.mxu1 %vm1289_vm7, %v6719_v39  ;;  %v1425_v39 = vadd.f32 %v4908_v63, %v6690_v24 }
 0x62e   :  { %v5252_v1 = vpop.f32.mrb[40].mxu1 }
 0x62f   :  { %v1958_v62 = vmul.f32 %v5252_v1, %v1433_v0  ;;  %v1925_v6 = vpop.f32.mrb[41].mxu1  ;;  %v1452_v0 = vadd.f32 %v6700_v29, %v4908_v63 }
 0x630   :  { %v1956_v7 = vmul.f32 %v1925_v6, %v1425_v39  ;;  %v5253_v8 = vpop.f32.mrb[42].mxu1  ;;  %v1444_v39 = vadd.f32 %v4908_v63, %v6702_v30  ;;  %v6854_v30 = vadd.f32 %v6845_v57, %v6821_v11  ;;  %v6865_v11 = vadd.f32 %v6845_v57, %v6825_v9 }
 0x631   :  { %v1978_v12 = vsel %vm1289_vm7, %v1958_v62, 0.0  ;;  %v1959_v14 = vmul.f32 %v5253_v8, %v1436_v4  ;;  %v1928_v15 = vpop.f32.mrb[43].mxu1 }
 0x632   :  { %v1979_v16 = vrot.slane %v1978_v12, 4  ;;  %v1964_v17 = vsel %vm1289_vm7, %v1956_v7, 0.0  ;;  %v1957_v18 = vmul.f32 %v1928_v15, %v1428_v53 }
 0x633   :  { %v1965_v23 = vrot.slane %v1964_v17, 4  ;;  %v1985_v24 = vsel %vm1289_vm7, %v1959_v14, 0.0 }
 0x634   :  { %v1980_v20 = vadd.f32 %v1979_v16, %v1978_v12  ;;  %v1986_v22 = vrot.slane %v1985_v24, 4  ;;  %v1971_v25 = vsel %vm1289_vm7, %v1957_v18, 0.0 }
 0x635   :  { %v1966_v36 = vadd.f32 %v1965_v23, %v1964_v17  ;;  %v1972_v60 = vrot.slane %v1971_v25, 4 }
 0x636   :  { %v1981_v26 = vrot.slane %v1980_v20, 2  ;;  %v1987_v37 = vadd.f32 %v1986_v22, %v1985_v24 }
 0x637   :  { %v1967_v10 = vrot.slane %v1966_v36, 2  ;;  %v1973_v42 = vadd.f32 %v1972_v60, %v1971_v25 }
 0x638   :  { %v1982_v47 = vadd.f32 %v1981_v26, %v1980_v20  ;;  %v1988_v32 = vrot.slane %v1987_v37, 2 }
 0x639   :  { %v1968_v59 = vadd.f32 %v1967_v10, %v1966_v36  ;;  %v1974_v54 = vrot.slane %v1973_v42, 2 }
 0x63a   :  { %v1983_v35 = vrot.slane %v1982_v47, 1  ;;  %v1989_v48 = vadd.f32 %v1988_v32, %v1987_v37 }
 0x63b   :  { %v1969_v51 = vrot.slane %v1968_v59, 1  ;;  %v1975_v33 = vadd.f32 %v1974_v54, %v1973_v42 }
 0x63c   :  { %v1984_v1 = vadd.f32 %v1983_v35, %v1982_v47  ;;  %v1990_v4 = vrot.slane %v1989_v48, 1  ;;  %v4925_v47 = vld [vmem:[#allocation11] ss:$0 sm:$0xff] }
 0x63d   :  { %v1970_v62 = vadd.f32 %v1969_v51, %v1968_v59  ;;  %v1976_v6 = vrot.slane %v1975_v33, 1  ;;  %v5256_v53 = vpop.f32.mrb[44].mxu1 }
 0x63e   :  { %v1991_v7 = vadd.f32 %v1990_v4, %v1989_v48  ;;  %v1962_v8 = vmul.f32 %v5256_v53, %v1449_v40  ;;  %v1941_v27 = vpop.f32.mrb[45].mxu1  ;;  %v3027_v63 = vpack.c.bf16 %v1984_v1, %v1984_v1  ;;  %v2169_v1 = vadd.f32 %v6845_v57, %v6829_v58 }
 0x63f   :  { %v3025_v12 = vpack.c.bf16 %v1970_v62, %v1970_v62  ;;  %v1977_v14 = vadd.f32 %v1976_v6, %v1975_v33  ;;  %v1960_v15 = vmul.f32 %v1941_v27, %v1441_v49  ;;  %v5257_v29 = vpop.f32.mrb[46].mxu1 }
 0x640   :  { %v3028_v16 = vpack.c.bf16 %v1991_v7, %v1991_v7  ;;  %v2006_v17 = vsel %vm1289_vm7, %v1962_v8, 0.0  ;;  %v1963_v18 = vmul.f32 %v5257_v29, %v1452_v0  ;;  %v1944_v23 = vpop.f32.mrb[47].mxu1  ;;  %v3043_v32 = vunpack.c.l.b16 %v3027_v63 }
 0x641   :  { %v3026_v24 = vpack.c.bf16 %v1977_v14, %v1977_v14  ;;  %v2007_v20 = vrot.slane %v2006_v17, 4  ;;  %v1992_v22 = vsel %vm1289_vm7, %v1960_v15, 0.0  ;;  %v1961_v60 = vmul.f32 %v1944_v23, %v1444_v39 }
 0x642   :  { %v1993_v25 = vrot.slane %v1992_v22, 4  ;;  %v2013_v36 = vsel %vm1289_vm7, %v1963_v18, 0.0  ;;  %v3041_v26 = vunpack.c.l.b16 %v3025_v12  ;;  %v3044_v59 = vunpack.c.l.b16 %v3028_v16 }
 0x643   :  { %v3042_v37 = vunpack.c.l.b16 %v3026_v24  ;;  %v2008_v10 = vadd.f32 %v2007_v20, %v2006_v17  ;;  %v2014_v42 = vrot.slane %v2013_v36, 4  ;;  %v1999_v35 = vsel %vm1289_vm7, %v1961_v60, 0.0 }
 0x644   :  { %v1994_v54 = vadd.f32 %v1993_v25, %v1992_v22  ;;  %v2000_v49 = vrot.slane %v1999_v35, 4  ;;  %v2177_v15 = vadd.f32 %v6827_v56, %v6845_v57  ;;  %v2172_v16 = vadd.f32 %v6845_v57, %v6833_v5 }
 0x645   :  { %v3050_v34 = vsel %vm3049_vm2, %v3042_v37, %v3041_v26  ;;  %v2009_v48 = vrot.slane %v2008_v10, 2  ;;  %v2015_v40 = vadd.f32 %v2014_v42, %v2013_v36  ;;  %v2065_v51 = vpop.f32.mrb[48].mxu1  ;;  %v2180_v36 = vadd.f32 %v6831_v55, %v6845_v57 }
 0x646   :  { %v3052_v33 = vsel %vm3051_vm4, %v3043_v32, %v3050_v34  ;;  %v1995_v9 = vrot.slane %v1994_v54, 2  ;;  %v6870_v0 = vadd.f32 %v4925_v47, %v2065_v51  ;;  %v5262_v39 = vpop.f32.mrb[49].mxu1  ;;  %v2001_v53 = vadd.f32 %v2000_v49, %v1999_v35 }
 0x647   :  { %v2010_v4 = vadd.f32 %v2009_v48, %v2008_v10  ;;  %v3054_v62 = vsel %vm3053_vm10, %v3044_v59, %v3052_v33  ;;  %v2016_v6 = vrot.slane %v2015_v40, 2  ;;  %v2068_v7 = vpop.f32.mrb[50].mxu1 }
 0x648   :  { %v1996_v8 = vadd.f32 %v1995_v9, %v1994_v54  ;;  %v2280_v27 = vcombine.high %v6870_v0, %v6870_v0  ;;  %v2287_v12 = vrot.slane %v6870_v0, %v6663_v19  ;;  %v5263_v14 = vpop.f32.mrb[51].mxu1  ;;  %v2002_v63 = vrot.slane %v2001_v53, 2 }
 0x649   :  { %v2011_v29 = vrot.slane %v2010_v4, 1  ;;  %v2017_v58 = vadd.f32 %v2016_v6, %v2015_v40 }
 0x64a   :  { %v1997_v17 = vrot.slane %v1996_v8, 1  ;;  %v2294_v18 = vrot.slane %v2280_v27, %v6663_v19  ;;  %v2295_v23 = vcombine.high %v2287_v12, %v2287_v12  ;;  %v2303_v24 = vrot.slane %v2287_v12, %v6663_v19 }
 0x64b   :  { %v2012_v20 = vadd.f32 %v2011_v29, %v2010_v4  ;;  %v2018_v22 = vrot.slane %v2017_v58, 1  ;;  %v2003_v25 = vadd.f32 %v2002_v63, %v2001_v53  ;;  %v5586_v63 = vld [vmem:[%s7363_s22] sm:$0xff]  }
 0x64c   :  { %v1998_v56 = vadd.f32 %v1997_v17, %v1996_v8  ;;  %v2325_v60 = vcombine.high %v2303_v24, %v2303_v24  ;;  %v2332_v26 = vrot.slane %v2303_v24, %v6564_v44  ;;  %v2296_v10 = vcombine.high %v2294_v18, %v2294_v18 }
 0x64d   :  { %v2019_v37 = vadd.f32 %v2018_v22, %v2017_v58  ;;  %v2004_v5 = vrot.slane %v2003_v25, 1  ;;  %v2317_v42 = vrot.slane %v2295_v23, %v6663_v19  ;;  %v2310_v54 = vrot.slane %v2294_v18, %v6663_v19 }
 0x64e   :  { %v3029_v47 = vpack.c.bf16 %v1998_v56, %v1998_v56  ;;  %v2340_v32 = vrot.slane %v2325_v60, %v6564_v44  ;;  %v2369_v59 = vmul.f32 %v2332_v26, %v6854_v30  ;;  %v3031_v35 = vpack.c.bf16 %v2012_v20, %v2012_v20  ;;  %v5587_v20 = vld [vmem:[%s7363_s22 + $0x8] sm:$0xff]   ;;  %v5588_v56 = vld [vmem:[%s7364_s23] sm:$0xff]  }
 0x64f   :  { %v2005_v34 = vadd.f32 %v2004_v5, %v2003_v25  ;;  %v2327_v55 = vcombine.high %v2317_v42, %v2317_v42  ;;  %v2336_v40 = vrot.slane %v2317_v42, %v6564_v44  ;;  %v2326_v49 = vcombine.high %v2310_v54, %v2310_v54  ;;  %v5590_v26 = vld [vmem:[%s7365_s21] sm:$0xff]   ;;  %v5591_v5 = vld [vmem:[%s7365_s21 + $0x8] sm:$0xff]  }
 0x650   :  { %v3045_v57 = vunpack.c.l.b16 %v3029_v47  ;;  %v2371_v48 = vmul.f32 %v2340_v32, %v6850_v28  ;;  %v3032_v51 = vpack.c.bf16 %v2019_v37, %v2019_v37  ;;  %v2348_v39 = vrot.slane %v2310_v54, %v6564_v44  ;;  %v5592_v42 = vld [vmem:[%s7366_s29] sm:$0xff]   ;;  %v5593_v47 = vld [vmem:[%s7366_s29 + $0x8] sm:$0xff]   ;;  %v2487_v32 = vpop.permute.xlu1 %2486 }
 0x651   :  { %v3030_v33 = vpack.c.bf16 %v2005_v34, %v2005_v34  ;;  %v2344_v9 = vrot.slane %v2327_v55, %v6564_v44  ;;  %v2370_v4 = vmul.f32 %v2336_v40, %v6865_v11  ;;  %v2356_v6 = vrot.slane %v2326_v49, %v6564_v44  ;;  %5276 = vmatprep.subr.bf16.mxu1 %v5592_v42 }
 0x652   :  { %v3056_v30 = vsel %vm3055_vm11, %v3045_v57, %v3054_v62  ;;  %v2324_v53 = vrot.slane %v2296_v10, %v6663_v19  ;;  %v3047_v7 = vunpack.c.l.b16 %v3031_v35  ;;  %v2373_v27 = vmul.f32 %v2348_v39, %v2169_v1  ;;  %5277 = vmatpush3.bf16.msra.mxu1 %v5592_v42 }
 0x653   :  { %v3046_v28 = vunpack.c.l.b16 %v3030_v33  ;;  %v2372_v8 = vmul.f32 %v2344_v9, %v6860_v61  ;;  %v2377_v12 = vpack.c.bf16 %v2370_v4, %v2369_v59  ;;  %v2375_v14 = vmul.f32 %v2356_v6, %v2177_v15  ;;  %v4896_v61 = vld [vmem:[#allocation5] ss:$0 sm:$0xff]  ;;  %5278 = vmatprep.subr.bf16.mxu1 %v5593_v47 }
 0x654   :  { %v2328_v29 = vcombine.high %v2324_v53, %v2324_v53  ;;  %v2352_v58 = vrot.slane %v2324_v53, %v6564_v44  ;;  %v3048_v17 = vunpack.c.l.b16 %v3032_v51  ;;  %v1195_v22 = vadd.f32 %v4896_v61, %v6660_v13  ;;  %v5589_v13 = vld [vmem:[%s7364_s23 + $0x8] sm:$0xff]   ;;  %v2493_v54 = vpop.permute.xlu1 %2492 }
 0x655   :  { %v3058_v62 = vsel %vm3057_vm13, %v3046_v28, %v3056_v30  ;;  %v2378_v11 = vpack.c.bf16 %v2372_v8, %v2371_v48  ;;  %5292 = vmatprep.mubr.msk.bf16.mxu0 %vm1289_vm7, %v2377_v12  ;;  %v3124_v10 = vpack.c.bf16 %v6665_v21, %v6665_v21  ;;  %v2484_v21 = vpop.permute.xlu0 %2483  ;;  %vm2509_vm6 = vcmp.eq.s32.totalorder %v2493_v54, 1 }
 0x656   :  { %v2360_v18 = vrot.slane %v2328_v29, %v6564_v44  ;;  %v2374_v23 = vmul.f32 %v2352_v58, %v2172_v16  ;;  %v3060_v19 = vsel %vm3059_vm15, %v3047_v7, %v3058_v62  ;;  %v1201_v25 = vmul.f32 0.01, %v1195_v22  ;;  %5279 = vmatpush3.bf16.msra.mxu1 %v5593_v47 }
 0x657   :  { %5293 = vmatmul.mubr.msk.bf16.vlgmr.msra.gmra.mrb[12].mxu0 %vm1289_vm7, %v2378_v11  ;;  %v3062_v1 = vsel %vm3061_vm0, %v3048_v17, %v3060_v19  ;;  %vm1200_vm1 = vcmp.gt.f32.partialorder %v1195_v22, 0.0  ;;  %5365 = vmatprep.subr.msk.bf16.mxu1 %vm1887_vm12, %v6705_v43  ;;  %vm2506_vm5 = vcmp.eq.s32.totalorder %v2484_v21, 1  ;;  %vm2507_vm8 = vcmp.eq.s32.totalorder %v2487_v32, 1 }
 0x658   :  { %v2376_v15 = vmul.f32 %v2360_v18, %v2180_v36  ;;  %v2379_v24 = vpack.c.bf16 %v2374_v23, %v2373_v27  ;;  %5311 = vmatpush3.bf16.msra.mxu0 %v5586_v63  ;;  %v1202_v36 = vsel %vm1200_vm1, %v1195_v22, %v1201_v25  ;;  %v3063_v37 = vpack.c.b16 %v3062_v1, %v3062_v1  ;;  %v6948_v43 = vpop.permute.xlu1 %2498 }
 0x659   :  { %5312 = vmatprep.subr.bf16.mxu0 %v6153_v41  ;;  %v2849_v60 = vpack.c.bf16 %v1202_v36, %v1202_v36  ;;  %5281 = vmatmul.mubr.msk.bf16.vlgmr.msra.gmra.mrb[52].mxu1 %vm1289_vm7, %v6725_v45  ;;  %v2490_v59 = vpop.permute.xlu0 %2489 }
 0x65a   :  { %v2380_v16 = vpack.c.bf16 %v2376_v15, %v2375_v14  ;;  %5296 = vmatprep.mubr.msk.bf16.mxu0 %vm1289_vm7, %v2379_v24  ;;  %5301 = vmatpush3.bf16.msra.mxu1 %v6711_v31  ;;  %vm2508_vm12 = vcmp.eq.s32.totalorder %v2490_v59, 1 }
 0x65b   :  { %5284 = vmatprep.mubr.msk.bf16.mxu1 %vm1289_vm7, %v6734_v50  ;;  %2981 = vmatprep.subr.bf16.mxu1 %v6155_v38 }
 0x65c   :  { %5313 = vmatpush3.bf16.msra.mxu0 %v5587_v20  ;;  %v2505_v7 = vpop.permute.xlu1 %2504 }
 0x65d   :  { %5318 = vmatprep.subr.bf16.mxu0 %v6153_v41  ;;  %v2496_v35 = vpop.permute.xlu0 %2495 }
 0x65e   :  { %vm2510_vm9 = vcmp.eq.s32.totalorder %v2496_v35, 1 }
 0x65f   :  { %5297 = vmatmul.mubr.msk.bf16.gmra.mrb[16].mxu0 %vm1289_vm7, %v2380_v16 }
 0x660   :  { %5314 = vmatprep.mubr.msk.bf16.mxu0 %vm6154_vm3, %v6153_v41 }
 0x661   :  { %5285 = vmatmul.mubr.msk.bf16.gmra.mrb[56].mxu1 %vm1289_vm7, %v6740_v52  ;;  %v2502_v30 = vpop.permute.xlu0 %2501 }
 0x662   :  { %vm2512_vm1 = vcmp.eq.s32.totalorder %v2502_v30, 1 }
 0x667   :  { %5315 = vmatmul.mubr.msk.bf16.vlgmr.msra.gmra.mrb[20].mxu0 %vm1289_vm7, %v2849_v60 }
 0x668   :  { %5319 = vmatpush3.bf16.msra.mxu0 %v5588_v56  ;;  %5322 = vmatprep.mubr.msk.bf16.mxu0 %vm6154_vm3, %v6153_v41 }
 0x669   :  { %5320 = vmatprep.subr.bf16.mxu0 %v6153_v41 }
 0x66c   :  { %5321 = vmatpush3.bf16.msra.mxu0 %v5589_v13 }
 0x66d   :  { %5326 = vmatprep.subr.bf16.mxu0 %v6153_v41 }
 0x66f   :  { %5323 = vmatmul.mubr.msk.bf16.vlgmr.msra.gmra.mrb[24].mxu0 %vm1289_vm7, %v3063_v37 }
 0x670   :  { %5327 = vmatpush3.bf16.msra.mxu0 %v5590_v26  ;;  %5330 = vmatprep.mubr.msk.bf16.mxu0 %vm6154_vm3, %v6153_v41 }
 0x671   :  { %5328 = vmatprep.subr.bf16.mxu0 %v6153_v41 }
 0x674   :  { %5329 = vmatpush3.bf16.msra.mxu0 %v5591_v5 }
 0x675   :  { %5334 = vmatprep.subr.bf16.mxu0 %v6153_v41 }
 0x677   :  { %5331 = vmatmul.mubr.msk.bf16.vlgmr.msra.gmra.mrb[28].mxu0 %vm1289_vm7, %v3124_v10 }
 0x678   :  { %5338 = vmatprep.mubr.msk.bf16.mxu0 %vm6154_vm3, %v6153_v41 }
 0x72a   :  { %v5294_v34 = vpop.f32.mrb[12].mxu0 }
 0x72b   :  { %v2460_v55 = vmul.f32 0.35355338, %v5294_v34  ;;  %v2427_v45 = vpop.f32.mrb[13].mxu0 }
 0x72c   :  { %v2458_v31 = vmul.f32 0.35355338, %v2427_v45  ;;  %v5295_v57 = vpop.f32.mrb[14].mxu0 }
 0x72d   :  { %v6950_v50 = vsel %vm2508_vm12, %v2460_v55, -1e+09  ;;  %v2461_v48 = vmul.f32 0.35355338, %v5295_v57  ;;  %v2430_v40 = vpop.f32.mrb[15].mxu0  ;;  %vm2511_vm12 = vcmp.eq.s32.totalorder %v6948_v43, 1 }
 0x72e   :  { %v2536_v52 = vsel %vm1718_vm14, %v6950_v50, -inf  ;;  %v6954_v49 = vsel %vm2506_vm5, %v2458_v31, -1e+09  ;;  %v2459_v51 = vmul.f32 0.35355338, %v2430_v40  ;;  %vm2513_vm5 = vcmp.eq.s32.totalorder %v2505_v7, 1 }
 0x72f   :  { %v2537_v33 = vrot.slane %v2536_v52, 4  ;;  %v2522_v9 = vsel %vm1718_vm14, %v6954_v49, -inf  ;;  %v6958_v39 = vsel %vm2509_vm6, %v2461_v48, -1e+09 }
 0x730   :  { %v2523_v4 = vrot.slane %v2522_v9, 4  ;;  %v2543_v6 = vsel %vm1718_vm14, %v6958_v39, -inf  ;;  %v6962_v53 = vsel %vm2507_vm8, %v2459_v51, -1e+09  ;;  %vm2977_vm8 = vcmask 523264  }
 0x731   :  { %v2538_v28 = vmax.f32 %v2536_v52, %v2537_v33  ;;  %v2544_v8 = vrot.slane %v2543_v6, 4  ;;  %v2529_v27 = vsel %vm1718_vm14, %v6962_v53, -inf }
 0x732   :  { %v2524_v12 = vmax.f32 %v2522_v9, %v2523_v4  ;;  %v2530_v14 = vrot.slane %v2529_v27, 4  ;;  %v5298_v29 = vpop.f32.mrb[16].mxu0 }
 0x733   :  { %v2539_v58 = vrot.slane %v2538_v28, 2  ;;  %v2545_v63 = vmax.f32 %v2543_v6, %v2544_v8  ;;  %v2464_v17 = vmul.f32 0.35355338, %v5298_v29  ;;  %v2443_v62 = vpop.f32.mrb[17].mxu0 }
 0x734   :  { %v2525_v11 = vrot.slane %v2524_v12, 2  ;;  %v2531_v18 = vmax.f32 %v2529_v27, %v2530_v14  ;;  %v2462_v23 = vmul.f32 0.35355338, %v2443_v62  ;;  %v5299_v19 = vpop.f32.mrb[18].mxu0 }
 0x735   :  { %v2540_v61 = vmax.f32 %v2538_v28, %v2539_v58  ;;  %v2546_v1 = vrot.slane %v2545_v63, 2  ;;  %v6967_v15 = vsel %vm2512_vm1, %v2464_v17, -1e+09  ;;  %v2465_v24 = vmul.f32 0.35355338, %v5299_v19  ;;  %v2446_v20 = vpop.f32.mrb[19].mxu0 }
 0x736   :  { %v2526_v22 = vmax.f32 %v2524_v12, %v2525_v11  ;;  %v2532_v16 = vrot.slane %v2531_v18, 2  ;;  %v2564_v25 = vsel %vm1718_vm14, %v6967_v15, -inf  ;;  %v2518_v36 = vsel %vm2510_vm9, %v2462_v23, -1e+09 }
 0x737   :  { %v2541_v56 = vrot.slane %v2540_v61, 1  ;;  %v2547_v60 = vmax.f32 %v2545_v63, %v2546_v1  ;;  %v2565_v13 = vrot.slane %v2564_v25, 4  ;;  %v2550_v26 = vsel %vm1718_vm14, %v2518_v36, -inf }
 0x738   :  { %v2527_v37 = vrot.slane %v2526_v22, 1  ;;  %v2533_v5 = vmax.f32 %v2531_v18, %v2532_v16  ;;  %v2551_v10 = vrot.slane %v2550_v26, 4  ;;  %v2521_v42 = vsel %vm2513_vm5, %v2465_v24, -1e+09 }
 0x739   :  { %v2542_v47 = vmax.f32 %v2540_v61, %v2541_v56  ;;  %v2548_v21 = vrot.slane %v2547_v60, 1  ;;  %v2566_v32 = vmax.f32 %v2564_v25, %v2565_v13  ;;  %v2571_v59 = vsel %vm1718_vm14, %v2521_v42, -inf }
 0x73a   :  { %v2528_v54 = vmax.f32 %v2526_v22, %v2527_v37  ;;  %v2534_v34 = vrot.slane %v2533_v5, 1  ;;  %v2552_v55 = vmax.f32 %v2550_v26, %v2551_v10  ;;  %v2572_v35 = vrot.slane %v2571_v59, 4  ;;  %v6975_v45 = vpop.f32.mrb[20].mxu0 }
 0x73b   :  { %v2580_v31 = vsub.f32 %v6950_v50, %v2542_v47  ;;  %v2549_v57 = vmax.f32 %v2547_v60, %v2548_v21  ;;  %v2567_v48 = vrot.slane %v2566_v32, 2  ;;  %v2463_v40 = vmul.f32 0.35355338, %v2446_v20  ;;  %v5316_v52 = vpop.f32.mrb[21].mxu0 }
 0x73c   :  { %v2578_v51 = vsub.f32 %v6954_v49, %v2528_v54  ;;  %v2535_v33 = vmax.f32 %v2533_v5, %v2534_v34  ;;  %v2553_v9 = vrot.slane %v2552_v55, 2  ;;  %v2573_v30 = vmax.f32 %v2571_v59, %v2572_v35  ;;  %v2902_v4 = vpop.f32.mrb[22].mxu0 }
 0x73d   :  { %v2590_v6 = vmul.f32 1.442695, %v2580_v31  ;;  %v2581_v7 = vsub.f32 %v6958_v39, %v2549_v57  ;;  %v2568_v28 = vmax.f32 %v2566_v32, %v2567_v48  ;;  %v2519_v8 = vsel %vm2511_vm12, %v2463_v40, -1e+09  ;;  %v5317_v27 = vpop.f32.mrb[23].mxu0 }
 0x73e   :  { %v2586_v12 = vmul.f32 1.442695, %v2578_v51  ;;  %v2579_v50 = vsub.f32 %v6962_v53, %v2535_v33  ;;  %v2554_v14 = vmax.f32 %v2552_v55, %v2553_v9  ;;  %v2574_v29 = vrot.slane %v2573_v30, 2 }
 0x73f   :  { %5824 = vpow2.f32 %v2590_v6  ;;  %v2592_v58 = vmul.f32 1.442695, %v2581_v7  ;;  %v2569_v49 = vrot.slane %v2568_v28, 1  ;;  %v2557_v63 = vsel %vm1718_vm14, %v2519_v8, -inf }
 0x740   :  { %5826 = vpow2.f32 %v2586_v12  ;;  %v2588_v17 = vmul.f32 1.442695, %v2579_v50  ;;  %v2555_v62 = vrot.slane %v2554_v14, 1  ;;  %v2575_v11 = vmax.f32 %v2573_v30, %v2574_v29 }
 0x741   :  { %5828 = vpow2.f32 %v2592_v58  ;;  %v2570_v39 = vmax.f32 %v2568_v28, %v2569_v49  ;;  %v2558_v18 = vrot.slane %v2557_v63, 4 }
 0x742   :  { %5830 = vpow2.f32 %v2588_v17  ;;  %v2556_v43 = vmax.f32 %v2554_v14, %v2555_v62  ;;  %v2576_v23 = vrot.slane %v2575_v11, 1  ;;  %v6984_v19 = vpop.f32.mrb[24].mxu0 }
 0x743   :  { %v2584_v53 = vsub.f32 %v6967_v15, %v2570_v39  ;;  %v2559_v61 = vmax.f32 %v2557_v63, %v2558_v18  ;;  %v5324_v1 = vpop.f32.mrb[25].mxu0 }
 0x744   :  { %v2582_v24 = vsub.f32 %v2518_v36, %v2556_v43  ;;  %v2577_v20 = vmax.f32 %v2575_v11, %v2576_v23  ;;  %v3116_v22 = vpop.f32.mrb[26].mxu0 }
 0x745   :  { %v2598_v16 = vmul.f32 1.442695, %v2584_v53  ;;  %v2560_v25 = vrot.slane %v2559_v61, 2  ;;  %v5325_v56 = vpop.f32.mrb[27].mxu0 }
 0x746   :  { %v2594_v60 = vmul.f32 1.442695, %v2582_v24  ;;  %v2585_v13 = vsub.f32 %v2521_v42, %v2577_v20 }
 0x747   :  { %5832 = vpow2.f32 %v2598_v16  ;;  %v2561_v26 = vmax.f32 %v2559_v61, %v2560_v25 }
 0x748   :  { %5834 = vpow2.f32 %v2594_v60  ;;  %v2600_v37 = vmul.f32 1.442695, %v2585_v13 }
 0x749   :  { %v6987_v5 = vpop.eup %5824  ;;  %v2562_v10 = vrot.slane %v2561_v26, 1 }
 0x74a   :  { %v6989_v47 = vpop.eup %5826  ;;  %v2616_v15 = vsel %vm1718_vm14, %v6987_v5, 0.0  ;;  %5836 = vpow2.f32 %v2600_v37  ;;  %v6993_v36 = vpop.f32.mrb[28].mxu0 }
 0x74b   :  { %v6995_v21 = vpop.eup %5828  ;;  %v2617_v32 = vrot.slane %v2616_v15, 4  ;;  %v2602_v42 = vsel %vm1718_vm14, %v6989_v47, 0.0  ;;  %v2563_v59 = vmax.f32 %v2561_v26, %v2562_v10  ;;  %v5332_v54 = vpop.f32.mrb[29].mxu0 }
 0x74c   :  { %v6999_v34 = vpop.eup %5830  ;;  %v2603_v55 = vrot.slane %v2602_v42, 4  ;;  %v2623_v35 = vsel %vm1718_vm14, %v6995_v21, 0.0  ;;  %v3177_v31 = vpop.f32.mrb[30].mxu0 }
 0x74d   :  { %v2618_v57 = vadd.f32 %v2617_v32, %v2616_v15  ;;  %v2624_v48 = vrot.slane %v2623_v35, 4  ;;  %v2609_v40 = vsel %vm1718_vm14, %v6999_v34, 0.0  ;;  %v2583_v52 = vsub.f32 %v2519_v8, %v2563_v59  ;;  %v5333_v51 = vpop.f32.mrb[31].mxu0 }
 0x74e   :  { %v2604_v33 = vadd.f32 %v2603_v55, %v2602_v42  ;;  %v2610_v9 = vrot.slane %v2609_v40, 4 }
 0x74f   :  { %v2619_v30 = vrot.slane %v2618_v57, 2  ;;  %v2625_v4 = vadd.f32 %v2624_v48, %v2623_v35  ;;  %v2596_v6 = vmul.f32 1.442695, %v2583_v52 }
 0x750   :  { %v2605_v7 = vrot.slane %v2604_v33, 2  ;;  %v2611_v28 = vadd.f32 %v2610_v9, %v2609_v40 }
 0x751   :  { %v7005_v27 = vpop.eup %5832  ;;  %v2620_v12 = vadd.f32 %v2619_v30, %v2618_v57  ;;  %v2626_v50 = vrot.slane %v2625_v4, 2  ;;  %5838 = vpow2.f32 %v2596_v6 }
 0x752   :  { %v7007_v14 = vpop.eup %5834  ;;  %v2606_v29 = vadd.f32 %v2605_v7, %v2604_v33  ;;  %v2612_v58 = vrot.slane %v2611_v28, 2  ;;  %v2644_v8 = vsel %vm1718_vm14, %v7005_v27, 0.0 }
 0x753   :  { %v2621_v49 = vrot.slane %v2620_v12, 1  ;;  %v2627_v63 = vadd.f32 %v2626_v50, %v2625_v4  ;;  %v2645_v17 = vrot.slane %v2644_v8, 4  ;;  %v2630_v62 = vsel %vm1718_vm14, %v7007_v14, 0.0 }
 0x754   :  { %v7013_v11 = vpop.eup %5836  ;;  %v2607_v39 = vrot.slane %v2606_v29, 1  ;;  %v2613_v18 = vadd.f32 %v2612_v58, %v2611_v28  ;;  %v2631_v43 = vrot.slane %v2630_v62, 4  ;;  %v861_v58 = vld [vmem:[%s7367_s26] sm:$0x3] }
 0x755   :  { %v2622_v23 = vadd.f32 %v2621_v49, %v2620_v12  ;;  %v2628_v53 = vrot.slane %v2627_v63, 1  ;;  %v2646_v61 = vadd.f32 %v2645_v17, %v2644_v8  ;;  %v2651_v1 = vsel %vm1718_vm14, %v7013_v11, 0.0  ;;  %v5594_v17 = vld [vmem:[%s7368_s28] sm:$0xff]  }
 0x756   :  { %v2608_v24 = vadd.f32 %v2607_v39, %v2606_v29  ;;  %v2614_v20 = vrot.slane %v2613_v18, 1  ;;  %v2632_v22 = vadd.f32 %v2631_v43, %v2630_v62  ;;  %v2652_v16 = vrot.slane %v2651_v1, 4 }
 0x757   :  { %5840 = vrcp.f32 %v2622_v23  ;;  %v2629_v25 = vadd.f32 %v2628_v53, %v2627_v63  ;;  %v2647_v56 = vrot.slane %v2646_v61, 2  ;;  %v870_v62 = vrot.slane %v861_v58, %v6568_v46  ;;  %v5596_v23 = vld [vmem:[%s7368_s28 + $0x10] sm:$0xff]  }
 0x758   :  { %v2615_v60 = vadd.f32 %v2614_v20, %v2613_v18  ;;  %v2633_v13 = vrot.slane %v2632_v22, 2  ;;  %v2653_v26 = vadd.f32 %v2652_v16, %v2651_v1  ;;  %5842 = vrcp.f32 %v2608_v24  ;;  %v5597_v24 = vld [vmem:[%s7368_s28 + $0x18] sm:$0xff]  }
 0x759   :  { %5844 = vrcp.f32 %v2629_v25  ;;  %v2648_v37 = vadd.f32 %v2647_v56, %v2646_v61  ;;  %v5600_v25 = vld [vmem:[%s7368_s28 + $0x30] sm:$0xff]   ;;  %v5601_v56 = vld [vmem:[%s7368_s28 + $0x38] sm:$0xff]  }
 0x75a   :  { %v2654_v10 = vrot.slane %v2653_v26, 2  ;;  %5846 = vrcp.f32 %v2615_v60  ;;  %v2634_v42 = vadd.f32 %v2633_v13, %v2632_v22  ;;  %v5598_v22 = vld [vmem:[%s7368_s28 + $0x20] sm:$0xff]   ;;  %v866_v13 = vrot.slane %v861_v58, %v6564_v44 }
 0x75b   :  { %v5839_v15 = vpop.eup %5838  ;;  %v2649_v32 = vrot.slane %v2648_v37, 1  ;;  %v5602_v60 = vld [vmem:[%s7368_s28 + $0x40] sm:$0xff]  }
 0x75c   :  { %v2655_v59 = vadd.f32 %v2654_v10, %v2653_v26  ;;  %v2637_v54 = vsel %vm1718_vm14, %v5839_v15, 0.0  ;;  %v2635_v57 = vrot.slane %v2634_v42, 1  ;;  %v5603_v26 = vld [vmem:[%s7368_s28 + $0x48] sm:$0xff]   ;;  %v5604_v10 = vld [vmem:[%s7368_s28 + $0x50] sm:$0xff]  }
 0x75d   :  { %v2650_v55 = vadd.f32 %v2649_v32, %v2648_v37  ;;  %v2638_v35 = vrot.slane %v2637_v54, 4  ;;  %v1068_v37 = vadd.f32 %v6586_v2, %v866_v13  ;;  %v5605_v32 = vld [vmem:[%s7368_s28 + $0x58] sm:$0xff]  }
 0x75e   :  { %v2656_v31 = vrot.slane %v2655_v59, 1  ;;  %v2636_v30 = vadd.f32 %v2635_v57, %v2634_v42 }
 0x75f   :  { %v2639_v48 = vadd.f32 %v2638_v35, %v2637_v54  ;;  %5848 = vrcp.f32 %v2650_v55  ;;  %v5282_v54 = vpop.f32.mrb[52].mxu1 }
 0x760   :  { %v2657_v40 = vadd.f32 %v2656_v31, %v2655_v59  ;;  %v2240_v55 = vpop.f32.mrb[53].mxu1 }
 0x761   :  { %v5841_v52 = vpop.eup %5840  ;;  %v2640_v51 = vrot.slane %v2639_v48, 2  ;;  %v5283_v35 = vpop.f32.mrb[54].mxu1 }
 0x762   :  { %v5843_v33 = vpop.eup %5842  ;;  %5850 = vrcp.f32 %v2657_v40  ;;  %v2668_v7 = vmul.f32 %v5841_v52, %v6987_v5  ;;  %v2243_v2 = vpop.f32.mrb[55].mxu1  ;;  %v5606_v52 = vld [vmem:[%s7369_s1] sm:$0xff]  }
 0x763   :  { %v5845_v9 = vpop.eup %5844  ;;  %v2641_v4 = vadd.f32 %v2640_v51, %v2639_v48  ;;  %v2666_v50 = vmul.f32 %v5843_v33, %v6989_v47  ;;  %5852 = vrcp.f32 %v2636_v30  ;;  %v5595_v47 = vld [vmem:[%s7368_s28 + $0x8] sm:$0xff]   ;;  %v5286_v31 = vpop.f32.mrb[56].mxu1  ;;  %5335 = vmatpush3.bf16.msra.mxu0 %v5606_v52 }
 0x764   :  { %v5847_v6 = vpop.eup %5846  ;;  %v2669_v28 = vmul.f32 %v5845_v9, %v6995_v21  ;;  %v2256_v57 = vpop.f32.mrb[57].mxu1  ;;  %5336 = vmatprep.subr.bf16.mxu0 %v6153_v41  ;;  %v5607_v51 = vld [vmem:[%s7369_s1 + $0x8] sm:$0xff]  }
 0x765   :  { %v2642_v12 = vrot.slane %v2641_v4, 1  ;;  %v2667_v29 = vmul.f32 %v5847_v6, %v6999_v34  ;;  %v1070_v34 = vadd.f32 %v6588_v3, %v870_v62  ;;  %v5287_v48 = vpop.f32.mrb[58].mxu1  ;;  %v4934_v33 = vld [vmem:[#allocation14] ss:$0 sm:$0xff] }
 0x766   :  { %v2675_v8 = vpack.c.bf16 %v2669_v28, %v2668_v7  ;;  %v2259_v40 = vpop.f32.mrb[59].mxu1  ;;  %v2249_v9 = vadd.f32 %v5282_v54, %v4934_v33  ;;  %v2241_v30 = vadd.f32 %v4934_v33, %v2240_v55  ;;  %v2252_v6 = vadd.f32 %v5283_v35, %v4934_v33 }
 0x767   :  { %v2643_v49 = vadd.f32 %v2642_v12, %v2641_v4  ;;  %v2674_v63 = vpack.c.bf16 %v2667_v29, %v2666_v50  ;;  %v1077_v61 = vmul.f32 0.01, %v1070_v34  ;;  %vm1075_vm6 = vcmp.gt.f32.partialorder %v1070_v34, 0.0  ;;  %5337 = vmatpush3.bf16.msra.mxu0 %v5607_v51 }
 0x768   :  { %5342 = vmatprep.subr.bf16.mxu0 %v6153_v41  ;;  %v2244_v12 = vadd.f32 %v4934_v33, %v2243_v2  ;;  %v2257_v13 = vadd.f32 %v4934_v33, %v2256_v57  ;;  %v2260_v54 = vadd.f32 %v4934_v33, %v2259_v40 }
 0x769   :  { %5302 = vmatprep.mubr.msk.bf16.mxu1 %vm1718_vm14, %v2674_v63  ;;  %5854 = vrcp.f32 %v2643_v49  ;;  %v5849_v5 = vpop.eup %5848 }
 0x76a   :  { %5303 = vmatmul.mubr.msk.bf16.vlgmr.msra.gmra.mrb[60].mxu1 %vm1718_vm14, %v2675_v8  ;;  %v2672_v39 = vmul.f32 %v5849_v5, %v7005_v27  ;;  %v1079_v27 = vsel %vm1075_vm6, %v1070_v34, %v1077_v61 }
 0x76b   :  { %2982 = vmatpush1.bf16.msra.mxu1 %v5594_v17  ;;  %v2844_v16 = vpack.c.bf16 %v1079_v27, %v1079_v27 }
 0x76c   :  { %v5851_v21 = vpop.eup %5850  ;;  %2983 = vmatprep.subr.bf16.mxu1 %v6155_v38 }
 0x76d   :  { %v2673_v18 = vmul.f32 %v5851_v21, %v7013_v11  ;;  %v5853_v53 = vpop.eup %5852 }
 0x76e   :  { %v2670_v20 = vmul.f32 %v5853_v53, %v7007_v14  ;;  %v5599_v14 = vld [vmem:[%s7368_s28 + $0x28] sm:$0xff]  }
 0x76f   :  { %2984 = vmatpush1.bf16.msra.mxu1 %v5595_v47  ;;  %v2677_v43 = vpack.c.bf16 %v2673_v18, %v2672_v39 }
 0x770   :  { %2985 = vmatprep.subr.bf16.mxu1 %v6155_v38 }
 0x773   :  { %v5855_v1 = vpop.eup %5854  ;;  %2986 = vmatpush1.bf16.msra.mxu1 %v5596_v23 }
 0x774   :  { %v2671_v3 = vmul.f32 %v5855_v1, %v5839_v15  ;;  %2987 = vmatprep.subr.bf16.mxu1 %v6155_v38  ;;  %v1076_v15 = vmul.f32 0.01, %v1068_v37 }
 0x776   :  { %v2676_v11 = vpack.c.bf16 %v2671_v3, %v2670_v20 }
 0x777   :  { %2988 = vmatpush1.bf16.msra.mxu1 %v5597_v24 }
 0x778   :  { %5306 = vmatprep.mubr.msk.bf16.mxu1 %vm1718_vm14, %v2676_v11  ;;  %2989 = vmatprep.subr.bf16.mxu1 %v6155_v38 }
 0x779   :  { %5307 = vmatmul.mubr.msk.bf16.gmra.mrb[64].mxu1 %vm1718_vm14, %v2677_v43  ;;  %vm1074_vm14 = vcmp.gt.f32.partialorder %v1068_v37, 0.0 }
 0x77a   :  { %4964 = vmatprep.mubr.msk.bf16.mxu1 %vm2977_vm8, %v2844_v16  ;;  %v1078_v42 = vsel %vm1074_vm14, %v1068_v37, %v1076_v15  ;;  %v2268_v15 = vadd.f32 %v5287_v48, %v4934_v33 }
 0x77b   :  { %2990 = vmatpush1.bf16.msra.mxu1 %v5598_v22  ;;  %v2843_v59 = vpack.c.bf16 %v1078_v42, %v1078_v42 }
 0x77c   :  { %2991 = vmatprep.subr.bf16.mxu1 %v6155_v38 }
 0x77f   :  { %2992 = vmatpush1.bf16.msra.mxu1 %v5599_v14 }
 0x780   :  { %2993 = vmatprep.subr.bf16.mxu1 %v6155_v38 }
 0x783   :  { %2994 = vmatpush1.bf16.msra.mxu1 %v5600_v25  ;;  %v2265_v25 = vadd.f32 %v5286_v31, %v4934_v33 }
 0x784   :  { %2995 = vmatprep.subr.bf16.mxu1 %v6155_v38 }
 0x787   :  { %2996 = vmatpush1.bf16.msra.mxu1 %v5601_v56 }
 0x788   :  { %2997 = vmatprep.subr.bf16.mxu1 %v6155_v38 }
 0x78b   :  { %2998 = vmatpush1.bf16.msra.mxu1 %v5602_v60 }
 0x78c   :  { %2999 = vmatprep.subr.bf16.mxu1 %v6155_v38 }
 0x78f   :  { %3000 = vmatpush1.bf16.msra.mxu1 %v5603_v26 }
 0x790   :  { %3001 = vmatprep.subr.bf16.mxu1 %v6155_v38 }
 0x793   :  { %3002 = vmatpush1.bf16.msra.mxu1 %v5604_v10 }
 0x794   :  { %3003 = vmatprep.subr.bf16.mxu1 %v6155_v38 }
 0x797   :  { %3004 = vmatpush1.bf16.msra.mxu1 %v5605_v32 }
 0x79a   :  { %3014 = vmatmul.mubr.bf16.vlgmr.msra.gmra.mrb[68].mxu1 %v2843_v59 }
 0x83d   :  { %v5304_v4 = vpop.f32.mrb[60].mxu1 }
 0x83e   :  { %v2757_v7 = vmul.f32 %v5304_v4, %v2249_v9  ;;  %v2724_v28 = vpop.f32.mrb[61].mxu1 }
 0x83f   :  { %v2755_v50 = vmul.f32 %v2724_v28, %v2241_v30  ;;  %v5305_v29 = vpop.f32.mrb[62].mxu1 }
 0x840   :  { %v2777_v58 = vsel %vm1289_vm7, %v2757_v7, 0.0  ;;  %v2758_v8 = vmul.f32 %v5305_v29, %v2252_v6  ;;  %v2727_v49 = vpop.f32.mrb[63].mxu1 }
 0x841   :  { %v2778_v63 = vrot.slane %v2777_v58, 4  ;;  %v2763_v17 = vsel %vm1289_vm7, %v2755_v50, 0.0  ;;  %v2756_v62 = vmul.f32 %v2727_v49, %v2244_v12 }
 0x842   :  { %v2764_v5 = vrot.slane %v2763_v17, 4  ;;  %v2784_v47 = vsel %vm1289_vm7, %v2758_v8, 0.0 }
 0x843   :  { %v2779_v21 = vadd.f32 %v2778_v63, %v2777_v58  ;;  %v2785_v34 = vrot.slane %v2784_v47, 4  ;;  %v2770_v39 = vsel %vm1289_vm7, %v2756_v62, 0.0 }
 0x844   :  { %v2765_v18 = vadd.f32 %v2764_v5, %v2763_v17  ;;  %v2771_v43 = vrot.slane %v2770_v39, 4 }
 0x845   :  { %v2780_v23 = vrot.slane %v2779_v21, 2  ;;  %v2786_v53 = vadd.f32 %v2785_v34, %v2784_v47 }
 0x846   :  { %v2766_v61 = vrot.slane %v2765_v18, 2  ;;  %v2772_v1 = vadd.f32 %v2771_v43, %v2770_v39 }
 0x847   :  { %v2781_v24 = vadd.f32 %v2780_v23, %v2779_v21  ;;  %v2787_v20 = vrot.slane %v2786_v53, 2 }
 0x848   :  { %v2767_v3 = vadd.f32 %v2766_v61, %v2765_v18  ;;  %v2773_v27 = vrot.slane %v2772_v1, 2 }
 0x849   :  { %v2782_v11 = vrot.slane %v2781_v24, 1  ;;  %v2788_v22 = vadd.f32 %v2787_v20, %v2786_v53 }
 0x84a   :  { %v2768_v16 = vrot.slane %v2767_v3, 1  ;;  %v2774_v14 = vadd.f32 %v2773_v27, %v2772_v1 }
 0x84b   :  { %v2783_v56 = vadd.f32 %v2782_v11, %v2781_v24  ;;  %v2789_v60 = vrot.slane %v2788_v22, 1 }
 0x84c   :  { %v2769_v26 = vadd.f32 %v2768_v16, %v2767_v3  ;;  %v2775_v37 = vrot.slane %v2774_v14, 1  ;;  %v5308_v10 = vpop.f32.mrb[64].mxu1 }
 0x84d   :  { %v2790_v32 = vadd.f32 %v2789_v60, %v2788_v22  ;;  %v2761_v42 = vmul.f32 %v5308_v10, %v2265_v25  ;;  %v2740_v59 = vpop.f32.mrb[65].mxu1  ;;  %v3187_v51 = vpack.c.bf16 %v2783_v56, %v2783_v56 }
 0x84e   :  { %v3185_v55 = vpack.c.bf16 %v2769_v26, %v2769_v26  ;;  %v2776_v35 = vadd.f32 %v2775_v37, %v2774_v14  ;;  %v2759_v2 = vmul.f32 %v2740_v59, %v2257_v13  ;;  %v5309_v52 = vpop.f32.mrb[66].mxu1 }
 0x84f   :  { %v3188_v9 = vpack.c.bf16 %v2790_v32, %v2790_v32  ;;  %v2805_v30 = vsel %vm1289_vm7, %v2761_v42, 0.0  ;;  %v2762_v31 = vmul.f32 %v5309_v52, %v2268_v15  ;;  %v2743_v4 = vpop.f32.mrb[67].mxu1  ;;  %v3203_v58 = vunpack.c.l.b16 %v3187_v51  ;;  %v5609_v52 = vld [vmem:[%s7370_s25 + $0x8] sm:$0xff]  }
 0x850   :  { %v3186_v6 = vpack.c.bf16 %v2776_v35, %v2776_v35  ;;  %v2806_v57 = vrot.slane %v2805_v30, 4  ;;  %v2791_v7 = vsel %vm1289_vm7, %v2759_v2, 0.0  ;;  %v2760_v12 = vmul.f32 %v2743_v4, %v2260_v54  ;;  %v5608_v35 = vld [vmem:[%s7370_s25] sm:$0xff]  }
 0x851   :  { %v2792_v28 = vrot.slane %v2791_v7, 4  ;;  %v2812_v48 = vsel %vm1289_vm7, %v2762_v31, 0.0  ;;  %v3201_v50 = vunpack.c.l.b16 %v3185_v55  ;;  %v3204_v8 = vunpack.c.l.b16 %v3188_v9 }
 0x852   :  { %v3202_v40 = vunpack.c.l.b16 %v3186_v6  ;;  %v2807_v33 = vadd.f32 %v2806_v57, %v2805_v30  ;;  %v2813_v29 = vrot.slane %v2812_v48, 4  ;;  %v2798_v63 = vsel %vm1289_vm7, %v2760_v12, 0.0  ;;  %v5616_v12 = vld [vmem:[%s7371_s3 + $0x20] ss:$8 sps:$4 sm:$0xff]  }
 0x853   :  { %v2793_v49 = vadd.f32 %v2792_v28, %v2791_v7  ;;  %v2799_v47 = vrot.slane %v2798_v63, 4  ;;  %v3277_v31 = vpack.c.bf16 %v6870_v0, %v6870_v0  ;;  %v5612_v28 = vld [vmem:[%s7371_s3 + $0x4] ss:$8 sps:$4 sm:$0xff]   ;;  %v5613_v0 = vld [vmem:[%s7371_s3 + $0x10] ss:$8 sps:$4 sm:$0xff]  }
 0x854   :  { %v3209_v17 = vsel %vm3049_vm2, %v3202_v40, %v3201_v50  ;;  %v2808_v62 = vrot.slane %v2807_v33, 2  ;;  %v2814_v5 = vadd.f32 %v2813_v29, %v2812_v48  ;;  %v5615_v48 = vld [vmem:[%s7371_s3 + $0x14] ss:$8 sps:$4 sm:$0xff]   ;;  %v5619_v50 = vld [vmem:[%s7371_s3 + $0x30] ss:$8 sps:$4 sm:$0xff]  }
 0x855   :  { %v3210_v21 = vsel %vm3051_vm4, %v3203_v58, %v3209_v17  ;;  %v2794_v34 = vrot.slane %v2793_v49, 2  ;;  %v2800_v23 = vadd.f32 %v2799_v47, %v2798_v63  ;;  %v5622_v40 = vld [vmem:[%s7372_s0] ss:$8 sps:$4 sm:$0xff]   ;;  %v5627_v29 = vld [vmem:[%s7373_s4 + $0x4] ss:$8 sps:$4 sm:$0xff]  }
 0x856   :  { %v2809_v39 = vadd.f32 %v2808_v62, %v2807_v33  ;;  %v3211_v18 = vsel %vm3053_vm10, %v3204_v8, %v3210_v21  ;;  %v2815_v43 = vrot.slane %v2814_v5, 2  ;;  %v5624_v33 = vld [vmem:[%s7372_s0 + $0x4] ss:$8 sps:$4 sm:$0xff]   ;;  %v5630_v58 = vld [vmem:[%s7372_s0 + $0x14] ss:$8 sps:$4 sm:$0xff]  }
 0x857   :  { %v2795_v53 = vadd.f32 %v2794_v34, %v2793_v49  ;;  %v2801_v24 = vrot.slane %v2800_v23, 2  ;;  %3617 = vmatprep.subr.bf16.mxu1 %v5624_v33  ;;  %v5628_v8 = vld [vmem:[%s7372_s0 + $0x10] ss:$8 sps:$4 sm:$0xff]   ;;  %v5636_v49 = vld [vmem:[%s7372_s0 + $0x24] ss:$8 sps:$4 sm:$0xff]  }
 0x858   :  { %v2810_v61 = vrot.slane %v2809_v39, 1  ;;  %v2816_v1 = vadd.f32 %v2815_v43, %v2814_v5  ;;  %3618 = vmatpush1.bf16.msra.mxu1 %v5622_v40  ;;  %v5634_v63 = vld [vmem:[%s7372_s0 + $0x20] ss:$8 sps:$4 sm:$0xff]   ;;  %v5642_v17 = vld [vmem:[%s7372_s0 + $0x34] ss:$8 sps:$4 sm:$0xff]  }
 0x859   :  { %v2796_v20 = vrot.slane %v2795_v53, 1  ;;  %v2802_v27 = vadd.f32 %v2801_v24, %v2800_v23  ;;  %3619 = vmatprep.subr.bf16.mxu1 %v5630_v58  ;;  %v5640_v62 = vld [vmem:[%s7372_s0 + $0x30] ss:$8 sps:$4 sm:$0xff]   ;;  %v5648_v5 = vld [vmem:[%s7372_s0 + $0x44] ss:$8 sps:$4 sm:$0xff]  }
 0x85a   :  { %v2817_v3 = vrot.slane %v2816_v1, 1  ;;  %v2811_v11 = vadd.f32 %v2810_v61, %v2809_v39  ;;  %v5646_v47 = vld [vmem:[%s7372_s0 + $0x40] ss:$8 sps:$4 sm:$0xff]   ;;  %v5654_v21 = vld [vmem:[%s7372_s0 + $0x54] ss:$8 sps:$4 sm:$0xff]  }
 0x85b   :  { %v2797_v22 = vadd.f32 %v2796_v20, %v2795_v53  ;;  %v2803_v14 = vrot.slane %v2802_v27, 1  ;;  %v5652_v34 = vld [vmem:[%s7372_s0 + $0x50] ss:$8 sps:$4 sm:$0xff]   ;;  %v5660_v39 = vld [vmem:[%s7372_s0 + $0x64] ss:$8 sps:$4 sm:$0xff]  }
 0x85c   :  { %v2818_v16 = vadd.f32 %v2817_v3, %v2816_v1  ;;  %v3191_v60 = vpack.c.bf16 %v2811_v11, %v2811_v11  ;;  %3620 = vmatpush1.bf16.msra.mxu1 %v5628_v8  ;;  %v5666_v43 = vld [vmem:[%s7372_s0 + $0x74] ss:$8 sps:$4 sm:$0xff]   ;;  %v5664_v23 = vld [vmem:[%s7372_s0 + $0x70] ss:$8 sps:$4 sm:$0xff]   ;;  %v5672_v53 = vld [vmem:[%s7372_s0 + $0x84] ss:$8 sps:$4 sm:$0xff]  }
 0x85d   :  { %v3189_v25 = vpack.c.bf16 %v2797_v22, %v2797_v22  ;;  %v2804_v56 = vadd.f32 %v2803_v14, %v2802_v27  ;;  %3621 = vmatprep.subr.bf16.mxu1 %v5636_v49  ;;  %v5670_v61 = vld [vmem:[%s7372_s0 + $0x80] ss:$8 sps:$4 sm:$0xff]   ;;  %v5678_v1 = vld [vmem:[%s7372_s0 + $0x94] ss:$8 sps:$4 sm:$0xff]   ;;  %v5676_v24 = vld [vmem:[%s7372_s0 + $0x90] ss:$8 sps:$4 sm:$0xff]  }
 0x85e   :  { %v3192_v26 = vpack.c.bf16 %v2818_v16, %v2818_v16  ;;  %v3207_v32 = vunpack.c.l.b16 %v3191_v60  ;;  %v4977_v14 = vld [vmem:[#allocation16] ss:$0 sm:$0xff]  ;;  %v5693_v33 = vld [vmem:[%s7373_s4 + $0xb4] ss:$8 sps:$4 sm:$0xff]   ;;  %v5696_v58 = vld [vmem:[%s7374_s2 + $0x4] ss:$8 sps:$4 sm:$0xff]  }
 0x85f   :  { %v3205_v13 = vunpack.c.l.b16 %v3189_v25  ;;  %v3190_v37 = vpack.c.bf16 %v2804_v56, %v2804_v56  ;;  %v5688_v40 = vld [vmem:[%s7372_s0 + $0xb0] ss:$8 sps:$4 sm:$0xff]   ;;  %v3354_v8 = vld [vmem:[%s7375_s7] sm:$0x3] }
 0x860   :  { %v3208_v42 = vunpack.c.l.b16 %v3192_v26  ;;  %3622 = vmatpush1.bf16.msra.mxu1 %v5634_v63  ;;  %v3359_v49 = vrot.slane %v3354_v8, %v6564_v44  ;;  %v3363_v63 = vrot.slane %v3354_v8, %v6568_v46  ;;  %v3879_v8 = vld [vmem:[%s7378_s30] sm:$0x3] }
 0x861   :  { %v3212_v10 = vsel %vm3055_vm11, %v3205_v13, %v3211_v18  ;;  %v3206_v15 = vunpack.c.l.b16 %v3190_v37  ;;  %3623 = vmatprep.subr.bf16.mxu1 %v5642_v17  ;;  %v5658_v18 = vld [vmem:[%s7372_s0 + $0x60] ss:$8 sps:$4 sm:$0xff]   ;;  %vm4130_vm11 = vcmask 1043456  }
 0x863   :  { %v3213_v59 = vsel %vm3057_vm13, %v3206_v15, %v3212_v10  ;;  %v5625_v15 = vld [vmem:[%s7373_s4] ss:$8 sps:$4 sm:$0xff]  }
 0x864   :  { %v3214_v54 = vsel %vm3059_vm15, %v3207_v32, %v3213_v59  ;;  %3624 = vmatpush1.bf16.msra.mxu1 %v5640_v62  ;;  %v5631_v59 = vld [vmem:[%s7373_s4 + $0x10] ss:$8 sps:$4 sm:$0xff]  }
 0x865   :  { %v3215_v55 = vsel %vm3061_vm0, %v3208_v42, %v3214_v54  ;;  %3625 = vmatprep.subr.bf16.mxu1 %v5648_v5  ;;  %v5633_v42 = vld [vmem:[%s7373_s4 + $0x14] ss:$8 sps:$4 sm:$0xff]   ;;  %v5639_v54 = vld [vmem:[%s7373_s4 + $0x24] ss:$8 sps:$4 sm:$0xff]   ;;  %vm4112_vm0 = vcmask 64512  }
 0x866   :  { %v3216_v2 = vpack.c.b16 %v3215_v55, %v3215_v55  ;;  %v5637_v55 = vld [vmem:[%s7373_s4 + $0x20] ss:$8 sps:$4 sm:$0xff]  }
 0x868   :  { %5339 = vmatmul.mubr.msk.bf16.vlgmr.msra.gmra.mrb[32].mxu0 %vm1289_vm7, %v3216_v2  ;;  %3626 = vmatpush1.bf16.msra.mxu1 %v5646_v47  ;;  %v5643_v2 = vld [vmem:[%s7373_s4 + $0x30] ss:$8 sps:$4 sm:$0xff]  }
 0x869   :  { %5343 = vmatpush3.bf16.msra.mxu0 %v5608_v35  ;;  %5346 = vmatprep.mubr.msk.bf16.mxu0 %vm6154_vm3, %v6153_v41  ;;  %v5645_v35 = vld [vmem:[%s7373_s4 + $0x34] ss:$8 sps:$4 sm:$0xff]  }
 0x86a   :  { %5344 = vmatprep.subr.bf16.mxu0 %v6153_v41  ;;  %3627 = vmatprep.subr.bf16.mxu1 %v5654_v21 }
 0x86c   :  { %3628 = vmatpush1.bf16.msra.mxu1 %v5652_v34 }
 0x86d   :  { %v3015_v51 = vpop.f32.mrb[68].mxu1  ;;  %5345 = vmatpush3.bf16.msra.mxu0 %v5609_v52  ;;  %3629 = vmatprep.subr.bf16.mxu1 %v5660_v39  ;;  %v5651_v52 = vld [vmem:[%s7373_s4 + $0x44] ss:$8 sps:$4 sm:$0xff]  }
 0x86e   :  { %v3016_v9 = vadd.f32 %v3015_v51, %v6975_v45  ;;  %v3017_v30 = vpop.f32.mrb[69].mxu1  ;;  %v5610_v45 = vld [vmem:[%s7371_s3] ss:$8 sps:$4 sm:$0xff]   ;;  %3409 = vmatprep.subr.bf16.mxu0 %v5612_v28 }
 0x86f   :  { %v3018_v4 = vpop.f32.mrb[70].mxu1  ;;  %v5649_v51 = vld [vmem:[%s7373_s4 + $0x40] ss:$8 sps:$4 sm:$0xff]   ;;  %v5655_v30 = vld [vmem:[%s7373_s4 + $0x50] ss:$8 sps:$4 sm:$0xff]  }
 0x870   :  { %v3119_v6 = vadd.f32 %v6984_v19, %v3016_v9  ;;  %v3019_v57 = vpop.f32.mrb[71].mxu1  ;;  %5347 = vmatmul.mubr.msk.bf16.vlgmr.msra.gmra.mrb[36].mxu0 %vm1289_vm7, %v3277_v31  ;;  %v5618_v19 = vld [vmem:[%s7371_s3 + $0x24] ss:$8 sps:$4 sm:$0xff]   ;;  %3630 = vmatpush1.bf16.msra.mxu1 %v5658_v18  ;;  %v5657_v9 = vld [vmem:[%s7373_s4 + $0x54] ss:$8 sps:$4 sm:$0xff]  }
 0x871   :  { %3441 = vmatprep.mubr.bf16.mxu0 %v6155_v38  ;;  %3410 = vmatpush1.bf16.msra.mxu0 %v5610_v45  ;;  %v5663_v31 = vld [vmem:[%s7373_s4 + $0x64] ss:$8 sps:$4 sm:$0xff]   ;;  %v5661_v4 = vld [vmem:[%s7373_s4 + $0x60] ss:$8 sps:$4 sm:$0xff]   ;;  %v5667_v57 = vld [vmem:[%s7373_s4 + $0x70] ss:$8 sps:$4 sm:$0xff]  }
 0x872   :  { %v3180_v7 = vadd.f32 %v6993_v36, %v3119_v6  ;;  %3411 = vmatprep.subr.bf16.mxu0 %v5615_v48  ;;  %v5621_v36 = vld [vmem:[%s7371_s3 + $0x34] ss:$8 sps:$4 sm:$0xff]   ;;  %3631 = vmatprep.subr.bf16.mxu1 %v5666_v43  ;;  %v5673_v28 = vld [vmem:[%s7373_s4 + $0x80] ss:$8 sps:$4 sm:$0xff]   ;;  %v5684_v48 = vld [vmem:[%s7372_s0 + $0xa4] ss:$8 sps:$4 sm:$0xff]  }
 0x873   :  { %v5669_v6 = vld [vmem:[%s7373_s4 + $0x74] ss:$8 sps:$4 sm:$0xff]  }
 0x874   :  { %3632 = vmatpush1.bf16.msra.mxu1 %v5664_v23  ;;  %v5681_v45 = vld [vmem:[%s7373_s4 + $0x94] ss:$8 sps:$4 sm:$0xff]  }
 0x875   :  { %3412 = vmatpush1.bf16.msra.mxu0 %v5613_v0  ;;  %3633 = vmatprep.subr.bf16.mxu1 %v5672_v53  ;;  %v5679_v0 = vld [vmem:[%s7373_s4 + $0x90] ss:$8 sps:$4 sm:$0xff]  }
 0x876   :  { %3413 = vmatprep.subr.bf16.mxu0 %v5618_v19  ;;  %v5682_v19 = vld [vmem:[%s7372_s0 + $0xa0] ss:$8 sps:$4 sm:$0xff]  }
 0x878   :  { %3634 = vmatpush1.bf16.msra.mxu1 %v5670_v61  ;;  %v5694_v61 = vld [vmem:[%s7374_s2] ss:$8 sps:$4 sm:$0xff]  }
 0x879   :  { %3414 = vmatpush1.bf16.msra.mxu0 %v5616_v12  ;;  %3635 = vmatprep.subr.bf16.mxu1 %v5678_v1  ;;  %v5687_v12 = vld [vmem:[%s7373_s4 + $0xa4] ss:$8 sps:$4 sm:$0xff]  }
 0x87a   :  { %3415 = vmatprep.subr.bf16.mxu0 %v5621_v36  ;;  %v5685_v36 = vld [vmem:[%s7373_s4 + $0xa0] ss:$8 sps:$4 sm:$0xff]  }
 0x87c   :  { %3636 = vmatpush1.bf16.msra.mxu1 %v5676_v24  ;;  %v5699_v24 = vld [vmem:[%s7374_s2 + $0x14] ss:$8 sps:$4 sm:$0xff]  }
 0x87d   :  { %3416 = vmatpush1.bf16.msra.mxu0 %v5619_v50  ;;  %3637 = vmatprep.subr.bf16.mxu1 %v5684_v48  ;;  %v5690_v50 = vld [vmem:[%s7372_s0 + $0xb4] ss:$8 sps:$4 sm:$0xff]  }
 0x87e   :  { %3814 = vmatprep.subr.bf16.mxu0 %v5627_v29  ;;  %v5691_v29 = vld [vmem:[%s7373_s4 + $0xb0] ss:$8 sps:$4 sm:$0xff]  }
 0x880   :  { %3638 = vmatpush1.bf16.msra.mxu1 %v5682_v19 }
 0x881   :  { %3639 = vmatprep.subr.bf16.mxu1 %v5690_v50 }
 0x884   :  { %3640 = vmatpush1.bf16.msra.mxu1 %v5688_v40 }
 0x885   :  { %4011 = vmatprep.subr.bf16.mxu1 %v5696_v58 }
 0x93b   :  { %v3266_v20 = vpop.f32.mrb[32].mxu0 }
 0x93c   :  { %v3272_v3 = vadd.f32 %v3266_v20, %v3180_v7  ;;  %v5340_v27 = vpop.f32.mrb[33].mxu0  ;;  %v5675_v7 = vld [vmem:[%s7373_s4 + $0x84] ss:$8 sps:$4 sm:$0xff]   ;;  %v5697_v20 = vld [vmem:[%s7374_s2 + $0x10] ss:$8 sps:$4 sm:$0xff]  }
 0x93d   :  { %v3269_v11 = vpop.f32.mrb[34].mxu0  ;;  %v5700_v27 = vld [vmem:[%s7374_s2 + $0x20] ss:$8 sps:$4 sm:$0xff]  }
 0x93e   :  { %v5341_v22 = vpop.f32.mrb[35].mxu0  ;;  %v5705_v11 = vld [vmem:[%s7374_s2 + $0x34] ss:$8 sps:$4 sm:$0xff]  }
 0x93f   :  { %v5703_v22 = vld [vmem:[%s7374_s2 + $0x30] ss:$8 sps:$4 sm:$0xff]  }
 0x943   :  { %v3327_v16 = vpop.f32.mrb[36].mxu0 }
 0x944   :  { %v3333_v25 = vadd.f32 %v3327_v16, %v3272_v3  ;;  %v5348_v56 = vpop.f32.mrb[37].mxu0  ;;  %v5702_v3 = vld [vmem:[%s7374_s2 + $0x24] ss:$8 sps:$4 sm:$0xff]  }
 0x945   :  { %v3330_v60 = vpop.f32.mrb[38].mxu0  ;;  %v5708_v16 = vld [vmem:[%s7374_s2 + $0x44] ss:$8 sps:$4 sm:$0xff]   ;;  %v5709_v56 = vld [vmem:[%s7374_s2 + $0x50] ss:$8 sps:$4 sm:$0xff]  }
 0x946   :  { %v3341_v13 = vadd.f32 %v4977_v14, %v3333_v25  ;;  %v5349_v26 = vpop.f32.mrb[39].mxu0  ;;  %v5706_v14 = vld [vmem:[%s7374_s2 + $0x40] ss:$8 sps:$4 sm:$0xff]   ;;  %v5711_v25 = vld [vmem:[%s7374_s2 + $0x54] ss:$8 sps:$4 sm:$0xff]  }
 0x947   :  { %v5714_v60 = vld [vmem:[%s7374_s2 + $0x64] ss:$8 sps:$4 sm:$0xff]   ;;  %v5717_v26 = vld [vmem:[%s7374_s2 + $0x74] ss:$8 sps:$4 sm:$0xff]  }
 0x948   :  { %vm3342_vm2 = vcmp.gt.f32.partialorder %v3341_v13, 0.0  ;;  %v3343_v37 = vmul.f32 0.01, %v3341_v13 }
 0x94a   :  { %v3344_v10 = vsel %vm3342_vm2, %v3341_v13, %v3343_v37  ;;  %v5712_v13 = vld [vmem:[%s7374_s2 + $0x60] ss:$8 sps:$4 sm:$0xff]   ;;  %v5715_v37 = vld [vmem:[%s7374_s2 + $0x70] ss:$8 sps:$4 sm:$0xff]  }
 0x94b   :  { %v3353_v32 = vpack.c.bf16 %v3344_v10, %v3344_v10  ;;  %v5720_v10 = vld [vmem:[%s7374_s2 + $0x84] ss:$8 sps:$4 sm:$0xff]  }
 0x94d   :  { %4986 = vmatmul.mubr.msk.bf16.vlgmr.msra.gmra.mrb[40].mxu0 %vm2977_vm8, %v3353_v32  ;;  %v5723_v32 = vld [vmem:[%s7374_s2 + $0x94] ss:$8 sps:$4 sm:$0xff]  }
 0x94e   :  { %3815 = vmatpush1.bf16.msra.mxu0 %v5625_v15  ;;  %v5718_v15 = vld [vmem:[%s7374_s2 + $0x80] ss:$8 sps:$4 sm:$0xff]  }
 0x94f   :  { %3816 = vmatprep.subr.bf16.mxu0 %v5633_v42  ;;  %v5721_v42 = vld [vmem:[%s7374_s2 + $0x90] ss:$8 sps:$4 sm:$0xff]  }
 0x952   :  { %3817 = vmatpush1.bf16.msra.mxu0 %v5631_v59  ;;  %v5726_v59 = vld [vmem:[%s7374_s2 + $0xa4] ss:$8 sps:$4 sm:$0xff]  }
 0x953   :  { %3818 = vmatprep.subr.bf16.mxu0 %v5639_v54  ;;  %v5724_v54 = vld [vmem:[%s7374_s2 + $0xa0] ss:$8 sps:$4 sm:$0xff]  }
 0x956   :  { %3819 = vmatpush1.bf16.msra.mxu0 %v5637_v55  ;;  %v5729_v55 = vld [vmem:[%s7374_s2 + $0xb4] ss:$8 sps:$4 sm:$0xff]  }
 0x957   :  { %3820 = vmatprep.subr.bf16.mxu0 %v5645_v35  ;;  %v5727_v35 = vld [vmem:[%s7374_s2 + $0xb0] ss:$8 sps:$4 sm:$0xff]  }
 0x95a   :  { %3821 = vmatpush1.bf16.msra.mxu0 %v5643_v2  ;;  %v3682_v2 = vld [vmem:[%s7376_s13] sm:$0x3] }
 0x95b   :  { %3822 = vmatprep.subr.bf16.mxu0 %v5651_v52  ;;  %v3482_v52 = vld [vmem:[%s7377_s10] sm:$0x3] }
 0x95e   :  { %3823 = vmatpush1.bf16.msra.mxu0 %v5649_v51  ;;  %v3687_v51 = vrot.slane %v3682_v2, %v6564_v44 }
 0x95f   :  { %3824 = vmatprep.subr.bf16.mxu0 %v5657_v9  ;;  %v3491_v9 = vrot.slane %v3482_v52, %v6568_v46 }
 0x962   :  { %3825 = vmatpush1.bf16.msra.mxu0 %v5655_v30  ;;  %v3691_v30 = vrot.slane %v3682_v2, %v6568_v46  ;;  %v5736_v2 = vld [vmem:[%s7380_s17 + $0x20] ss:$8 sps:$4 sm:$0xff]  }
 0x963   :  { %3826 = vmatprep.subr.bf16.mxu0 %v5663_v31 }
 0x966   :  { %3827 = vmatpush1.bf16.msra.mxu0 %v5661_v4 }
 0x967   :  { %3828 = vmatprep.subr.bf16.mxu0 %v5669_v6 }
 0x96a   :  { %3829 = vmatpush1.bf16.msra.mxu0 %v5667_v57 }
 0x96b   :  { %3830 = vmatprep.subr.bf16.mxu0 %v5675_v7 }
 0x96e   :  { %3831 = vmatpush1.bf16.msra.mxu0 %v5673_v28 }
 0x96f   :  { %3832 = vmatprep.subr.bf16.mxu0 %v5681_v45 }
 0x972   :  { %3833 = vmatpush1.bf16.msra.mxu0 %v5679_v0 }
 0x973   :  { %3834 = vmatprep.subr.bf16.mxu0 %v5687_v12 }
 0x976   :  { %3835 = vmatpush1.bf16.msra.mxu0 %v5685_v36  ;;  %v3487_v36 = vrot.slane %v3482_v52, %v6564_v44  ;;  %v5741_v52 = vld [vmem:[%s7380_s17 + $0x34] ss:$8 sps:$4 sm:$0xff]  }
 0x977   :  { %3836 = vmatprep.subr.bf16.mxu0 %v5693_v33 }
 0x97a   :  { %3837 = vmatpush1.bf16.msra.mxu0 %v5691_v29 }
 0xa20   :  { %v3443_v17 = vpop.f32.mrb[40].mxu0 }
 0xa21   :  { %v3444_v62 = vadd.f32 %v3443_v17, %v3359_v49  ;;  %v3445_v5 = vpop.f32.mrb[41].mxu0  ;;  %v3884_v49 = vrot.slane %v3879_v8, %v6564_v44 }
 0xa22   :  { %v3446_v47 = vadd.f32 %v3445_v5, %v3363_v63  ;;  %v3447_v21 = vpop.f32.mrb[42].mxu0  ;;  %v3888_v63 = vrot.slane %v3879_v8, %v6568_v46  ;;  %v5781_v8 = vld [vmem:[%s7381_s14 + $0x18] sm:$0xff]  }
 0xa23   :  { %vm3450_vm4 = vcmp.gt.f32.partialorder %v3444_v62, 0.0  ;;  %v3452_v34 = vmul.f32 0.01, %v3444_v62  ;;  %v3448_v39 = vpop.f32.mrb[43].mxu0 }
 0xa24   :  { %vm3451_vm10 = vcmp.gt.f32.partialorder %v3446_v47, 0.0  ;;  %v3453_v18 = vmul.f32 0.01, %v3446_v47 }
 0xa25   :  { %v3454_v43 = vsel %vm3450_vm4, %v3444_v62, %v3452_v34 }
 0xa26   :  { %v3455_v23 = vsel %vm3451_vm10, %v3446_v47, %v3453_v18  ;;  %v7154_v1 = vpack.c.bf16 %v3454_v43, %v3454_v43 }
 0xa27   :  { %v7151_v53 = vpack.c.bf16 %v3455_v23, %v3455_v23  ;;  %v4103_v23 = vld [vmem:[%s7379_s9] sm:$0x1] }
 0xa28   :  { %vm4104_vm13 = vcmp.gt.f32.partialorder %v4103_v23, 0.0 }
 0xa29   :  { %5011 = vmatprep.mubr.msk.bf16.mxu1 %vm2977_vm8, %v7151_v53  ;;  %5036 = vmatprep.mubr.msk.bf16.mxu0 %vm2977_vm8, %v7151_v53 }
 0xa2a   :  { %3650 = vmatmul.mubr.bf16.vlgmr.msra.gmra.mrb[72].mxu1 %v7154_v1  ;;  %3847 = vmatmul.mubr.bf16.vlgmr.msra.gmra.mrb[44].mxu0 %v7154_v1 }
 0xa2b   :  { %4012 = vmatpush1.bf16.msra.mxu1 %v5694_v61  ;;  %5061 = vmatprep.mubr.msk.bf16.mxu1 %vm2977_vm8, %v7151_v53  ;;  %v4105_v61 = vsel %vm4104_vm13, 1, %v6155_v38 }
 0xa2c   :  { %4013 = vmatprep.subr.bf16.mxu1 %v5699_v24  ;;  %v4109_v24 = vrot.slane %v4105_v61, %v6564_v44 }
 0xa2e   :  { %vm4110_vm15 = vcmp.eq.s32.totalorder %v4109_v24, 1  ;;  %v5767_v24 = vld [vmem:[%s7382_s19 + $0x8] sm:$0xff]  }
 0xa2f   :  { %4014 = vmatpush1.bf16.msra.mxu1 %v5697_v20 }
 0xa30   :  { %4015 = vmatprep.subr.bf16.mxu1 %v5702_v3 }
 0xa33   :  { %4016 = vmatpush1.bf16.msra.mxu1 %v5700_v27 }
 0xa34   :  { %4017 = vmatprep.subr.bf16.mxu1 %v5705_v11 }
 0xa37   :  { %4018 = vmatpush1.bf16.msra.mxu1 %v5703_v22 }
 0xa38   :  { %4019 = vmatprep.subr.bf16.mxu1 %v5708_v16 }
 0xa3b   :  { %4020 = vmatpush1.bf16.msra.mxu1 %v5706_v14 }
 0xa3c   :  { %4021 = vmatprep.subr.bf16.mxu1 %v5711_v25 }
 0xa3f   :  { %4022 = vmatpush1.bf16.msra.mxu1 %v5709_v56 }
 0xa40   :  { %4023 = vmatprep.subr.bf16.mxu1 %v5714_v60 }
 0xa43   :  { %4024 = vmatpush1.bf16.msra.mxu1 %v5712_v13 }
 0xa44   :  { %4025 = vmatprep.subr.bf16.mxu1 %v5717_v26 }
 0xa47   :  { %4026 = vmatpush1.bf16.msra.mxu1 %v5715_v37  ;;  %v5732_v37 = vld [vmem:[%s7380_s17 + $0x4] ss:$8 sps:$4 sm:$0xff]  }
 0xa48   :  { %4027 = vmatprep.subr.bf16.mxu1 %v5720_v10 }
 0xa4b   :  { %4028 = vmatpush1.bf16.msra.mxu1 %v5718_v15 }
 0xa4c   :  { %4029 = vmatprep.subr.bf16.mxu1 %v5723_v32 }
 0xa4f   :  { %4030 = vmatpush1.bf16.msra.mxu1 %v5721_v42  ;;  %v5730_v42 = vld [vmem:[%s7380_s17] ss:$8 sps:$4 sm:$0xff]  }
 0xa50   :  { %4031 = vmatprep.subr.bf16.mxu1 %v5726_v59 }
 0xa53   :  { %4032 = vmatpush1.bf16.msra.mxu1 %v5724_v54  ;;  %v5735_v54 = vld [vmem:[%s7380_s17 + $0x14] ss:$8 sps:$4 sm:$0xff]  }
 0xa54   :  { %4033 = vmatprep.subr.bf16.mxu1 %v5729_v55  ;;  %v5733_v55 = vld [vmem:[%s7380_s17 + $0x10] ss:$8 sps:$4 sm:$0xff]  }
 0xa57   :  { %4034 = vmatpush1.bf16.msra.mxu1 %v5727_v35  ;;  %v5738_v35 = vld [vmem:[%s7380_s17 + $0x24] ss:$8 sps:$4 sm:$0xff]  }
 0xa58   :  { %4505 = vmatprep.subr.bf16.mxu1 %v6155_v38 }
 0xa5a   :  { %4044 = vmatmul.mubr.bf16.vlgmr.msra.gmra.mrb[76].mxu1 %v7154_v1 }
 0xafd   :  { %v3651_v31 = vpop.f32.mrb[72].mxu1  ;;  %v3848_v4 = vpop.f32.mrb[44].mxu0 }
 0xafe   :  { %v3849_v6 = vadd.f32 %v3848_v4, %v3687_v51  ;;  %v3653_v57 = vpop.f32.mrb[73].mxu1  ;;  %v3850_v7 = vpop.f32.mrb[45].mxu0  ;;  %v3652_v29 = vadd.f32 %v3651_v31, %v3487_v36  ;;  %v5739_v51 = vld [vmem:[%s7380_s17 + $0x30] ss:$8 sps:$4 sm:$0xff]   ;;  %v5747_v31 = vld [vmem:[%s7380_s17 + $0x54] ss:$8 sps:$4 sm:$0xff]  }
 0xaff   :  { %v3654_v28 = vadd.f32 %v3653_v57, %v3491_v9  ;;  %v3851_v45 = vadd.f32 %v3850_v7, %v3691_v30  ;;  %v3655_v0 = vpop.f32.mrb[74].mxu1  ;;  %v3852_v48 = vpop.f32.mrb[46].mxu0  ;;  %v5744_v9 = vld [vmem:[%s7380_s17 + $0x44] ss:$8 sps:$4 sm:$0xff]   ;;  %v5742_v30 = vld [vmem:[%s7380_s17 + $0x40] ss:$8 sps:$4 sm:$0xff]  }
 0xb00   :  { %v3656_v19 = vpop.f32.mrb[75].mxu1  ;;  %v3853_v12 = vpop.f32.mrb[47].mxu0  ;;  %v4054_v33 = vpack.c.bf16 %v3849_v6, %v3849_v6  ;;  %v4052_v58 = vpack.c.bf16 %v3652_v29, %v3652_v29  ;;  %v5745_v4 = vld [vmem:[%s7380_s17 + $0x50] ss:$8 sps:$4 sm:$0xff]   ;;  %v5750_v6 = vld [vmem:[%s7380_s17 + $0x64] ss:$8 sps:$4 sm:$0xff]  }
 0xb01   :  { %v4053_v50 = vpack.c.bf16 %v3654_v28, %v3654_v28  ;;  %v4055_v40 = vpack.c.bf16 %v3851_v45, %v3851_v45  ;;  %v5748_v57 = vld [vmem:[%s7380_s17 + $0x60] ss:$8 sps:$4 sm:$0xff]   ;;  %v5753_v7 = vld [vmem:[%s7380_s17 + $0x74] ss:$8 sps:$4 sm:$0xff]   ;;  %v5751_v28 = vld [vmem:[%s7380_s17 + $0x70] ss:$8 sps:$4 sm:$0xff]  }
 0xb02   :  { %v5756_v45 = vld [vmem:[%s7380_s17 + $0x84] ss:$8 sps:$4 sm:$0xff]   ;;  %v5754_v0 = vld [vmem:[%s7380_s17 + $0x80] ss:$8 sps:$4 sm:$0xff]   ;;  %v5759_v48 = vld [vmem:[%s7380_s17 + $0x94] ss:$8 sps:$4 sm:$0xff]  }
 0xb03   :  { %5062 = vmatprep.subr.msk.bf16.mxu0 %vm2977_vm8, %v4055_v40  ;;  %5063 = vmatprep.mubr.msk.bf16.mxu0 %vm2977_vm8, %v4053_v50  ;;  %v5757_v19 = vld [vmem:[%s7380_s17 + $0x90] ss:$8 sps:$4 sm:$0xff]   ;;  %v5762_v12 = vld [vmem:[%s7380_s17 + $0xa4] ss:$8 sps:$4 sm:$0xff]   ;;  %v5760_v36 = vld [vmem:[%s7380_s17 + $0xa0] ss:$8 sps:$4 sm:$0xff]  }
 0xb04   :  { %4063 = vmatpush1.bf16.xpose.msra.mxu0 %v4054_v33  ;;  %v5765_v50 = vld [vmem:[%s7380_s17 + $0xb4] ss:$8 sps:$4 sm:$0xff]   ;;  %v5763_v40 = vld [vmem:[%s7380_s17 + $0xb0] ss:$8 sps:$4 sm:$0xff]   ;;  %v5778_v33 = vld [vmem:[%s7381_s14] sm:$0xff]  }
 0xb05   :  { %4506 = vmatpush1.bf16.msra.mxu1 %v5778_v33  ;;  %v5779_v29 = vld [vmem:[%s7381_s14 + $0x8] sm:$0xff]  }
 0xb06   :  { %4507 = vmatprep.subr.bf16.mxu1 %v6155_v38 }
 0xb09   :  { %4508 = vmatpush1.bf16.msra.mxu1 %v5779_v29 }
 0xb0a   :  { %4509 = vmatprep.subr.bf16.mxu1 %v6155_v38 }
 0xb0b   :  { %4095 = vmatmul.mubr.bf16.vlgmr.msra.gmra.mrb[48].mxu0 %v4052_v58  ;;  %v5780_v58 = vld [vmem:[%s7381_s14 + $0x10] sm:$0xff]  }
 0xb0c   :  { %4169 = vmatprep.mubr.bf16.mxu0 %v6155_v38 }
 0xb0d   :  { %4510 = vmatpush1.bf16.msra.mxu1 %v5780_v58 }
 0xb0e   :  { %4511 = vmatprep.subr.bf16.mxu1 %v6155_v38 }
 0xb11   :  { %4512 = vmatpush1.bf16.msra.mxu1 %v5781_v8 }
 0xb12   :  { %4513 = vmatprep.subr.bf16.mxu1 %v6155_v38 }
 0xb2d   :  { %v4045_v17 = vpop.f32.mrb[76].mxu1 }
 0xb2e   :  { %v4046_v62 = vadd.f32 %v4045_v17, %v3884_v49  ;;  %v4047_v5 = vpop.f32.mrb[77].mxu1  ;;  %v5782_v49 = vld [vmem:[%s7381_s14 + $0x20] sm:$0xff]   ;;  %v5784_v17 = vld [vmem:[%s7381_s14 + $0x30] sm:$0xff]  }
 0xb2f   :  { %v4048_v47 = vadd.f32 %v4047_v5, %v3888_v63  ;;  %v4049_v21 = vpop.f32.mrb[78].mxu1  ;;  %4514 = vmatpush1.bf16.msra.mxu1 %v5782_v49  ;;  %v5783_v63 = vld [vmem:[%s7381_s14 + $0x28] sm:$0xff]   ;;  %v5786_v5 = vld [vmem:[%s7381_s14 + $0x40] sm:$0xff]  }
 0xb30   :  { %v4125_v34 = vpack.c.bf16 %v4046_v62, %v4046_v62  ;;  %v4050_v39 = vpop.f32.mrb[79].mxu1  ;;  %4515 = vmatprep.subr.bf16.mxu1 %v6155_v38  ;;  %v5785_v62 = vld [vmem:[%s7381_s14 + $0x38] sm:$0xff]  }
 0xb31   :  { %v4126_v18 = vpack.c.bf16 %v4048_v47, %v4048_v47  ;;  %v5787_v47 = vld [vmem:[%s7381_s14 + $0x48] sm:$0xff]  }
 0xb32   :  { %v4132_v43 = vsel %vm4130_vm11, %v4125_v34, 0 }
 0xb33   :  { %5064 = vmatprep.subr.msk.bf16.mxu0 %vm4130_vm11, %v4126_v18  ;;  %4516 = vmatpush1.bf16.msra.mxu1 %v5783_v63 }
 0xb34   :  { %4138 = vmatpush1.bf16.msra.mxu0 %v4132_v43  ;;  %4517 = vmatprep.subr.bf16.mxu1 %v6155_v38  ;;  %v5766_v43 = vld [vmem:[%s7382_s19] sm:$0xff]  }
 0xb35   :  { %4339 = vmatprep.subr.bf16.mxu0 %v5732_v37 }
 0xb37   :  { %4518 = vmatpush1.bf16.msra.mxu1 %v5784_v17 }
 0xb38   :  { %4519 = vmatprep.subr.bf16.mxu1 %v6155_v38 }
 0xb3b   :  { %4520 = vmatpush1.bf16.msra.mxu1 %v5785_v62 }
 0xb3c   :  { %4521 = vmatprep.subr.bf16.mxu1 %v6155_v38 }
 0xb3f   :  { %4522 = vmatpush1.bf16.msra.mxu1 %v5786_v5 }
 0xb40   :  { %4523 = vmatprep.subr.bf16.mxu1 %v6155_v38 }
 0xb43   :  { %4524 = vmatpush1.bf16.msra.mxu1 %v5787_v47 }
 0xb44   :  { %4525 = vmatprep.subr.bf16.mxu1 %v6155_v38 }
 0xbde   :  { %v4096_v20 = vpop.f32.mrb[48].mxu0 }
 0xbdf   :  { %v4102_v3 = vmul.f32 0.07216878, %v4096_v20  ;;  %v4098_v27 = vpop.f32.mrb[49].mxu0  ;;  %v5768_v20 = vld [vmem:[%s7382_s19 + $0x10] sm:$0xff]  }
 0xbe0   :  { %v4099_v11 = vpop.f32.mrb[50].mxu0  ;;  %v5770_v27 = vld [vmem:[%s7382_s19 + $0x20] sm:$0xff]  }
 0xbe1   :  { %v4100_v22 = vpop.f32.mrb[51].mxu0  ;;  %v4111_v16 = vsel %vm4110_vm15, %v4102_v3, -1e+09  ;;  %v5769_v3 = vld [vmem:[%s7382_s19 + $0x18] sm:$0xff]   ;;  %v5772_v11 = vld [vmem:[%s7382_s19 + $0x30] sm:$0xff]  }
 0xbe2   :  { %v4113_v14 = vsel %vm4112_vm0, %v4111_v16, -inf  ;;  %v5773_v22 = vld [vmem:[%s7382_s19 + $0x38] sm:$0xff]  }
 0xbe3   :  { %4114 = vmax.xlane.f32.xlu0 %v4113_v14  ;;  %v5775_v14 = vld [vmem:[%s7382_s19 + $0x48] sm:$0xff]  }
 0xc70   :  { %v4115_v25 = vpop.xlane.xlu0 %4114 }
 0xc71   :  { %v4116_v56 = vsub.f32 %v4111_v16, %v4115_v25  ;;  %v5774_v16 = vld [vmem:[%s7382_s19 + $0x40] sm:$0xff]   ;;  %v5776_v25 = vld [vmem:[%s7382_s19 + $0x50] sm:$0xff]  }
 0xc73   :  { %v4117_v60 = vmul.f32 1.442695, %v4116_v56  ;;  %v5777_v56 = vld [vmem:[%s7382_s19 + $0x58] sm:$0xff]  }
 0xc75   :  { %5856 = vpow2.f32 %v4117_v60  ;;  %v5788_v60 = vld [vmem:[%s7381_s14 + $0x50] sm:$0xff]  }
 0xc76   :  { %4526 = vmatpush1.bf16.msra.mxu1 %v5788_v60 }
 0xc77   :  { %4527 = vmatprep.subr.bf16.mxu1 %v6155_v38 }
 0xc7f   :  { %v5857_v13 = vpop.eup %5856 }
 0xc80   :  { %v4119_v26 = vsel %vm4112_vm0, %v5857_v13, 0.0 }
 0xc81   :  { %4120 = vadd.xlane.f32.xlu1 %v4119_v26  ;;  %v4204_v26 = vld [vmem:[%s7383_s24] sm:$0x3] }
 0xc82   :  { %v4209_v37 = vrot.slane %v4204_v26, %v6564_v44 }
 0xd0e   :  { %v4121_v10 = vpop.xlane.xlu1 %4120 }
 0xd0f   :  { %5858 = vrcp.f32 %v4121_v10  ;;  %v4213_v10 = vrot.slane %v4204_v26, %v6568_v46 }
 0xd19   :  { %v5859_v15 = vpop.eup %5858 }
 0xd1a   :  { %v4123_v32 = vmul.f32 %v5859_v15, %v5857_v13  ;;  %v5789_v13 = vld [vmem:[%s7381_s14 + $0x58] sm:$0xff]  }
 0xd1b   :  { %4528 = vmatpush1.bf16.msra.mxu1 %v5789_v13 }
 0xd1c   :  { %v4124_v59 = vpack.c.bf16 %v4123_v32, %v4123_v32  ;;  %5350 = vmatprep.subr.bf16.mxu1 %v6153_v41 }
 0xd1e   :  { %5065 = vmatmul.mubr.msk.bf16.vlgmr.msra.gmra.mrb[52].mxu0 %vm4112_vm0, %v4124_v59 }
 0xd1f   :  { %4340 = vmatpush1.bf16.msra.mxu0 %v5730_v42 }
 0xd20   :  { %4341 = vmatprep.subr.bf16.mxu0 %v5735_v54 }
 0xd23   :  { %4342 = vmatpush1.bf16.msra.mxu0 %v5733_v55 }
 0xd24   :  { %4343 = vmatprep.subr.bf16.mxu0 %v5738_v35 }
 0xd27   :  { %4344 = vmatpush1.bf16.msra.mxu0 %v5736_v2 }
 0xd28   :  { %4345 = vmatprep.subr.bf16.mxu0 %v5741_v52  ;;  %v5790_v52 = vld [vmem:[%s6410_s8] sm:$0xff]  }
 0xd2b   :  { %4346 = vmatpush1.bf16.msra.mxu0 %v5739_v51  ;;  %v5791_v51 = vld [vmem:[%s6410_s8 + $0x8] sm:$0xff]  }
 0xd2c   :  { %4347 = vmatprep.subr.bf16.mxu0 %v5744_v9 }
 0xd2f   :  { %4348 = vmatpush1.bf16.msra.mxu0 %v5742_v30  ;;  %v5117_v30 = vld [vmem:[#allocation17] ss:$0 sm:$0xff] }
 0xd30   :  { %4349 = vmatprep.subr.bf16.mxu0 %v5747_v31 }
 0xd33   :  { %4350 = vmatpush1.bf16.msra.mxu0 %v5745_v4 }
 0xd34   :  { %4351 = vmatprep.subr.bf16.mxu0 %v5750_v6 }
 0xd37   :  { %4352 = vmatpush1.bf16.msra.mxu0 %v5748_v57 }
 0xd38   :  { %4353 = vmatprep.subr.bf16.mxu0 %v5753_v7 }
 0xd3b   :  { %4354 = vmatpush1.bf16.msra.mxu0 %v5751_v28 }
 0xd3c   :  { %4355 = vmatprep.subr.bf16.mxu0 %v5756_v45 }
 0xd3f   :  { %4356 = vmatpush1.bf16.msra.mxu0 %v5754_v0 }
 0xd40   :  { %4357 = vmatprep.subr.bf16.mxu0 %v5759_v48  ;;  %v5118_v48 = vld [vmem:[#allocation2] ss:$0 sm:$0xff] }
 0xd43   :  { %4358 = vmatpush1.bf16.msra.mxu0 %v5757_v19 }
 0xd44   :  { %4359 = vmatprep.subr.bf16.mxu0 %v5762_v12 }
 0xd47   :  { %4360 = vmatpush1.bf16.msra.mxu0 %v5760_v36 }
 0xd48   :  { %4361 = vmatprep.subr.bf16.mxu0 %v5765_v50 }
 0xd4b   :  { %4362 = vmatpush1.bf16.msra.mxu0 %v5763_v40 }
 0xd4c   :  { %4617 = vmatprep.subr.bf16.mxu0 %v6155_v38 }
 0xdf1   :  { %v4171_v21 = vpop.f32.mrb[52].mxu0 }
 0xdf2   :  { %v4173_v34 = vpop.f32.mrb[53].mxu0  ;;  %v4202_v23 = vpack.c.bf16 %v4171_v21, %v4171_v21 }
 0xdf3   :  { %v4203_v39 = vpack.c.bf16 %v4173_v34, %v4173_v34  ;;  %v4175_v18 = vpop.f32.mrb[54].mxu0 }
 0xdf4   :  { %v4176_v61 = vpop.f32.mrb[55].mxu0 }
 0xdf5   :  { %5090 = vmatprep.mubr.msk.bf16.mxu0 %vm2977_vm8, %v4203_v39 }
 0xdf6   :  { %4372 = vmatmul.mubr.bf16.vlgmr.msra.gmra.mrb[56].mxu0 %v4202_v23 }
 0xdf7   :  { %4618 = vmatpush1.bf16.msra.mxu0 %v5766_v43  ;;  %5116 = vmatprep.mubr.msk.bf16.mxu0 %vm2977_vm8, %v7151_v53  ;;  %v5771_v53 = vld [vmem:[%s7382_s19 + $0x28] sm:$0xff]  }
 0xdf8   :  { %4619 = vmatprep.subr.bf16.mxu0 %v6155_v38 }
 0xdfb   :  { %4620 = vmatpush1.bf16.msra.mxu0 %v5767_v24 }
 0xdfc   :  { %4621 = vmatprep.subr.bf16.mxu0 %v6155_v38 }
 0xdff   :  { %4622 = vmatpush1.bf16.msra.mxu0 %v5768_v20 }
 0xe00   :  { %4623 = vmatprep.subr.bf16.mxu0 %v6155_v38 }
 0xe03   :  { %4624 = vmatpush1.bf16.msra.mxu0 %v5769_v3 }
 0xe04   :  { %4625 = vmatprep.subr.bf16.mxu0 %v6155_v38 }
 0xe07   :  { %4626 = vmatpush1.bf16.msra.mxu0 %v5770_v27 }
 0xe08   :  { %4627 = vmatprep.subr.bf16.mxu0 %v6155_v38 }
 0xe0b   :  { %4628 = vmatpush1.bf16.msra.mxu0 %v5771_v53 }
 0xe0c   :  { %4629 = vmatprep.subr.bf16.mxu0 %v6155_v38 }
 0xe0f   :  { %4630 = vmatpush1.bf16.msra.mxu0 %v5772_v11 }
 0xe10   :  { %4631 = vmatprep.subr.bf16.mxu0 %v6155_v38 }
 0xe13   :  { %4632 = vmatpush1.bf16.msra.mxu0 %v5773_v22 }
 0xe14   :  { %4633 = vmatprep.subr.bf16.mxu0 %v6155_v38 }
 0xe17   :  { %4634 = vmatpush1.bf16.msra.mxu0 %v5774_v16 }
 0xe18   :  { %4635 = vmatprep.subr.bf16.mxu0 %v6155_v38 }
 0xe1b   :  { %4636 = vmatpush1.bf16.msra.mxu0 %v5775_v14 }
 0xe1c   :  { %4637 = vmatprep.subr.bf16.mxu0 %v6155_v38 }
 0xe1f   :  { %4638 = vmatpush1.bf16.msra.mxu0 %v5776_v25 }
 0xe20   :  { %4639 = vmatprep.subr.bf16.mxu0 %v6155_v38 }
 0xe23   :  { %4640 = vmatpush1.bf16.msra.mxu0 %v5777_v56 }
 0xe26   :  { %4650 = vmatmul.mubr.bf16.vlgmr.msra.gmra.mrb[60].mxu0 %v7154_v1 }
 0xec9   :  { %v4373_v15 = vpop.f32.mrb[56].mxu0 }
 0xeca   :  { %v4374_v32 = vadd.f32 %v4373_v15, %v4209_v37  ;;  %v4375_v42 = vpop.f32.mrb[57].mxu0 }
 0xecb   :  { %v4376_v59 = vadd.f32 %v4375_v42, %v4213_v10  ;;  %v4377_v1 = vpop.f32.mrb[58].mxu0 }
 0xecc   :  { %v4378_v54 = vpop.f32.mrb[59].mxu0  ;;  %v4428_v35 = vpack.c.bf16 %v4374_v32, %v4374_v32 }
 0xecd   :  { %v4429_v55 = vpack.c.bf16 %v4376_v59, %v4376_v59 }
 0xecf   :  { %5103 = vmatprep.mubr.msk.bf16.mxu1 %vm2977_vm8, %v4429_v55 }
 0xed0   :  { %4538 = vmatmul.mubr.bf16.vlgmr.msra.gmra.mrb[80].mxu1 %v4428_v35 }
 0xed1   :  { %5354 = vmatprep.mubr.msk.bf16.mxu1 %vm6154_vm3, %v6153_v41  ;;  %5351 = vmatpush3.bf16.msra.mxu1 %v5790_v52  ;;  %vm4735_vm3 = vcmask 7168  }
 0xed2   :  { %5352 = vmatprep.subr.bf16.mxu1 %v6153_v41 }
 0xed5   :  { %5353 = vmatpush3.bf16.msra.mxu1 %v5791_v51 }
 0xef9   :  { %v4651_v38 = vpop.f32.mrb[60].mxu0 }
 0xefa   :  { %v4653_v44 = vpop.f32.mrb[61].mxu0 }
 0xefb   :  { %v4654_v2 = vpop.f32.mrb[62].mxu0 }
 0xefc   :  { %v4655_v46 = vpop.f32.mrb[63].mxu0 }
 0xfa3   :  { %v4539_v9 = vpop.f32.mrb[80].mxu1 }
 0xfa4   :  { %v4652_v31 = vadd.f32 %v4651_v38, %v4539_v9  ;;  %v4541_v4 = vpop.f32.mrb[81].mxu1 }
 0xfa5   :  { %v4542_v6 = vpop.f32.mrb[82].mxu1 }
 0xfa6   :  { %v4664_v57 = vadd.f32 %v5117_v30, %v4652_v31  ;;  %v4543_v7 = vpop.f32.mrb[83].mxu1 }
 0xfa8   :  { %vm4665_vm9 = vcmp.gt.f32.partialorder %v4664_v57, 0.0  ;;  %v4666_v28 = vmul.f32 0.01, %v4664_v57 }
 0xfaa   :  { %v4667_v45 = vsel %vm4665_vm9, %v4664_v57, %v4666_v28 }
 0xfab   :  { %v4672_v0 = vpack.c.bf16 %v4667_v45, %v4667_v45 }
 0xfad   :  { %5355 = vmatmul.mubr.msk.bf16.vlgmr.msra.gmra.mrb[84].mxu1 %vm1289_vm7, %v4672_v0 }
0x1080   :  { %v4729_v19 = vpop.f32.mrb[84].mxu1 }
0x1081   :  { %v4730_v41 = vadd.f32 %v5118_v48, %v4729_v19  ;;  %v5356_v12 = vpop.f32.mrb[85].mxu1 }
0x1082   :  { %v4732_v36 = vpop.f32.mrb[86].mxu1 }
0x1083   :  { %4736 = vst.msk [vmem:[%s6418_s5] sm:$0xff] %vm4735_vm3, %v4730_v41  ;;  %v5357_v50 = vpop.f32.mrb[87].mxu1 }
0x1084   :  { %4741 = vsyncpa [#allocation4], 1 }
0x1085   :  { %4742 = vsyncpa [#allocation6], 1 }
0x1086   :  { %4743 = vsyncpa [#allocation9], 1 }
0x1087   :  { %4744 = vsyncpa [#allocation12], 1 }
0x1088   :  { %4745 = vsyncpa [#allocation15], 1 }
0x1089   :  { %4746 = vsyncpa [#allocation18], 1 }

</bundles_post_ra>
